<compile_context>
chip_gen: v7x
topology: tpu7x:2x2x1
jax: 0.10.0
libtpu: 0.0.40
codegen_flags: <defaults>
</compile_context>

<pallas_src>
import functools

import numpy as np
import jax
import jax.numpy as jnp
from jax import lax
from jax.experimental import pallas as pl
from jax.experimental.pallas import tpu as pltpu


# ----------------------------------------------------------------------------
# Synthetic cfg (what parse_cfg(cfgfile) would return)
# ----------------------------------------------------------------------------
CFG_BLOCKS = [
    {"type": "net", "width": "16", "height": "16", "channels": "4"},
    {"type": "convolutional", "batch_normalize": "1", "filters": "8",
     "size": "3", "stride": "1", "pad": "1", "activation": "leaky",
     "unfrozen": "0"},
    {"type": "convolutional", "batch_normalize": "1", "filters": "16",
     "size": "3", "stride": "2", "pad": "1", "activation": "leaky",
     "unfrozen": "0"},
    {"type": "convolutional", "batch_normalize": "1", "filters": "16",
     "size": "1", "stride": "1", "pad": "1", "activation": "leaky",
     "unfrozen": "0"},
    {"type": "shortcut", "from": "-2", "activation": "leaky"},
    {"type": "route", "layers": "-1,-3"},
    {"type": "convolutional", "batch_normalize": "0", "filters": "8",
     "size": "1", "stride": "1", "pad": "1", "activation": "linear",
     "unfrozen": "0"},
    {"type": "upsample", "stride": "2"},
    {"type": "maxpool", "size": "2", "stride": "2"},
]


def _round_up(x, m):
    return ((x + m - 1) // m) * m


def _apply_act(y, act):
    if act == "leaky":
        return jnp.where(y > 0, y, 0.1 * y)
    if act == "relu":
        return jnp.maximum(y, 0.0)
    return y  # 'linear'


# ----------------------------------------------------------------------------
# Pallas kernels
# ----------------------------------------------------------------------------
def _conv_kernel(x_ref, w_ref, sc_ref, b_ref, *rest, K, s, Ho, Wo, act,
                 res_act):
    """Fused conv for one image.

    im2col is done in VMEM: for each of the K*K taps we take a contiguous
    window of the (phase-decomposed) padded input, cast it to bf16 and feed
    the MXU, accumulating in f32.  Epilogue: folded-BN scale/bias, activation,
    optional fused residual add (+activation), single f32 store.
    """
    if len(rest) == 2:
        res_ref, o_ref = rest
    else:
        (o_ref,) = rest
        res_ref = None
    Cout = w_ref.shape[-1]

    acc = jnp.zeros((Ho * Wo, Cout), jnp.float32)
    for kh in range(K):
        for kw in range(K):
            ph = (kh % s) * s + (kw % s)              # phase index
            patch = x_ref[ph, pl.ds(kh // s, Ho), pl.ds(kw // s, Wo), :]
            pm = patch.reshape(Ho * Wo, patch.shape[-1]).astype(jnp.bfloat16)
            acc = acc + jnp.dot(pm, w_ref[kh * K + kw],
                                preferred_element_type=jnp.float32)

    y = acc * sc_ref[...] + b_ref[...]                # folded BN / conv bias
    y = _apply_act(y, act)
    if res_ref is not None:                           # fused shortcut
        y = y + res_ref[0]
        y = _apply_act(y, res_act)
    o_ref[0] = y.astype(o_ref.dtype)


def _add_act_kernel(a_ref, b_ref, o_ref, *, act):
    """Shortcut fallback: elementwise add + activation (row-tiled)."""
    o_ref[...] = _apply_act(a_ref[...] + b_ref[...], act)


def _maxpool2x2_kernel(xe_ref, xo_ref, o_ref):
    """2x2/stride-2 max pool from NHWC tiles (even/odd columns pre-split)."""
    Ho, Wo, C = o_ref.shape[1], o_ref.shape[2], o_ref.shape[3]
    e = xe_ref[0].reshape(Ho, 2, Wo, C)
    o = xo_ref[0].reshape(Ho, 2, Wo, C)
    o_ref[0] = jnp.maximum(jnp.maximum(e[:, 0], e[:, 1]),
                           jnp.maximum(o[:, 0], o[:, 1]))


# ----------------------------------------------------------------------------
# Layer wrappers
# ----------------------------------------------------------------------------
def conv_block(x, W, scale, bias, *, K, stride, pad, activation,
               residual=None, res_activation=None):
    """x: NHWC f32.  W: (K*K, Cin, Cout) bf16 (pre-laid-out).  Returns NHWC f32."""
    N, H, Wd, Cin = x.shape
    Cout = W.shape[-1]
    s = stride
    Ho = (H + 2 * pad - K) // s + 1
    Wo = (Wd + 2 * pad - K) // s + 1

    # Spatial zero pad + stride-phase decomposition (glue, ~1x the input; the
    # K*K im2col expansion happens inside the kernel from VMEM).
    Hp, Wp = H + 2 * pad, Wd + 2 * pad
    Hq = (K - 1) // s + Ho
    Wq = (K - 1) // s + Wo
    xp = jnp.pad(x, ((0, 0),
                     (pad, pad + s * Hq - Hp),
                     (pad, pad + s * Wq - Wp),
                     (0, 0)))
    xph = xp.reshape(N, Hq, s, Wq, s, Cin).transpose(0, 2, 4, 1, 3, 5)
    xph = xph.reshape(N * s * s, Hq, Wq, Cin)

    in_specs = [
        pl.BlockSpec((s * s, Hq, Wq, Cin), lambda n: (n, 0, 0, 0)),
        pl.BlockSpec((K * K, Cin, Cout), lambda n: (0, 0, 0)),
        pl.BlockSpec((1, Cout), lambda n: (0, 0)),
        pl.BlockSpec((1, Cout), lambda n: (0, 0)),
    ]
    args = [xph, W, scale, bias]
    if residual is not None:
        in_specs.append(pl.BlockSpec((1, Ho * Wo, Cout), lambda n: (n, 0, 0)))
        args.append(residual.reshape(N, Ho * Wo, Cout))

    # TODO(synk): for real Darknet layer sizes also tile Cout / the K*K*Cin
    # reduction (accumulator scratch, K axis "arbitrary") and set
    # vmem_limit_bytes; at these demo sizes a per-image block fits VMEM easily.
    out = pl.pallas_call(
        functools.partial(_conv_kernel, K=K, s=s, Ho=Ho, Wo=Wo,
                          act=activation, res_act=res_activation),
        out_shape=jax.ShapeDtypeStruct((N, Ho * Wo, Cout), jnp.float32),
        grid=(N,),
        in_specs=in_specs,
        out_specs=pl.BlockSpec((1, Ho * Wo, Cout), lambda n: (n, 0, 0)),
        compiler_params=pltpu.CompilerParams(
            dimension_semantics=("parallel",)),
    )(*args)
    return out.reshape(N, Ho, Wo, Cout)


def shortcut_add(a, b, activation):
    """Fallback shortcut (used only when the add cannot be fused into a conv)."""
    N, H, Wd, C = a.shape
    M = N * H * Wd
    TM = min(1024, _round_up(M, 8))
    Mp = _round_up(M, TM)
    a2 = jnp.pad(a.reshape(M, C), ((0, Mp - M), (0, 0)))
    b2 = jnp.pad(b.reshape(M, C), ((0, Mp - M), (0, 0)))
    out = pl.pallas_call(
        functools.partial(_add_act_kernel, act=activation),
        out_shape=jax.ShapeDtypeStruct((Mp, C), a.dtype),
        grid=(Mp // TM,),
        in_specs=[pl.BlockSpec((TM, C), lambda i: (i, 0)),
                  pl.BlockSpec((TM, C), lambda i: (i, 0))],
        out_specs=pl.BlockSpec((TM, C), lambda i: (i, 0)),
        compiler_params=pltpu.CompilerParams(
            dimension_semantics=("parallel",)),
    )(a2, b2)
    return out[:M].reshape(N, H, Wd, C)


def maxpool_2x2(x):
    """nn.MaxPool2d(2, 2) equivalent, NHWC in/out.
    TODO(synk): only the size=2/stride=2 case used by the cfg is implemented."""
    N, H, Wd, C = x.shape
    Ho, Wo = H // 2, Wd // 2
    xe = x[:, :2 * Ho, 0:2 * Wo:2, :]   # even columns: (N, 2*Ho, Wo, C)
    xo = x[:, :2 * Ho, 1:2 * Wo:2, :]   # odd columns
    return pl.pallas_call(
        _maxpool2x2_kernel,
        out_shape=jax.ShapeDtypeStruct((N, Ho, Wo, C), x.dtype),
        grid=(N,),
        in_specs=[pl.BlockSpec((1, 2 * Ho, Wo, C), lambda n: (n, 0, 0, 0)),
                  pl.BlockSpec((1, 2 * Ho, Wo, C), lambda n: (n, 0, 0, 0))],
        out_specs=pl.BlockSpec((1, Ho, Wo, C), lambda n: (n, 0, 0, 0)),
        compiler_params=pltpu.CompilerParams(
            dimension_semantics=("parallel",)),
    )(xe, xo)


def upsample_nearest(x, stride):
    # pure data movement (glue, fused by XLA under jit)
    return jnp.repeat(jnp.repeat(x, stride, axis=1), stride, axis=2)


# ----------------------------------------------------------------------------
# Parameter construction (mirrors create_layers channel bookkeeping).
# Weights are pre-transposed to matmul layout (K*K, Cin, Cout) and pre-cast to
# bf16; BN is folded with its running statistics (eval-mode semantics).
# ----------------------------------------------------------------------------
def init_params(blocks, key):
    params = {}
    in_ch = None
    out_ch_record = []
    ind = -2
    for block in blocks:
        ind += 1
        t = block["type"]
        if t == "net":
            in_ch = int(block["channels"])
            continue
        if t == "convolutional":
            bn = int(block["batch_normalize"])
            filters = int(block["filters"])
            size = int(block["size"])
            k = jax.random.fold_in(key, ind)
            kW, kg, kb, km, kv = jax.random.split(k, 5)
            W = 0.1 * jax.random.normal(kW, (filters, in_ch, size, size),
                                        jnp.float32)
            if bn:
                gamma = 1.0 + 0.1 * jax.random.normal(kg, (filters,), jnp.float32)
                beta = 0.1 * jax.random.normal(kb, (filters,), jnp.float32)
                mean = 0.1 * jax.random.normal(km, (filters,), jnp.float32)
                var = jnp.abs(jax.random.normal(kv, (filters,), jnp.float32)) + 0.5
                eps = 1e-5
                scale = gamma / jnp.sqrt(var + eps)
                bias = beta - mean * scale
            else:
                scale = jnp.ones((filters,), jnp.float32)
                bias = 0.1 * jax.random.normal(kb, (filters,), jnp.float32)
            Wm = jnp.transpose(W, (2, 3, 1, 0)).reshape(size * size, in_ch,
                                                        filters)
            params[ind] = dict(W=Wm.astype(jnp.bfloat16),
                               scale=scale.reshape(1, filters),
                               bias=bias.reshape(1, filters))
            in_ch = filters
            out_ch_record.append(filters)
        elif t in ("maxpool", "upsample", "avgpool", "softmax"):
            out_ch_record.append(in_ch)
        elif t == "reorg":
            s = int(block["stride"])
            in_ch = in_ch * s * s
            out_ch_record.append(in_ch)
        elif t == "shortcut":
            cur = len(out_ch_record)
            in_ch = out_ch_record[cur - 1]
            out_ch_record.append(in_ch)
        elif t == "route":
            cur = len(out_ch_record)
            layers = [int(i) for i in block["layers"].split(",")]
            layers = [l if l > 0 else l + cur for l in layers]
            if len(layers) == 1:
                in_ch = out_ch_record[layers[0]]
            else:
                in_ch = out_ch_record[layers[0]] + out_ch_record[layers[1]]
            out_ch_record.append(in_ch)
        else:
            out_ch_record.append(in_ch)
    return params


# ----------------------------------------------------------------------------
# Static cfg analysis: which shortcuts can be fused into the preceding conv.
# A shortcut at index s (adding outputs[from] to outputs[s-1]) is fused into
# the conv at s-1 when the conv's standalone output is not referenced anywhere
# else — the fused result is then bit-identical observationally.
# ----------------------------------------------------------------------------
def _find_shortcut_fusions(blocks):
    infos = []
    refs = []
    ind = -2
    for block in blocks:
        ind += 1
        t = block["type"]
        infos.append((ind, block))
        if t == "route":
            layers = [int(i) for i in block["layers"].split(",")]
            refs.extend([l if l > 0 else l + ind for l in layers])
        elif t == "shortcut":
            f = int(block["from"])
            refs.append(f if f > 0 else f + ind)
            refs.append(ind - 1)
    fusions = {}
    for pos in range(1, len(infos)):
        sind, sblock = infos[pos]
        cind, cblock = infos[pos - 1]
        if sblock["type"] != "shortcut" or cblock["type"] != "convolutional":
            continue
        if sind != cind + 1:
            continue
        f = int(sblock["from"])
        f = f if f > 0 else f + sind
        if f != cind and refs.count(cind) == 1:
            fusions[cind] = (sind, f, sblock["activation"])
    return fusions


# ----------------------------------------------------------------------------
# Forward pass (mirrors Darknet.forward)
# ----------------------------------------------------------------------------
def darknet_forward(blocks, params, x_nchw):
    fusions = _find_shortcut_fusions(blocks)
    skip = set()
    x = jnp.transpose(x_nchw.astype(jnp.float32), (0, 2, 3, 1))  # NCHW -> NHWC
    outputs = {}
    ind = -2
    for block in blocks:
        ind += 1
        t = block["type"]
        if t == "net":
            continue
        if ind in skip:                 # shortcut fused into the previous conv
            outputs[ind] = x
            continue
        if t == "convolutional":
            p = params[ind]
            K = int(block["size"])
            stride = int(block["stride"])
            pad = (K - 1) // 2 if int(block["pad"]) else 0
            residual = None
            res_act = None
            if ind in fusions:
                sind, frm, res_act = fusions[ind]
                residual = outputs[frm]
                skip.add(sind)
            x = conv_block(x, p["W"], p["scale"], p["bias"], K=K,
                           stride=stride, pad=pad,
                           activation=block["activation"],
                           residual=residual, res_activation=res_act)
            outputs[ind] = x
        elif t == "maxpool":
            x = maxpool_2x2(x)          # cfg uses size=2, stride=2
            outputs[ind] = x
        elif t == "upsample":
            x = upsample_nearest(x, int(block["stride"]))
            outputs[ind] = x
        elif t == "route":
            layers = [int(i) for i in block["layers"].split(",")]
            layers = [l if l > 0 else l + ind for l in layers]
            if len(layers) == 1:
                x = outputs[layers[0]]
            else:
                x = jnp.concatenate([outputs[layers[0]], outputs[layers[1]]],
                                    axis=-1)   # channel concat (dim=1 in NCHW)
            outputs[ind] = x
        elif t == "shortcut":
            frm = int(block["from"])
            frm = frm if frm > 0 else frm + ind
            x = shortcut_add(outputs[frm], outputs[ind - 1],
                             block["activation"])
            outputs[ind] = x
        # TODO(synk): 'yolo'/'region' (get_mask_boxes) not implemented —
        # YoloLayer definition is not part of the provided module.
    return jnp.transpose(x, (0, 3, 1, 2)).astype(jnp.float32)  # NHWC -> NCHW


# ----------------------------------------------------------------------------
# Pure-JAX reference (for numerical validation of the Pallas path)
# ----------------------------------------------------------------------------
def _reference_forward(blocks, params, x_nchw):
    x = jnp.transpose(x_nchw.astype(jnp.float32), (0, 2, 3, 1))
    outputs = {}
    ind = -2
    for block in blocks:
        ind += 1
        t = block["type"]
        if t == "net":
            continue
        if t == "convolutional":
            p = params[ind]
            K = int(block["size"])
            s = int(block["stride"])
            pad = (K - 1) // 2 if int(block["pad"]) else 0
            Cin, Cout = p["W"].shape[1], p["W"].shape[2]
            w = p["W"].astype(jnp.float32).reshape(K, K, Cin, Cout)
            y = lax.conv_general_dilated(
                x, w, (s, s), ((pad, pad), (pad, pad)),
                dimension_numbers=("NHWC", "HWIO", "NHWC"),
                precision=lax.Precision.HIGHEST)
            y = y * p["scale"].reshape(1, 1, 1, Cout) \
                + p["bias"].reshape(1, 1, 1, Cout)
            x = _apply_act(y, block["activation"])
            outputs[ind] = x
        elif t == "maxpool":
            N, H, Wd, C = x.shape
            Ho, Wo = H // 2, Wd // 2
            x = x[:, :2 * Ho, :2 * Wo, :].reshape(N, Ho, 2, Wo, 2, C)
            x = x.max(axis=(2, 4))
            outputs[ind] = x
        elif t == "upsample":
            st = int(block["stride"])
            x = jnp.repeat(jnp.repeat(x, st, axis=1), st, axis=2)
            outputs[ind] = x
        elif t == "route":
            layers = [int(i) for i in block["layers"].split(",")]
            layers = [l if l > 0 else l + ind for l in layers]
            if len(layers) == 1:
                x = outputs[layers[0]]
            else:
                x = jnp.concatenate([outputs[layers[0]], outputs[layers[1]]],
                                    axis=-1)
            outputs[ind] = x
        elif t == "shortcut":
            frm = int(block["from"])
            frm = frm if frm > 0 else frm + ind
            x = _apply_act(outputs[frm] + outputs[ind - 1],
                           block["activation"])
            outputs[ind] = x
    return jnp.transpose(x, (0, 3, 1, 2))


# ----------------------------------------------------------------------------
if __name__ == "__main__":
    key = jax.random.PRNGKey(0)
    kx, kp = jax.random.split(key)
    x = jax.random.normal(kx, (2, 4, 16, 16), jnp.float32)  # NCHW, matches cfg
    params = init_params(CFG_BLOCKS, kp)

    fwd = jax.jit(functools.partial(darknet_forward, CFG_BLOCKS))
    out = jax.block_until_ready(fwd(params, x))
    assert out.shape == (2, 8, 8, 8), out.shape

    ref_fwd = jax.jit(functools.partial(_reference_forward, CFG_BLOCKS))
    ref = jax.block_until_ready(ref_fwd(params, x))
    np.testing.assert_allclose(np.asarray(out), np.asarray(ref),
                               rtol=5e-2, atol=5e-2)
    print("KERNEL_OK")
</pallas_src>

<mosaic_0001>
module attributes {stable_mosaic.version = 11 : i64} {
  func.func @_conv_kernel(%arg0: i32, %arg1: memref<1x18x18x4xf32, #tpu.memory_space<vmem>>, %arg2: memref<9x4x8xbf16, #tpu.memory_space<vmem>>, %arg3: memref<1x8xf32, #tpu.memory_space<vmem>>, %arg4: memref<1x8xf32, #tpu.memory_space<vmem>>, %arg5: memref<1x256x8xf32, #tpu.memory_space<vmem>>) attributes {dimension_semantics = [#tpu.dimension_semantics<parallel>], iteration_bounds = array<i64: 2>, scalar_prefetch = 0 : i64, scratch_operands = 0 : i64, tpu.core_type = #tpu.core_type<tc>, window_params = [{transform_indices = @transform_0, window_bounds = array<i64: 1, 18, 18, 4>}, {pipeline_mode = #tpu.pipeline_mode<synchronous>, transform_indices = @transform_1, window_bounds = array<i64: 9, 4, 8>}, {pipeline_mode = #tpu.pipeline_mode<synchronous>, transform_indices = @transform_2, window_bounds = array<i64: 1, 8>}, {pipeline_mode = #tpu.pipeline_mode<synchronous>, transform_indices = @transform_3, window_bounds = array<i64: 1, 8>}, {transform_indices = @transform_4, window_bounds = array<i64: 1, 256, 8>}]} {
    %cst = arith.constant 0.000000e+00 : f32
    %0 = vector.broadcast %cst : f32 to vector<256x8xf32>
    %c0 = arith.constant 0 : index
    %c0_0 = arith.constant 0 : index
    %c0_1 = arith.constant 0 : index
    %c0_2 = arith.constant 0 : index
    %1 = vector.load %arg1[%c0, %c0_0, %c0_1, %c0_2] : memref<1x18x18x4xf32, #tpu.memory_space<vmem>>, vector<1x16x16x4xf32>
    %2 = vector.shape_cast %1 : vector<1x16x16x4xf32> to vector<16x16x4xf32>
    %3 = vector.shape_cast %2 : vector<16x16x4xf32> to vector<256x4xf32>
    %4 = arith.truncf %3 : vector<256x4xf32> to vector<256x4xbf16>
    %c0_3 = arith.constant 0 : index
    %c0_4 = arith.constant 0 : index
    %c0_5 = arith.constant 0 : index
    %5 = vector.load %arg2[%c0_3, %c0_4, %c0_5] : memref<9x4x8xbf16, #tpu.memory_space<vmem>>, vector<1x4x8xbf16>
    %6 = vector.shape_cast %5 : vector<1x4x8xbf16> to vector<4x8xbf16>
    %cst_6 = arith.constant dense<0.000000e+00> : vector<256x8xf32>
    %7 = tpu.matmul %4, %6, %cst_6 {dimension_numbers = #tpu.dot_dimension_numbers<[1], [0], [0], [1], [0, 0, 1, 1], [], []>} : vector<256x4xbf16>, vector<4x8xbf16>, vector<256x8xf32> -> vector<256x8xf32>
    %8 = arith.addf %0, %7 : vector<256x8xf32>
    %c0_7 = arith.constant 0 : index
    %c0_8 = arith.constant 0 : index
    %c1 = arith.constant 1 : index
    %c0_9 = arith.constant 0 : index
    %9 = vector.load %arg1[%c0_7, %c0_8, %c1, %c0_9] : memref<1x18x18x4xf32, #tpu.memory_space<vmem>>, vector<1x16x16x4xf32>
    %10 = vector.shape_cast %9 : vector<1x16x16x4xf32> to vector<16x16x4xf32>
    %11 = vector.shape_cast %10 : vector<16x16x4xf32> to vector<256x4xf32>
    %12 = arith.truncf %11 : vector<256x4xf32> to vector<256x4xbf16>
    %c1_10 = arith.constant 1 : index
    %c0_11 = arith.constant 0 : index
    %c0_12 = arith.constant 0 : index
    %13 = vector.load %arg2[%c1_10, %c0_11, %c0_12] : memref<9x4x8xbf16, #tpu.memory_space<vmem>>, vector<1x4x8xbf16>
    %14 = vector.shape_cast %13 : vector<1x4x8xbf16> to vector<4x8xbf16>
    %cst_13 = arith.constant dense<0.000000e+00> : vector<256x8xf32>
    %15 = tpu.matmul %12, %14, %cst_13 {dimension_numbers = #tpu.dot_dimension_numbers<[1], [0], [0], [1], [0, 0, 1, 1], [], []>} : vector<256x4xbf16>, vector<4x8xbf16>, vector<256x8xf32> -> vector<256x8xf32>
    %16 = arith.addf %8, %15 : vector<256x8xf32>
    %c0_14 = arith.constant 0 : index
    %c0_15 = arith.constant 0 : index
    %c2 = arith.constant 2 : index
    %c0_16 = arith.constant 0 : index
    %17 = vector.load %arg1[%c0_14, %c0_15, %c2, %c0_16] : memref<1x18x18x4xf32, #tpu.memory_space<vmem>>, vector<1x16x16x4xf32>
    %18 = vector.shape_cast %17 : vector<1x16x16x4xf32> to vector<16x16x4xf32>
    %19 = vector.shape_cast %18 : vector<16x16x4xf32> to vector<256x4xf32>
    %20 = arith.truncf %19 : vector<256x4xf32> to vector<256x4xbf16>
    %c2_17 = arith.constant 2 : index
    %c0_18 = arith.constant 0 : index
    %c0_19 = arith.constant 0 : index
    %21 = vector.load %arg2[%c2_17, %c0_18, %c0_19] : memref<9x4x8xbf16, #tpu.memory_space<vmem>>, vector<1x4x8xbf16>
    %22 = vector.shape_cast %21 : vector<1x4x8xbf16> to vector<4x8xbf16>
    %cst_20 = arith.constant dense<0.000000e+00> : vector<256x8xf32>
    %23 = tpu.matmul %20, %22, %cst_20 {dimension_numbers = #tpu.dot_dimension_numbers<[1], [0], [0], [1], [0, 0, 1, 1], [], []>} : vector<256x4xbf16>, vector<4x8xbf16>, vector<256x8xf32> -> vector<256x8xf32>
    %24 = arith.addf %16, %23 : vector<256x8xf32>
    %c0_21 = arith.constant 0 : index
    %c1_22 = arith.constant 1 : index
    %c0_23 = arith.constant 0 : index
    %c0_24 = arith.constant 0 : index
    %25 = vector.load %arg1[%c0_21, %c1_22, %c0_23, %c0_24] : memref<1x18x18x4xf32, #tpu.memory_space<vmem>>, vector<1x16x16x4xf32>
    %26 = vector.shape_cast %25 : vector<1x16x16x4xf32> to vector<16x16x4xf32>
    %27 = vector.shape_cast %26 : vector<16x16x4xf32> to vector<256x4xf32>
    %28 = arith.truncf %27 : vector<256x4xf32> to vector<256x4xbf16>
    %c3 = arith.constant 3 : index
    %c0_25 = arith.constant 0 : index
    %c0_26 = arith.constant 0 : index
    %29 = vector.load %arg2[%c3, %c0_25, %c0_26] : memref<9x4x8xbf16, #tpu.memory_space<vmem>>, vector<1x4x8xbf16>
    %30 = vector.shape_cast %29 : vector<1x4x8xbf16> to vector<4x8xbf16>
    %cst_27 = arith.constant dense<0.000000e+00> : vector<256x8xf32>
    %31 = tpu.matmul %28, %30, %cst_27 {dimension_numbers = #tpu.dot_dimension_numbers<[1], [0], [0], [1], [0, 0, 1, 1], [], []>} : vector<256x4xbf16>, vector<4x8xbf16>, vector<256x8xf32> -> vector<256x8xf32>
    %32 = arith.addf %24, %31 : vector<256x8xf32>
    %c0_28 = arith.constant 0 : index
    %c1_29 = arith.constant 1 : index
    %c1_30 = arith.constant 1 : index
    %c0_31 = arith.constant 0 : index
    %33 = vector.load %arg1[%c0_28, %c1_29, %c1_30, %c0_31] : memref<1x18x18x4xf32, #tpu.memory_space<vmem>>, vector<1x16x16x4xf32>
    %34 = vector.shape_cast %33 : vector<1x16x16x4xf32> to vector<16x16x4xf32>
    %35 = vector.shape_cast %34 : vector<16x16x4xf32> to vector<256x4xf32>
    %36 = arith.truncf %35 : vector<256x4xf32> to vector<256x4xbf16>
    %c4 = arith.constant 4 : index
    %c0_32 = arith.constant 0 : index
    %c0_33 = arith.constant 0 : index
    %37 = vector.load %arg2[%c4, %c0_32, %c0_33] : memref<9x4x8xbf16, #tpu.memory_space<vmem>>, vector<1x4x8xbf16>
    %38 = vector.shape_cast %37 : vector<1x4x8xbf16> to vector<4x8xbf16>
    %cst_34 = arith.constant dense<0.000000e+00> : vector<256x8xf32>
    %39 = tpu.matmul %36, %38, %cst_34 {dimension_numbers = #tpu.dot_dimension_numbers<[1], [0], [0], [1], [0, 0, 1, 1], [], []>} : vector<256x4xbf16>, vector<4x8xbf16>, vector<256x8xf32> -> vector<256x8xf32>
    %40 = arith.addf %32, %39 : vector<256x8xf32>
    %c0_35 = arith.constant 0 : index
    %c1_36 = arith.constant 1 : index
    %c2_37 = arith.constant 2 : index
    %c0_38 = arith.constant 0 : index
    %41 = vector.load %arg1[%c0_35, %c1_36, %c2_37, %c0_38] : memref<1x18x18x4xf32, #tpu.memory_space<vmem>>, vector<1x16x16x4xf32>
    %42 = vector.shape_cast %41 : vector<1x16x16x4xf32> to vector<16x16x4xf32>
    %43 = vector.shape_cast %42 : vector<16x16x4xf32> to vector<256x4xf32>
    %44 = arith.truncf %43 : vector<256x4xf32> to vector<256x4xbf16>
    %c5 = arith.constant 5 : index
    %c0_39 = arith.constant 0 : index
    %c0_40 = arith.constant 0 : index
    %45 = vector.load %arg2[%c5, %c0_39, %c0_40] : memref<9x4x8xbf16, #tpu.memory_space<vmem>>, vector<1x4x8xbf16>
    %46 = vector.shape_cast %45 : vector<1x4x8xbf16> to vector<4x8xbf16>
    %cst_41 = arith.constant dense<0.000000e+00> : vector<256x8xf32>
    %47 = tpu.matmul %44, %46, %cst_41 {dimension_numbers = #tpu.dot_dimension_numbers<[1], [0], [0], [1], [0, 0, 1, 1], [], []>} : vector<256x4xbf16>, vector<4x8xbf16>, vector<256x8xf32> -> vector<256x8xf32>
    %48 = arith.addf %40, %47 : vector<256x8xf32>
    %c0_42 = arith.constant 0 : index
    %c2_43 = arith.constant 2 : index
    %c0_44 = arith.constant 0 : index
    %c0_45 = arith.constant 0 : index
    %49 = vector.load %arg1[%c0_42, %c2_43, %c0_44, %c0_45] : memref<1x18x18x4xf32, #tpu.memory_space<vmem>>, vector<1x16x16x4xf32>
    %50 = vector.shape_cast %49 : vector<1x16x16x4xf32> to vector<16x16x4xf32>
    %51 = vector.shape_cast %50 : vector<16x16x4xf32> to vector<256x4xf32>
    %52 = arith.truncf %51 : vector<256x4xf32> to vector<256x4xbf16>
    %c6 = arith.constant 6 : index
    %c0_46 = arith.constant 0 : index
    %c0_47 = arith.constant 0 : index
    %53 = vector.load %arg2[%c6, %c0_46, %c0_47] : memref<9x4x8xbf16, #tpu.memory_space<vmem>>, vector<1x4x8xbf16>
    %54 = vector.shape_cast %53 : vector<1x4x8xbf16> to vector<4x8xbf16>
    %cst_48 = arith.constant dense<0.000000e+00> : vector<256x8xf32>
    %55 = tpu.matmul %52, %54, %cst_48 {dimension_numbers = #tpu.dot_dimension_numbers<[1], [0], [0], [1], [0, 0, 1, 1], [], []>} : vector<256x4xbf16>, vector<4x8xbf16>, vector<256x8xf32> -> vector<256x8xf32>
    %56 = arith.addf %48, %55 : vector<256x8xf32>
    %c0_49 = arith.constant 0 : index
    %c2_50 = arith.constant 2 : index
    %c1_51 = arith.constant 1 : index
    %c0_52 = arith.constant 0 : index
    %57 = vector.load %arg1[%c0_49, %c2_50, %c1_51, %c0_52] : memref<1x18x18x4xf32, #tpu.memory_space<vmem>>, vector<1x16x16x4xf32>
    %58 = vector.shape_cast %57 : vector<1x16x16x4xf32> to vector<16x16x4xf32>
    %59 = vector.shape_cast %58 : vector<16x16x4xf32> to vector<256x4xf32>
    %60 = arith.truncf %59 : vector<256x4xf32> to vector<256x4xbf16>
    %c7 = arith.constant 7 : index
    %c0_53 = arith.constant 0 : index
    %c0_54 = arith.constant 0 : index
    %61 = vector.load %arg2[%c7, %c0_53, %c0_54] : memref<9x4x8xbf16, #tpu.memory_space<vmem>>, vector<1x4x8xbf16>
    %62 = vector.shape_cast %61 : vector<1x4x8xbf16> to vector<4x8xbf16>
    %cst_55 = arith.constant dense<0.000000e+00> : vector<256x8xf32>
    %63 = tpu.matmul %60, %62, %cst_55 {dimension_numbers = #tpu.dot_dimension_numbers<[1], [0], [0], [1], [0, 0, 1, 1], [], []>} : vector<256x4xbf16>, vector<4x8xbf16>, vector<256x8xf32> -> vector<256x8xf32>
    %64 = arith.addf %56, %63 : vector<256x8xf32>
    %c0_56 = arith.constant 0 : index
    %c2_57 = arith.constant 2 : index
    %c2_58 = arith.constant 2 : index
    %c0_59 = arith.constant 0 : index
    %65 = vector.load %arg1[%c0_56, %c2_57, %c2_58, %c0_59] : memref<1x18x18x4xf32, #tpu.memory_space<vmem>>, vector<1x16x16x4xf32>
    %66 = vector.shape_cast %65 : vector<1x16x16x4xf32> to vector<16x16x4xf32>
    %67 = vector.shape_cast %66 : vector<16x16x4xf32> to vector<256x4xf32>
    %68 = arith.truncf %67 : vector<256x4xf32> to vector<256x4xbf16>
    %c8 = arith.constant 8 : index
    %c0_60 = arith.constant 0 : index
    %c0_61 = arith.constant 0 : index
    %69 = vector.load %arg2[%c8, %c0_60, %c0_61] : memref<9x4x8xbf16, #tpu.memory_space<vmem>>, vector<1x4x8xbf16>
    %70 = vector.shape_cast %69 : vector<1x4x8xbf16> to vector<4x8xbf16>
    %cst_62 = arith.constant dense<0.000000e+00> : vector<256x8xf32>
    %71 = tpu.matmul %68, %70, %cst_62 {dimension_numbers = #tpu.dot_dimension_numbers<[1], [0], [0], [1], [0, 0, 1, 1], [], []>} : vector<256x4xbf16>, vector<4x8xbf16>, vector<256x8xf32> -> vector<256x8xf32>
    %72 = arith.addf %64, %71 : vector<256x8xf32>
    %c0_63 = arith.constant 0 : index
    %c0_64 = arith.constant 0 : index
    %73 = vector.load %arg3[%c0_63, %c0_64] : memref<1x8xf32, #tpu.memory_space<vmem>>, vector<1x8xf32>
    %74 = vector.broadcast %73 : vector<1x8xf32> to vector<256x8xf32>
    %75 = arith.mulf %72, %74 : vector<256x8xf32>
    %c0_65 = arith.constant 0 : index
    %c0_66 = arith.constant 0 : index
    %76 = vector.load %arg4[%c0_65, %c0_66] : memref<1x8xf32, #tpu.memory_space<vmem>>, vector<1x8xf32>
    %77 = vector.broadcast %76 : vector<1x8xf32> to vector<256x8xf32>
    %78 = arith.addf %75, %77 : vector<256x8xf32>
    %cst_67 = arith.constant 0.000000e+00 : f32
    %79 = vector.broadcast %cst_67 : f32 to vector<256x8xf32>
    %80 = arith.cmpf ogt, %78, %79 : vector<256x8xf32>
    %cst_68 = arith.constant 1.000000e-01 : f32
    %81 = vector.broadcast %cst_68 : f32 to vector<256x8xf32>
    %82 = arith.mulf %81, %78 : vector<256x8xf32>
    %83 = arith.select %80, %78, %82 : vector<256x8xi1>, vector<256x8xf32>
    %c0_69 = arith.constant 0 : index
    %c0_70 = arith.constant 0 : index
    %c0_71 = arith.constant 0 : index
    %84 = vector.load %arg5[%c0_69, %c0_70, %c0_71] : memref<1x256x8xf32, #tpu.memory_space<vmem>>, vector<1x256x8xf32>
    %85 = vector.shape_cast %84 : vector<1x256x8xf32> to vector<256x8xf32>
    %86 = vector.shape_cast %83 : vector<256x8xf32> to vector<1x256x8xf32>
    tpu.vector_store %arg5[%c0_69, %c0_70, %c0_71], %86 {strides = array<i32>} : memref<1x256x8xf32, #tpu.memory_space<vmem>>, vector<1x256x8xf32>,
    return
  }
  func.func @transform_0(%arg0: i32) -> (i32, i32, i32, i32) {
    %c0_i32 = arith.constant 0 : i32
    %c0_i32_0 = arith.constant 0 : i32
    %c0_i32_1 = arith.constant 0 : i32
    %c0_i32_2 = arith.constant 0 : i32
    return %arg0, %c0_i32, %c0_i32_0, %c0_i32_1 : i32, i32, i32, i32
  }
  func.func @transform_1(%arg0: i32) -> (i32, i32, i32) {
    %c0_i32 = arith.constant 0 : i32
    %c0_i32_0 = arith.constant 0 : i32
    %c0_i32_1 = arith.constant 0 : i32
    %c0_i32_2 = arith.constant 0 : i32
    return %c0_i32, %c0_i32_0, %c0_i32_1 : i32, i32, i32
  }
  func.func @transform_2(%arg0: i32) -> (i32, i32) {
    %c0_i32 = arith.constant 0 : i32
    %c0_i32_0 = arith.constant 0 : i32
    %c0_i32_1 = arith.constant 0 : i32
    return %c0_i32, %c0_i32_0 : i32, i32
  }
  func.func @transform_3(%arg0: i32) -> (i32, i32) {
    %c0_i32 = arith.constant 0 : i32
    %c0_i32_0 = arith.constant 0 : i32
    %c0_i32_1 = arith.constant 0 : i32
    return %c0_i32, %c0_i32_0 : i32, i32
  }
  func.func @transform_4(%arg0: i32) -> (i32, i32, i32) {
    %c0_i32 = arith.constant 0 : i32
    %c0_i32_0 = arith.constant 0 : i32
    %c0_i32_1 = arith.constant 0 : i32
    return %arg0, %c0_i32, %c0_i32_0 : i32, i32, i32
  }
}

module attributes {stable_mosaic.version = 11 : i64} {
  func.func @_conv_kernel(%arg0: i32, %arg1: memref<1x8x8x16xf32, #tpu.memory_space<vmem>>, %arg2: memref<1x16x16xbf16, #tpu.memory_space<vmem>>, %arg3: memref<1x16xf32, #tpu.memory_space<vmem>>, %arg4: memref<1x16xf32, #tpu.memory_space<vmem>>, %arg5: memref<1x64x16xf32, #tpu.memory_space<vmem>>, %arg6: memref<1x64x16xf32, #tpu.memory_space<vmem>>) attributes {dimension_semantics = [#tpu.dimension_semantics<parallel>], iteration_bounds = array<i64: 2>, scalar_prefetch = 0 : i64, scratch_operands = 0 : i64, tpu.core_type = #tpu.core_type<tc>, window_params = [{transform_indices = @transform_0, window_bounds = array<i64: 1, 8, 8, 16>}, {pipeline_mode = #tpu.pipeline_mode<synchronous>, transform_indices = @transform_1, window_bounds = array<i64: 1, 16, 16>}, {pipeline_mode = #tpu.pipeline_mode<synchronous>, transform_indices = @transform_2, window_bounds = array<i64: 1, 16>}, {pipeline_mode = #tpu.pipeline_mode<synchronous>, transform_indices = @transform_3, window_bounds = array<i64: 1, 16>}, {transform_indices = @transform_4, window_bounds = array<i64: 1, 64, 16>}, {transform_indices = @transform_5, window_bounds = array<i64: 1, 64, 16>}]} {
    %cst = arith.constant 0.000000e+00 : f32
    %0 = vector.broadcast %cst : f32 to vector<64x16xf32>
    %c0 = arith.constant 0 : index
    %c0_0 = arith.constant 0 : index
    %c0_1 = arith.constant 0 : index
    %c0_2 = arith.constant 0 : index
    %1 = vector.load %arg1[%c0, %c0_0, %c0_1, %c0_2] : memref<1x8x8x16xf32, #tpu.memory_space<vmem>>, vector<1x8x8x16xf32>
    %2 = vector.shape_cast %1 : vector<1x8x8x16xf32> to vector<8x8x16xf32>
    %3 = vector.shape_cast %2 : vector<8x8x16xf32> to vector<64x16xf32>
    %4 = arith.truncf %3 : vector<64x16xf32> to vector<64x16xbf16>
    %c0_3 = arith.constant 0 : index
    %c0_4 = arith.constant 0 : index
    %c0_5 = arith.constant 0 : index
    %5 = vector.load %arg2[%c0_3, %c0_4, %c0_5] : memref<1x16x16xbf16, #tpu.memory_space<vmem>>, vector<1x16x16xbf16>
    %6 = vector.shape_cast %5 : vector<1x16x16xbf16> to vector<16x16xbf16>
    %cst_6 = arith.constant dense<0.000000e+00> : vector<64x16xf32>
    %7 = tpu.matmul %4, %6, %cst_6 {dimension_numbers = #tpu.dot_dimension_numbers<[1], [0], [0], [1], [0, 0, 1, 1], [], []>} : vector<64x16xbf16>, vector<16x16xbf16>, vector<64x16xf32> -> vector<64x16xf32>
    %8 = arith.addf %0, %7 : vector<64x16xf32>
    %c0_7 = arith.constant 0 : index
    %c0_8 = arith.constant 0 : index
    %9 = vector.load %arg3[%c0_7, %c0_8] : memref<1x16xf32, #tpu.memory_space<vmem>>, vector<1x16xf32>
    %10 = vector.broadcast %9 : vector<1x16xf32> to vector<64x16xf32>
    %11 = arith.mulf %8, %10 : vector<64x16xf32>
    %c0_9 = arith.constant 0 : index
    %c0_10 = arith.constant 0 : index
    %12 = vector.load %arg4[%c0_9, %c0_10] : memref<1x16xf32, #tpu.memory_space<vmem>>, vector<1x16xf32>
    %13 = vector.broadcast %12 : vector<1x16xf32> to vector<64x16xf32>
    %14 = arith.addf %11, %13 : vector<64x16xf32>
    %cst_11 = arith.constant 0.000000e+00 : f32
    %15 = vector.broadcast %cst_11 : f32 to vector<64x16xf32>
    %16 = arith.cmpf ogt, %14, %15 : vector<64x16xf32>
    %cst_12 = arith.constant 1.000000e-01 : f32
    %17 = vector.broadcast %cst_12 : f32 to vector<64x16xf32>
    %18 = arith.mulf %17, %14 : vector<64x16xf32>
    %19 = arith.select %16, %14, %18 : vector<64x16xi1>, vector<64x16xf32>
    %c0_13 = arith.constant 0 : index
    %c0_14 = arith.constant 0 : index
    %c0_15 = arith.constant 0 : index
    %20 = vector.load %arg5[%c0_13, %c0_14, %c0_15] : memref<1x64x16xf32, #tpu.memory_space<vmem>>, vector<1x64x16xf32>
    %21 = vector.shape_cast %20 : vector<1x64x16xf32> to vector<64x16xf32>
    %22 = arith.addf %19, %21 : vector<64x16xf32>
    %cst_16 = arith.constant 0.000000e+00 : f32
    %23 = vector.broadcast %cst_16 : f32 to vector<64x16xf32>
    %24 = arith.cmpf ogt, %22, %23 : vector<64x16xf32>
    %cst_17 = arith.constant 1.000000e-01 : f32
    %25 = vector.broadcast %cst_17 : f32 to vector<64x16xf32>
    %26 = arith.mulf %25, %22 : vector<64x16xf32>
    %27 = arith.select %24, %22, %26 : vector<64x16xi1>, vector<64x16xf32>
    %c0_18 = arith.constant 0 : index
    %c0_19 = arith.constant 0 : index
    %c0_20 = arith.constant 0 : index
    %28 = vector.load %arg6[%c0_18, %c0_19, %c0_20] : memref<1x64x16xf32, #tpu.memory_space<vmem>>, vector<1x64x16xf32>
    %29 = vector.shape_cast %28 : vector<1x64x16xf32> to vector<64x16xf32>
    %30 = vector.shape_cast %27 : vector<64x16xf32> to vector<1x64x16xf32>
    tpu.vector_store %arg6[%c0_18, %c0_19, %c0_20], %30 {strides = array<i32>} : memref<1x64x16xf32, #tpu.memory_space<vmem>>, vector<1x64x16xf32>,
    return
  }
  func.func @transform_0(%arg0: i32) -> (i32, i32, i32, i32) {
    %c0_i32 = arith.constant 0 : i32
    %c0_i32_0 = arith.constant 0 : i32
    %c0_i32_1 = arith.constant 0 : i32
    %c0_i32_2 = arith.constant 0 : i32
    return %arg0, %c0_i32, %c0_i32_0, %c0_i32_1 : i32, i32, i32, i32
  }
  func.func @transform_1(%arg0: i32) -> (i32, i32, i32) {
    %c0_i32 = arith.constant 0 : i32
    %c0_i32_0 = arith.constant 0 : i32
    %c0_i32_1 = arith.constant 0 : i32
    %c0_i32_2 = arith.constant 0 : i32
    return %c0_i32, %c0_i32_0, %c0_i32_1 : i32, i32, i32
  }
  func.func @transform_2(%arg0: i32) -> (i32, i32) {
    %c0_i32 = arith.constant 0 : i32
    %c0_i32_0 = arith.constant 0 : i32
    %c0_i32_1 = arith.constant 0 : i32
    return %c0_i32, %c0_i32_0 : i32, i32
  }
  func.func @transform_3(%arg0: i32) -> (i32, i32) {
    %c0_i32 = arith.constant 0 : i32
    %c0_i32_0 = arith.constant 0 : i32
    %c0_i32_1 = arith.constant 0 : i32
    return %c0_i32, %c0_i32_0 : i32, i32
  }
  func.func @transform_4(%arg0: i32) -> (i32, i32, i32) {
    %c0_i32 = arith.constant 0 : i32
    %c0_i32_0 = arith.constant 0 : i32
    %c0_i32_1 = arith.constant 0 : i32
    return %arg0, %c0_i32, %c0_i32_0 : i32, i32, i32
  }
  func.func @transform_5(%arg0: i32) -> (i32, i32, i32) {
    %c0_i32 = arith.constant 0 : i32
    %c0_i32_0 = arith.constant 0 : i32
    %c0_i32_1 = arith.constant 0 : i32
    return %arg0, %c0_i32, %c0_i32_0 : i32, i32, i32
  }
}

module attributes {stable_mosaic.version = 11 : i64} {
  func.func @_conv_kernel(%arg0: i32, %arg1: memref<4x9x9x8xf32, #tpu.memory_space<vmem>>, %arg2: memref<9x8x16xbf16, #tpu.memory_space<vmem>>, %arg3: memref<1x16xf32, #tpu.memory_space<vmem>>, %arg4: memref<1x16xf32, #tpu.memory_space<vmem>>, %arg5: memref<1x64x16xf32, #tpu.memory_space<vmem>>) attributes {dimension_semantics = [#tpu.dimension_semantics<parallel>], iteration_bounds = array<i64: 2>, scalar_prefetch = 0 : i64, scratch_operands = 0 : i64, tpu.core_type = #tpu.core_type<tc>, window_params = [{transform_indices = @transform_0, window_bounds = array<i64: 4, 9, 9, 8>}, {pipeline_mode = #tpu.pipeline_mode<synchronous>, transform_indices = @transform_1, window_bounds = array<i64: 9, 8, 16>}, {pipeline_mode = #tpu.pipeline_mode<synchronous>, transform_indices = @transform_2, window_bounds = array<i64: 1, 16>}, {pipeline_mode = #tpu.pipeline_mode<synchronous>, transform_indices = @transform_3, window_bounds = array<i64: 1, 16>}, {transform_indices = @transform_4, window_bounds = array<i64: 1, 64, 16>}]} {
    %cst = arith.constant 0.000000e+00 : f32
    %0 = vector.broadcast %cst : f32 to vector<64x16xf32>
    %c0 = arith.constant 0 : index
    %c0_0 = arith.constant 0 : index
    %c0_1 = arith.constant 0 : index
    %c0_2 = arith.constant 0 : index
    %1 = vector.load %arg1[%c0, %c0_0, %c0_1, %c0_2] : memref<4x9x9x8xf32, #tpu.memory_space<vmem>>, vector<1x8x8x8xf32>
    %2 = vector.shape_cast %1 : vector<1x8x8x8xf32> to vector<8x8x8xf32>
    %3 = vector.shape_cast %2 : vector<8x8x8xf32> to vector<64x8xf32>
    %4 = arith.truncf %3 : vector<64x8xf32> to vector<64x8xbf16>
    %c0_3 = arith.constant 0 : index
    %c0_4 = arith.constant 0 : index
    %c0_5 = arith.constant 0 : index
    %5 = vector.load %arg2[%c0_3, %c0_4, %c0_5] : memref<9x8x16xbf16, #tpu.memory_space<vmem>>, vector<1x8x16xbf16>
    %6 = vector.shape_cast %5 : vector<1x8x16xbf16> to vector<8x16xbf16>
    %cst_6 = arith.constant dense<0.000000e+00> : vector<64x16xf32>
    %7 = tpu.matmul %4, %6, %cst_6 {dimension_numbers = #tpu.dot_dimension_numbers<[1], [0], [0], [1], [0, 0, 1, 1], [], []>} : vector<64x8xbf16>, vector<8x16xbf16>, vector<64x16xf32> -> vector<64x16xf32>
    %8 = arith.addf %0, %7 : vector<64x16xf32>
    %c1 = arith.constant 1 : index
    %c0_7 = arith.constant 0 : index
    %c0_8 = arith.constant 0 : index
    %c0_9 = arith.constant 0 : index
    %9 = vector.load %arg1[%c1, %c0_7, %c0_8, %c0_9] : memref<4x9x9x8xf32, #tpu.memory_space<vmem>>, vector<1x8x8x8xf32>
    %10 = vector.shape_cast %9 : vector<1x8x8x8xf32> to vector<8x8x8xf32>
    %11 = vector.shape_cast %10 : vector<8x8x8xf32> to vector<64x8xf32>
    %12 = arith.truncf %11 : vector<64x8xf32> to vector<64x8xbf16>
    %c1_10 = arith.constant 1 : index
    %c0_11 = arith.constant 0 : index
    %c0_12 = arith.constant 0 : index
    %13 = vector.load %arg2[%c1_10, %c0_11, %c0_12] : memref<9x8x16xbf16, #tpu.memory_space<vmem>>, vector<1x8x16xbf16>
    %14 = vector.shape_cast %13 : vector<1x8x16xbf16> to vector<8x16xbf16>
    %cst_13 = arith.constant dense<0.000000e+00> : vector<64x16xf32>
    %15 = tpu.matmul %12, %14, %cst_13 {dimension_numbers = #tpu.dot_dimension_numbers<[1], [0], [0], [1], [0, 0, 1, 1], [], []>} : vector<64x8xbf16>, vector<8x16xbf16>, vector<64x16xf32> -> vector<64x16xf32>
    %16 = arith.addf %8, %15 : vector<64x16xf32>
    %c0_14 = arith.constant 0 : index
    %c0_15 = arith.constant 0 : index
    %c1_16 = arith.constant 1 : index
    %c0_17 = arith.constant 0 : index
    %17 = vector.load %arg1[%c0_14, %c0_15, %c1_16, %c0_17] : memref<4x9x9x8xf32, #tpu.memory_space<vmem>>, vector<1x8x8x8xf32>
    %18 = vector.shape_cast %17 : vector<1x8x8x8xf32> to vector<8x8x8xf32>
    %19 = vector.shape_cast %18 : vector<8x8x8xf32> to vector<64x8xf32>
    %20 = arith.truncf %19 : vector<64x8xf32> to vector<64x8xbf16>
    %c2 = arith.constant 2 : index
    %c0_18 = arith.constant 0 : index
    %c0_19 = arith.constant 0 : index
    %21 = vector.load %arg2[%c2, %c0_18, %c0_19] : memref<9x8x16xbf16, #tpu.memory_space<vmem>>, vector<1x8x16xbf16>
    %22 = vector.shape_cast %21 : vector<1x8x16xbf16> to vector<8x16xbf16>
    %cst_20 = arith.constant dense<0.000000e+00> : vector<64x16xf32>
    %23 = tpu.matmul %20, %22, %cst_20 {dimension_numbers = #tpu.dot_dimension_numbers<[1], [0], [0], [1], [0, 0, 1, 1], [], []>} : vector<64x8xbf16>, vector<8x16xbf16>, vector<64x16xf32> -> vector<64x16xf32>
    %24 = arith.addf %16, %23 : vector<64x16xf32>
    %c2_21 = arith.constant 2 : index
    %c0_22 = arith.constant 0 : index
    %c0_23 = arith.constant 0 : index
    %c0_24 = arith.constant 0 : index
    %25 = vector.load %arg1[%c2_21, %c0_22, %c0_23, %c0_24] : memref<4x9x9x8xf32, #tpu.memory_space<vmem>>, vector<1x8x8x8xf32>
    %26 = vector.shape_cast %25 : vector<1x8x8x8xf32> to vector<8x8x8xf32>
    %27 = vector.shape_cast %26 : vector<8x8x8xf32> to vector<64x8xf32>
    %28 = arith.truncf %27 : vector<64x8xf32> to vector<64x8xbf16>
    %c3 = arith.constant 3 : index
    %c0_25 = arith.constant 0 : index
    %c0_26 = arith.constant 0 : index
    %29 = vector.load %arg2[%c3, %c0_25, %c0_26] : memref<9x8x16xbf16, #tpu.memory_space<vmem>>, vector<1x8x16xbf16>
    %30 = vector.shape_cast %29 : vector<1x8x16xbf16> to vector<8x16xbf16>
    %cst_27 = arith.constant dense<0.000000e+00> : vector<64x16xf32>
    %31 = tpu.matmul %28, %30, %cst_27 {dimension_numbers = #tpu.dot_dimension_numbers<[1], [0], [0], [1], [0, 0, 1, 1], [], []>} : vector<64x8xbf16>, vector<8x16xbf16>, vector<64x16xf32> -> vector<64x16xf32>
    %32 = arith.addf %24, %31 : vector<64x16xf32>
    %c3_28 = arith.constant 3 : index
    %c0_29 = arith.constant 0 : index
    %c0_30 = arith.constant 0 : index
    %c0_31 = arith.constant 0 : index
    %33 = vector.load %arg1[%c3_28, %c0_29, %c0_30, %c0_31] : memref<4x9x9x8xf32, #tpu.memory_space<vmem>>, vector<1x8x8x8xf32>
    %34 = vector.shape_cast %33 : vector<1x8x8x8xf32> to vector<8x8x8xf32>
    %35 = vector.shape_cast %34 : vector<8x8x8xf32> to vector<64x8xf32>
    %36 = arith.truncf %35 : vector<64x8xf32> to vector<64x8xbf16>
    %c4 = arith.constant 4 : index
    %c0_32 = arith.constant 0 : index
    %c0_33 = arith.constant 0 : index
    %37 = vector.load %arg2[%c4, %c0_32, %c0_33] : memref<9x8x16xbf16, #tpu.memory_space<vmem>>, vector<1x8x16xbf16>
    %38 = vector.shape_cast %37 : vector<1x8x16xbf16> to vector<8x16xbf16>
    %cst_34 = arith.constant dense<0.000000e+00> : vector<64x16xf32>
    %39 = tpu.matmul %36, %38, %cst_34 {dimension_numbers = #tpu.dot_dimension_numbers<[1], [0], [0], [1], [0, 0, 1, 1], [], []>} : vector<64x8xbf16>, vector<8x16xbf16>, vector<64x16xf32> -> vector<64x16xf32>
    %40 = arith.addf %32, %39 : vector<64x16xf32>
    %c2_35 = arith.constant 2 : index
    %c0_36 = arith.constant 0 : index
    %c1_37 = arith.constant 1 : index
    %c0_38 = arith.constant 0 : index
    %41 = vector.load %arg1[%c2_35, %c0_36, %c1_37, %c0_38] : memref<4x9x9x8xf32, #tpu.memory_space<vmem>>, vector<1x8x8x8xf32>
    %42 = vector.shape_cast %41 : vector<1x8x8x8xf32> to vector<8x8x8xf32>
    %43 = vector.shape_cast %42 : vector<8x8x8xf32> to vector<64x8xf32>
    %44 = arith.truncf %43 : vector<64x8xf32> to vector<64x8xbf16>
    %c5 = arith.constant 5 : index
    %c0_39 = arith.constant 0 : index
    %c0_40 = arith.constant 0 : index
    %45 = vector.load %arg2[%c5, %c0_39, %c0_40] : memref<9x8x16xbf16, #tpu.memory_space<vmem>>, vector<1x8x16xbf16>
    %46 = vector.shape_cast %45 : vector<1x8x16xbf16> to vector<8x16xbf16>
    %cst_41 = arith.constant dense<0.000000e+00> : vector<64x16xf32>
    %47 = tpu.matmul %44, %46, %cst_41 {dimension_numbers = #tpu.dot_dimension_numbers<[1], [0], [0], [1], [0, 0, 1, 1], [], []>} : vector<64x8xbf16>, vector<8x16xbf16>, vector<64x16xf32> -> vector<64x16xf32>
    %48 = arith.addf %40, %47 : vector<64x16xf32>
    %c0_42 = arith.constant 0 : index
    %c1_43 = arith.constant 1 : index
    %c0_44 = arith.constant 0 : index
    %c0_45 = arith.constant 0 : index
    %49 = vector.load %arg1[%c0_42, %c1_43, %c0_44, %c0_45] : memref<4x9x9x8xf32, #tpu.memory_space<vmem>>, vector<1x8x8x8xf32>
    %50 = vector.shape_cast %49 : vector<1x8x8x8xf32> to vector<8x8x8xf32>
    %51 = vector.shape_cast %50 : vector<8x8x8xf32> to vector<64x8xf32>
    %52 = arith.truncf %51 : vector<64x8xf32> to vector<64x8xbf16>
    %c6 = arith.constant 6 : index
    %c0_46 = arith.constant 0 : index
    %c0_47 = arith.constant 0 : index
    %53 = vector.load %arg2[%c6, %c0_46, %c0_47] : memref<9x8x16xbf16, #tpu.memory_space<vmem>>, vector<1x8x16xbf16>
    %54 = vector.shape_cast %53 : vector<1x8x16xbf16> to vector<8x16xbf16>
    %cst_48 = arith.constant dense<0.000000e+00> : vector<64x16xf32>
    %55 = tpu.matmul %52, %54, %cst_48 {dimension_numbers = #tpu.dot_dimension_numbers<[1], [0], [0], [1], [0, 0, 1, 1], [], []>} : vector<64x8xbf16>, vector<8x16xbf16>, vector<64x16xf32> -> vector<64x16xf32>
    %56 = arith.addf %48, %55 : vector<64x16xf32>
    %c1_49 = arith.constant 1 : index
    %c1_50 = arith.constant 1 : index
    %c0_51 = arith.constant 0 : index
    %c0_52 = arith.constant 0 : index
    %57 = vector.load %arg1[%c1_49, %c1_50, %c0_51, %c0_52] : memref<4x9x9x8xf32, #tpu.memory_space<vmem>>, vector<1x8x8x8xf32>
    %58 = vector.shape_cast %57 : vector<1x8x8x8xf32> to vector<8x8x8xf32>
    %59 = vector.shape_cast %58 : vector<8x8x8xf32> to vector<64x8xf32>
    %60 = arith.truncf %59 : vector<64x8xf32> to vector<64x8xbf16>
    %c7 = arith.constant 7 : index
    %c0_53 = arith.constant 0 : index
    %c0_54 = arith.constant 0 : index
    %61 = vector.load %arg2[%c7, %c0_53, %c0_54] : memref<9x8x16xbf16, #tpu.memory_space<vmem>>, vector<1x8x16xbf16>
    %62 = vector.shape_cast %61 : vector<1x8x16xbf16> to vector<8x16xbf16>
    %cst_55 = arith.constant dense<0.000000e+00> : vector<64x16xf32>
    %63 = tpu.matmul %60, %62, %cst_55 {dimension_numbers = #tpu.dot_dimension_numbers<[1], [0], [0], [1], [0, 0, 1, 1], [], []>} : vector<64x8xbf16>, vector<8x16xbf16>, vector<64x16xf32> -> vector<64x16xf32>
    %64 = arith.addf %56, %63 : vector<64x16xf32>
    %c0_56 = arith.constant 0 : index
    %c1_57 = arith.constant 1 : index
    %c1_58 = arith.constant 1 : index
    %c0_59 = arith.constant 0 : index
    %65 = vector.load %arg1[%c0_56, %c1_57, %c1_58, %c0_59] : memref<4x9x9x8xf32, #tpu.memory_space<vmem>>, vector<1x8x8x8xf32>
    %66 = vector.shape_cast %65 : vector<1x8x8x8xf32> to vector<8x8x8xf32>
    %67 = vector.shape_cast %66 : vector<8x8x8xf32> to vector<64x8xf32>
    %68 = arith.truncf %67 : vector<64x8xf32> to vector<64x8xbf16>
    %c8 = arith.constant 8 : index
    %c0_60 = arith.constant 0 : index
    %c0_61 = arith.constant 0 : index
    %69 = vector.load %arg2[%c8, %c0_60, %c0_61] : memref<9x8x16xbf16, #tpu.memory_space<vmem>>, vector<1x8x16xbf16>
    %70 = vector.shape_cast %69 : vector<1x8x16xbf16> to vector<8x16xbf16>
    %cst_62 = arith.constant dense<0.000000e+00> : vector<64x16xf32>
    %71 = tpu.matmul %68, %70, %cst_62 {dimension_numbers = #tpu.dot_dimension_numbers<[1], [0], [0], [1], [0, 0, 1, 1], [], []>} : vector<64x8xbf16>, vector<8x16xbf16>, vector<64x16xf32> -> vector<64x16xf32>
    %72 = arith.addf %64, %71 : vector<64x16xf32>
    %c0_63 = arith.constant 0 : index
    %c0_64 = arith.constant 0 : index
    %73 = vector.load %arg3[%c0_63, %c0_64] : memref<1x16xf32, #tpu.memory_space<vmem>>, vector<1x16xf32>
    %74 = vector.broadcast %73 : vector<1x16xf32> to vector<64x16xf32>
    %75 = arith.mulf %72, %74 : vector<64x16xf32>
    %c0_65 = arith.constant 0 : index
    %c0_66 = arith.constant 0 : index
    %76 = vector.load %arg4[%c0_65, %c0_66] : memref<1x16xf32, #tpu.memory_space<vmem>>, vector<1x16xf32>
    %77 = vector.broadcast %76 : vector<1x16xf32> to vector<64x16xf32>
    %78 = arith.addf %75, %77 : vector<64x16xf32>
    %cst_67 = arith.constant 0.000000e+00 : f32
    %79 = vector.broadcast %cst_67 : f32 to vector<64x16xf32>
    %80 = arith.cmpf ogt, %78, %79 : vector<64x16xf32>
    %cst_68 = arith.constant 1.000000e-01 : f32
    %81 = vector.broadcast %cst_68 : f32 to vector<64x16xf32>
    %82 = arith.mulf %81, %78 : vector<64x16xf32>
    %83 = arith.select %80, %78, %82 : vector<64x16xi1>, vector<64x16xf32>
    %c0_69 = arith.constant 0 : index
    %c0_70 = arith.constant 0 : index
    %c0_71 = arith.constant 0 : index
    %84 = vector.load %arg5[%c0_69, %c0_70, %c0_71] : memref<1x64x16xf32, #tpu.memory_space<vmem>>, vector<1x64x16xf32>
    %85 = vector.shape_cast %84 : vector<1x64x16xf32> to vector<64x16xf32>
    %86 = vector.shape_cast %83 : vector<64x16xf32> to vector<1x64x16xf32>
    tpu.vector_store %arg5[%c0_69, %c0_70, %c0_71], %86 {strides = array<i32>} : memref<1x64x16xf32, #tpu.memory_space<vmem>>, vector<1x64x16xf32>,
    return
  }
  func.func @transform_0(%arg0: i32) -> (i32, i32, i32, i32) {
    %c0_i32 = arith.constant 0 : i32
    %c0_i32_0 = arith.constant 0 : i32
    %c0_i32_1 = arith.constant 0 : i32
    %c0_i32_2 = arith.constant 0 : i32
    return %arg0, %c0_i32, %c0_i32_0, %c0_i32_1 : i32, i32, i32, i32
  }
  func.func @transform_1(%arg0: i32) -> (i32, i32, i32) {
    %c0_i32 = arith.constant 0 : i32
    %c0_i32_0 = arith.constant 0 : i32
    %c0_i32_1 = arith.constant 0 : i32
    %c0_i32_2 = arith.constant 0 : i32
    return %c0_i32, %c0_i32_0, %c0_i32_1 : i32, i32, i32
  }
  func.func @transform_2(%arg0: i32) -> (i32, i32) {
    %c0_i32 = arith.constant 0 : i32
    %c0_i32_0 = arith.constant 0 : i32
    %c0_i32_1 = arith.constant 0 : i32
    return %c0_i32, %c0_i32_0 : i32, i32
  }
  func.func @transform_3(%arg0: i32) -> (i32, i32) {
    %c0_i32 = arith.constant 0 : i32
    %c0_i32_0 = arith.constant 0 : i32
    %c0_i32_1 = arith.constant 0 : i32
    return %c0_i32, %c0_i32_0 : i32, i32
  }
  func.func @transform_4(%arg0: i32) -> (i32, i32, i32) {
    %c0_i32 = arith.constant 0 : i32
    %c0_i32_0 = arith.constant 0 : i32
    %c0_i32_1 = arith.constant 0 : i32
    return %arg0, %c0_i32, %c0_i32_0 : i32, i32, i32
  }
}

module attributes {stable_mosaic.version = 11 : i64} {
  func.func @_conv_kernel(%arg0: i32, %arg1: memref<1x8x8x32xf32, #tpu.memory_space<vmem>>, %arg2: memref<1x32x8xbf16, #tpu.memory_space<vmem>>, %arg3: memref<1x8xf32, #tpu.memory_space<vmem>>, %arg4: memref<1x8xf32, #tpu.memory_space<vmem>>, %arg5: memref<1x64x8xf32, #tpu.memory_space<vmem>>) attributes {dimension_semantics = [#tpu.dimension_semantics<parallel>], iteration_bounds = array<i64: 2>, scalar_prefetch = 0 : i64, scratch_operands = 0 : i64, tpu.core_type = #tpu.core_type<tc>, window_params = [{transform_indices = @transform_0, window_bounds = array<i64: 1, 8, 8, 32>}, {pipeline_mode = #tpu.pipeline_mode<synchronous>, transform_indices = @transform_1, window_bounds = array<i64: 1, 32, 8>}, {pipeline_mode = #tpu.pipeline_mode<synchronous>, transform_indices = @transform_2, window_bounds = array<i64: 1, 8>}, {pipeline_mode = #tpu.pipeline_mode<synchronous>, transform_indices = @transform_3, window_bounds = array<i64: 1, 8>}, {transform_indices = @transform_4, window_bounds = array<i64: 1, 64, 8>}]} {
    %cst = arith.constant 0.000000e+00 : f32
    %0 = vector.broadcast %cst : f32 to vector<64x8xf32>
    %c0 = arith.constant 0 : index
    %c0_0 = arith.constant 0 : index
    %c0_1 = arith.constant 0 : index
    %c0_2 = arith.constant 0 : index
    %1 = vector.load %arg1[%c0, %c0_0, %c0_1, %c0_2] : memref<1x8x8x32xf32, #tpu.memory_space<vmem>>, vector<1x8x8x32xf32>
    %2 = vector.shape_cast %1 : vector<1x8x8x32xf32> to vector<8x8x32xf32>
    %3 = vector.shape_cast %2 : vector<8x8x32xf32> to vector<64x32xf32>
    %4 = arith.truncf %3 : vector<64x32xf32> to vector<64x32xbf16>
    %c0_3 = arith.constant 0 : index
    %c0_4 = arith.constant 0 : index
    %c0_5 = arith.constant 0 : index
    %5 = vector.load %arg2[%c0_3, %c0_4, %c0_5] : memref<1x32x8xbf16, #tpu.memory_space<vmem>>, vector<1x32x8xbf16>
    %6 = vector.shape_cast %5 : vector<1x32x8xbf16> to vector<32x8xbf16>
    %cst_6 = arith.constant dense<0.000000e+00> : vector<64x8xf32>
    %7 = tpu.matmul %4, %6, %cst_6 {dimension_numbers = #tpu.dot_dimension_numbers<[1], [0], [0], [1], [0, 0, 1, 1], [], []>} : vector<64x32xbf16>, vector<32x8xbf16>, vector<64x8xf32> -> vector<64x8xf32>
    %8 = arith.addf %0, %7 : vector<64x8xf32>
    %c0_7 = arith.constant 0 : index
    %c0_8 = arith.constant 0 : index
    %9 = vector.load %arg3[%c0_7, %c0_8] : memref<1x8xf32, #tpu.memory_space<vmem>>, vector<1x8xf32>
    %10 = vector.broadcast %9 : vector<1x8xf32> to vector<64x8xf32>
    %11 = arith.mulf %8, %10 : vector<64x8xf32>
    %c0_9 = arith.constant 0 : index
    %c0_10 = arith.constant 0 : index
    %12 = vector.load %arg4[%c0_9, %c0_10] : memref<1x8xf32, #tpu.memory_space<vmem>>, vector<1x8xf32>
    %13 = vector.broadcast %12 : vector<1x8xf32> to vector<64x8xf32>
    %14 = arith.addf %11, %13 : vector<64x8xf32>
    %c0_11 = arith.constant 0 : index
    %c0_12 = arith.constant 0 : index
    %c0_13 = arith.constant 0 : index
    %15 = vector.load %arg5[%c0_11, %c0_12, %c0_13] : memref<1x64x8xf32, #tpu.memory_space<vmem>>, vector<1x64x8xf32>
    %16 = vector.shape_cast %15 : vector<1x64x8xf32> to vector<64x8xf32>
    %17 = vector.shape_cast %14 : vector<64x8xf32> to vector<1x64x8xf32>
    tpu.vector_store %arg5[%c0_11, %c0_12, %c0_13], %17 {strides = array<i32>} : memref<1x64x8xf32, #tpu.memory_space<vmem>>, vector<1x64x8xf32>,
    return
  }
  func.func @transform_0(%arg0: i32) -> (i32, i32, i32, i32) {
    %c0_i32 = arith.constant 0 : i32
    %c0_i32_0 = arith.constant 0 : i32
    %c0_i32_1 = arith.constant 0 : i32
    %c0_i32_2 = arith.constant 0 : i32
    return %arg0, %c0_i32, %c0_i32_0, %c0_i32_1 : i32, i32, i32, i32
  }
  func.func @transform_1(%arg0: i32) -> (i32, i32, i32) {
    %c0_i32 = arith.constant 0 : i32
    %c0_i32_0 = arith.constant 0 : i32
    %c0_i32_1 = arith.constant 0 : i32
    %c0_i32_2 = arith.constant 0 : i32
    return %c0_i32, %c0_i32_0, %c0_i32_1 : i32, i32, i32
  }
  func.func @transform_2(%arg0: i32) -> (i32, i32) {
    %c0_i32 = arith.constant 0 : i32
    %c0_i32_0 = arith.constant 0 : i32
    %c0_i32_1 = arith.constant 0 : i32
    return %c0_i32, %c0_i32_0 : i32, i32
  }
  func.func @transform_3(%arg0: i32) -> (i32, i32) {
    %c0_i32 = arith.constant 0 : i32
    %c0_i32_0 = arith.constant 0 : i32
    %c0_i32_1 = arith.constant 0 : i32
    return %c0_i32, %c0_i32_0 : i32, i32
  }
  func.func @transform_4(%arg0: i32) -> (i32, i32, i32) {
    %c0_i32 = arith.constant 0 : i32
    %c0_i32_0 = arith.constant 0 : i32
    %c0_i32_1 = arith.constant 0 : i32
    return %arg0, %c0_i32, %c0_i32_0 : i32, i32, i32
  }
}

module attributes {stable_mosaic.version = 11 : i64} {
  func.func @_maxpool2x2_kernel(%arg0: i32, %arg1: memref<1x16x8x8xf32, #tpu.memory_space<vmem>>, %arg2: memref<1x16x8x8xf32, #tpu.memory_space<vmem>>, %arg3: memref<1x8x8x8xf32, #tpu.memory_space<vmem>>) attributes {dimension_semantics = [#tpu.dimension_semantics<parallel>], iteration_bounds = array<i64: 2>, scalar_prefetch = 0 : i64, scratch_operands = 0 : i64, tpu.core_type = #tpu.core_type<tc>, window_params = [{transform_indices = @transform_0, window_bounds = array<i64: 1, 16, 8, 8>}, {transform_indices = @transform_1, window_bounds = array<i64: 1, 16, 8, 8>}, {transform_indices = @transform_2, window_bounds = array<i64: 1, 8, 8, 8>}]} {
    %c0 = arith.constant 0 : index
    %c0_0 = arith.constant 0 : index
    %c0_1 = arith.constant 0 : index
    %c0_2 = arith.constant 0 : index
    %0 = vector.load %arg1[%c0, %c0_0, %c0_1, %c0_2] : memref<1x16x8x8xf32, #tpu.memory_space<vmem>>, vector<1x16x8x8xf32>
    %1 = vector.shape_cast %0 : vector<1x16x8x8xf32> to vector<16x8x8xf32>
    %2 = vector.shape_cast %1 : vector<16x8x8xf32> to vector<8x2x8x8xf32>
    %c0_3 = arith.constant 0 : index
    %c0_4 = arith.constant 0 : index
    %c0_5 = arith.constant 0 : index
    %c0_6 = arith.constant 0 : index
    %3 = vector.load %arg2[%c0_3, %c0_4, %c0_5, %c0_6] : memref<1x16x8x8xf32, #tpu.memory_space<vmem>>, vector<1x16x8x8xf32>
    %4 = vector.shape_cast %3 : vector<1x16x8x8xf32> to vector<16x8x8xf32>
    %5 = vector.shape_cast %4 : vector<16x8x8xf32> to vector<8x2x8x8xf32>
    %6 = vector.extract_strided_slice %2 {offsets = [0, 0, 0, 0], sizes = [8, 1, 8, 8], strides = [1, 1, 1, 1]} : vector<8x2x8x8xf32> to vector<8x1x8x8xf32>
    %7 = vector.shape_cast %6 : vector<8x1x8x8xf32> to vector<8x8x8xf32>
    %8 = vector.extract_strided_slice %2 {offsets = [0, 1, 0, 0], sizes = [8, 1, 8, 8], strides = [1, 1, 1, 1]} : vector<8x2x8x8xf32> to vector<8x1x8x8xf32>
    %9 = vector.shape_cast %8 : vector<8x1x8x8xf32> to vector<8x8x8xf32>
    %10 = arith.maximumf %7, %9 : vector<8x8x8xf32>
    %11 = vector.extract_strided_slice %5 {offsets = [0, 0, 0, 0], sizes = [8, 1, 8, 8], strides = [1, 1, 1, 1]} : vector<8x2x8x8xf32> to vector<8x1x8x8xf32>
    %12 = vector.shape_cast %11 : vector<8x1x8x8xf32> to vector<8x8x8xf32>
    %13 = vector.extract_strided_slice %5 {offsets = [0, 1, 0, 0], sizes = [8, 1, 8, 8], strides = [1, 1, 1, 1]} : vector<8x2x8x8xf32> to vector<8x1x8x8xf32>
    %14 = vector.shape_cast %13 : vector<8x1x8x8xf32> to vector<8x8x8xf32>
    %15 = arith.maximumf %12, %14 : vector<8x8x8xf32>
    %16 = arith.maximumf %10, %15 : vector<8x8x8xf32>
    %c0_7 = arith.constant 0 : index
    %c0_8 = arith.constant 0 : index
    %c0_9 = arith.constant 0 : index
    %c0_10 = arith.constant 0 : index
    %17 = vector.load %arg3[%c0_7, %c0_8, %c0_9, %c0_10] : memref<1x8x8x8xf32, #tpu.memory_space<vmem>>, vector<1x8x8x8xf32>
    %18 = vector.shape_cast %17 : vector<1x8x8x8xf32> to vector<8x8x8xf32>
    %19 = vector.shape_cast %16 : vector<8x8x8xf32> to vector<1x8x8x8xf32>
    tpu.vector_store %arg3[%c0_7, %c0_8, %c0_9, %c0_10], %19 {strides = array<i32>} : memref<1x8x8x8xf32, #tpu.memory_space<vmem>>, vector<1x8x8x8xf32>,
    return
  }
  func.func @transform_0(%arg0: i32) -> (i32, i32, i32, i32) {
    %c0_i32 = arith.constant 0 : i32
    %c0_i32_0 = arith.constant 0 : i32
    %c0_i32_1 = arith.constant 0 : i32
    %c0_i32_2 = arith.constant 0 : i32
    return %arg0, %c0_i32, %c0_i32_0, %c0_i32_1 : i32, i32, i32, i32
  }
  func.func @transform_1(%arg0: i32) -> (i32, i32, i32, i32) {
    %c0_i32 = arith.constant 0 : i32
    %c0_i32_0 = arith.constant 0 : i32
    %c0_i32_1 = arith.constant 0 : i32
    %c0_i32_2 = arith.constant 0 : i32
    return %arg0, %c0_i32, %c0_i32_0, %c0_i32_1 : i32, i32, i32, i32
  }
  func.func @transform_2(%arg0: i32) -> (i32, i32, i32, i32) {
    %c0_i32 = arith.constant 0 : i32
    %c0_i32_0 = arith.constant 0 : i32
    %c0_i32_1 = arith.constant 0 : i32
    %c0_i32_2 = arith.constant 0 : i32
    return %arg0, %c0_i32, %c0_i32_0, %c0_i32_1 : i32, i32, i32, i32
  }
}

</mosaic_0001>

<bundles_post_ra>
// kernel: darknet_forward.7
= control target key start
LH: loop header
LB: loop body
LE: loop exit
PB: predicated region body
PF: predicated region fallthrough
CT: control target
= control target key end

     0   :  { %s600_s18 = smov 0   ;;  %s686_s0 = inlined_call_operand.vmem [shape: f32[2,8,8,16], index: 0, kind: input, shape index: {}, may-alias: {0,4}]   ;;  %s687_s1 = inlined_call_operand.vmem [shape: bf16[1,16,16], index: 1, kind: input, shape index: {}]   ;;  %s688_s2 = inlined_call_operand.vmem [shape: f32[1,16], index: 2, kind: input, shape index: {}]   ;;  %s689_s3 = inlined_call_operand.vmem [shape: f32[1,16], index: 3, kind: input, shape index: {}]   ;;  %s690_s4 = inlined_call_operand.vmem [shape: f32[2,64,16], index: 4, kind: input, shape index: {}, may-alias: {0,4}]   ;;  %s691_s5 = inlined_call_operand.vmem [shape: f32[2,64,16], index: 5, kind: output, shape index: {}]  }
   0x1 LB: > { %s513_s19 = sadd.s32 4294967295, %s568_s18   ;;  %p517_p0 = scmp.ge.s32.totalorder %s568_s18, 1  ;;  %s568_s18 = sphi %s600_s18, %s15_s18  }
   0x2   : > { %p197_p1 = scmp.lt.s32.totalorder %s568_s18, 3 }
   0x4   : > { %p198_p2 = pnand %p517_p0, %p197_p1 }
   0x5   : > { %v561_v0 = vld [vmem:[%s687_s1] sm:$0xff] (!%p198_p2)   ;;  %p230_p3 = scmp.lt.s32.totalorder (!%p198_p2), %s513_s19, 1  ;;  %vm266_vm0 = vcmask (!%p198_p2), 130048  }
   0x6   : > { %201 = sbr.rel (%p198_p2) target bundleno = 259 (0x103), region = 40  ;;  %541 = vmatprep.subr.bf16.mxu0 (!%p198_p2), %v561_v0  ;;  %551 = vmatprep.subr.bf16.mxu1 (!%p198_p2), %v561_v0  ;;  %v624_v13 = vld [vmem:[%s688_s2] ss:$0 sm:$0xff] (!%p198_p2) }
   0x7   : > { %542 = vmatpush3.bf16.msra.mxu0 (!%p198_p2), %v561_v0  ;;  %552 = vmatpush3.bf16.msra.mxu1 (!%p198_p2), %v561_v0  ;;  %v629_v15 = vld [vmem:[%s689_s3] ss:$0 sm:$0xff] (!%p198_p2) }
   0xd   : > { %s693_s19 = smov (!%p230_p3, %s513_s19), 1 }
   0xe   : > { %s611_s22 = sshll.u32 %s693_s19, 6 }
   0xf   : > { %s234_s25 = scalar_lea.vmem %s686_s0, %s611_s22  ;;  %s636_s7 = scalar_lea.vmem %s690_s4, %s611_s22 }
  0x10   : > { %v246_v1 = vld [vmem:[%s234_s25] sm:$0xff]  ;;  %v247_v2 = vld [vmem:[%s234_s25 + $0x8] sm:$0xff]  ;;  %v248_v6 = vld [vmem:[%s234_s25 + $0x10] sm:$0xff]  ;;  %s659_s10 = scalar_lea.vmem %s691_s5, %s611_s22 }
  0x11   : > { %v250_v3 = vld [vmem:[%s234_s25 + $0x20] sm:$0xff]  ;;  %v254_v4 = vpack.c.bf16 %v247_v2, %v246_v1  ;;  %v251_v5 = vld [vmem:[%s234_s25 + $0x28] sm:$0xff]  ;;  %v249_v7 = vld [vmem:[%s234_s25 + $0x18] sm:$0xff] }
  0x12   : > { %v256_v8 = vpack.c.bf16 %v251_v5, %v250_v3  ;;  %v255_v9 = vpack.c.bf16 %v249_v7, %v248_v6  ;;  %v252_v10 = vld [vmem:[%s234_s25 + $0x30] sm:$0xff]  ;;  %v253_v11 = vld [vmem:[%s234_s25 + $0x38] sm:$0xff]  ;;  %v398_v36 = vld [vmem:[%s636_s7] sm:$0xff] }
  0x13   : > { %543 = vmatprep.mubr.msk.bf16.mxu0 %vm266_vm0, %v254_v4  ;;  %v257_v12 = vpack.c.bf16 %v253_v11, %v252_v10  ;;  %v400_v34 = vld [vmem:[%s636_s7 + $0x10] sm:$0xff]  ;;  %v402_v43 = vld [vmem:[%s636_s7 + $0x20] sm:$0xff]  ;;  %v401_v51 = vld [vmem:[%s636_s7 + $0x18] sm:$0xff] }
  0x14   : > { %547 = vmatprep.mubr.msk.bf16.mxu1 %vm266_vm0, %v256_v8  ;;  %544 = vmatmul.mubr.msk.bf16.vlgmr.msra.gmra.mrb[0].mxu0 %vm266_vm0, %v255_v9  ;;  %v404_v35 = vld [vmem:[%s636_s7 + $0x30] sm:$0xff]  ;;  %v405_v0 = vld [vmem:[%s636_s7 + $0x38] sm:$0xff]  ;;  %v399_v9 = vld [vmem:[%s636_s7 + $0x8] sm:$0xff] }
  0x15   : > { %548 = vmatmul.mubr.msk.bf16.vlgmr.msra.gmra.mrb[0].mxu1 %vm266_vm0, %v257_v12 }
  0xe7   : > { %v545_v14 = vpop.f32.mrb[0].mxu0 }
  0xe8   : > { %v353_v16 = vmul.f32 %v545_v14, %v624_v13  ;;  %v549_v17 = vpop.f32.mrb[0].mxu1  ;;  %v313_v18 = vpop.f32.mrb[1].mxu0 }
  0xe9   : > { %v357_v19 = vmul.f32 %v549_v17, %v624_v13  ;;  %v351_v20 = vmul.f32 %v624_v13, %v313_v18  ;;  %v329_v21 = vpop.f32.mrb[1].mxu1  ;;  %v546_v22 = vpop.f32.mrb[2].mxu0  ;;  %v403_v17 = vld [vmem:[%s636_s7 + $0x28] sm:$0xff] }
  0xea   : > { %v368_v23 = vadd.f32 %v629_v15, %v353_v16  ;;  %v355_v24 = vmul.f32 %v624_v13, %v329_v21  ;;  %v354_v25 = vmul.f32 %v546_v22, %v624_v13  ;;  %v550_v26 = vpop.f32.mrb[2].mxu1  ;;  %v316_v27 = vpop.f32.mrb[3].mxu0 }
  0xeb   : > { %v372_v28 = vadd.f32 %v629_v15, %v357_v19  ;;  %v366_v29 = vadd.f32 %v629_v15, %v351_v20  ;;  %v358_v30 = vmul.f32 %v550_v26, %v624_v13  ;;  %v352_v31 = vmul.f32 %v624_v13, %v316_v27  ;;  %v332_v32 = vpop.f32.mrb[3].mxu1 }
  0xec   : > { %vm376_vm1 = vcmp.gt.f32.partialorder %v368_v23, 0.0  ;;  %v384_v33 = vmul.f32 0.1, %v368_v23  ;;  %v370_v37 = vadd.f32 %v629_v15, %v355_v24  ;;  %v369_v38 = vadd.f32 %v629_v15, %v354_v25 }
  0xed   : > { %vm380_vm2 = vcmp.gt.f32.partialorder %v372_v28, 0.0  ;;  %v388_v39 = vmul.f32 0.1, %v372_v28  ;;  %vm374_vm3 = vcmp.gt.f32.partialorder %v366_v29, 0.0  ;;  %v382_v40 = vmul.f32 0.1, %v366_v29 }
  0xee   : > { %v392_v41 = vsel %vm376_vm1, %v368_v23, %v384_v33  ;;  %vm378_vm4 = vcmp.gt.f32.partialorder %v370_v37, 0.0  ;;  %v386_v42 = vmul.f32 0.1, %v370_v37  ;;  %vm377_vm5 = vcmp.gt.f32.partialorder %v369_v38, 0.0 }
  0xef   : > { %v408_v44 = vadd.f32 %v400_v34, %v392_v41  ;;  %v396_v45 = vsel %vm380_vm2, %v372_v28, %v388_v39  ;;  %v390_v46 = vsel %vm374_vm3, %v366_v29, %v382_v40  ;;  %v385_v47 = vmul.f32 0.1, %v369_v38 }
  0xf0   : > { %v412_v48 = vadd.f32 %v404_v35, %v396_v45  ;;  %v406_v49 = vadd.f32 %v398_v36, %v390_v46  ;;  %v394_v50 = vsel %vm378_vm4, %v370_v37, %v386_v42  ;;  %v373_v52 = vadd.f32 %v629_v15, %v358_v30 }
  0xf1   : > { %vm416_vm6 = vcmp.gt.f32.partialorder %v408_v44, 0.0  ;;  %v424_v53 = vmul.f32 0.1, %v408_v44  ;;  %v410_v54 = vadd.f32 %v402_v43, %v394_v50  ;;  %v393_v55 = vsel %vm377_vm5, %v369_v38, %v385_v47 }
  0xf2   : > { %vm420_vm7 = vcmp.gt.f32.partialorder %v412_v48, 0.0  ;;  %v428_v56 = vmul.f32 0.1, %v412_v48  ;;  %vm414_vm8 = vcmp.gt.f32.partialorder %v406_v49, 0.0  ;;  %v422_v57 = vmul.f32 0.1, %v406_v49 }
  0xf3   : > { %v432_v58 = vsel %vm416_vm6, %v408_v44, %v424_v53  ;;  %vm418_vm9 = vcmp.gt.f32.partialorder %v410_v54, 0.0  ;;  %v426_v59 = vmul.f32 0.1, %v410_v54  ;;  %v409_v60 = vadd.f32 %v401_v51, %v393_v55 }
  0xf4   : > { %440 = vst.msk [vmem:[%s659_s10 + $0x10] sm:$0xff] %vm266_vm0, %v432_v58  ;;  %v436_v61 = vsel %vm420_vm7, %v412_v48, %v428_v56  ;;  %v430_v62 = vsel %vm414_vm8, %v406_v49, %v422_v57  ;;  %vm381_vm10 = vcmp.gt.f32.partialorder %v373_v52, 0.0  ;;  %v389_v63 = vmul.f32 0.1, %v373_v52 }
  0xf5   : > { %444 = vst.msk [vmem:[%s659_s10 + $0x30] sm:$0xff] %vm266_vm0, %v436_v61  ;;  %438 = vst.msk [vmem:[%s659_s10] sm:$0xff] %vm266_vm0, %v430_v62  ;;  %v434_v1 = vsel %vm418_vm9, %v410_v54, %v426_v59  ;;  %vm417_vm11 = vcmp.gt.f32.partialorder %v409_v60, 0.0  ;;  %v425_v2 = vmul.f32 0.1, %v409_v60  ;;  %v367_v3 = vadd.f32 %v629_v15, %v352_v31 }
  0xf6   : > { %442 = vst.msk [vmem:[%s659_s10 + $0x20] sm:$0xff] %vm266_vm0, %v434_v1  ;;  %v397_v4 = vsel %vm381_vm10, %v373_v52, %v389_v63  ;;  %v356_v5 = vmul.f32 %v624_v13, %v332_v32 }
  0xf7   : > { %v433_v6 = vsel %vm417_vm11, %v409_v60, %v425_v2  ;;  %v413_v7 = vadd.f32 %v405_v0, %v397_v4  ;;  %vm375_vm12 = vcmp.gt.f32.partialorder %v367_v3, 0.0  ;;  %v383_v8 = vmul.f32 0.1, %v367_v3 }
  0xf8   : > { %441 = vst.msk [vmem:[%s659_s10 + $0x18] sm:$0xff] %vm266_vm0, %v433_v6  ;;  %v371_v10 = vadd.f32 %v629_v15, %v356_v5 }
  0xf9   : > { %vm421_vm13 = vcmp.gt.f32.partialorder %v413_v7, 0.0  ;;  %v429_v11 = vmul.f32 0.1, %v413_v7  ;;  %v391_v12 = vsel %vm375_vm12, %v367_v3, %v383_v8 }
  0xfa   : > { %v407_v14 = vadd.f32 %v399_v9, %v391_v12  ;;  %vm379_vm14 = vcmp.gt.f32.partialorder %v371_v10, 0.0  ;;  %v387_v16 = vmul.f32 0.1, %v371_v10 }
  0xfb   : > { %v437_v13 = vsel %vm421_vm13, %v413_v7, %v429_v11 }
  0xfc   : > { %445 = vst.msk [vmem:[%s659_s10 + $0x38] sm:$0xff] %vm266_vm0, %v437_v13  ;;  %vm415_vm15 = vcmp.gt.f32.partialorder %v407_v14, 0.0  ;;  %v423_v18 = vmul.f32 0.1, %v407_v14  ;;  %v395_v19 = vsel %vm379_vm14, %v371_v10, %v387_v16 }
  0xfd   : > { %v411_v20 = vadd.f32 %v403_v17, %v395_v19 }
  0xfe   : > { %v431_v21 = vsel %vm415_vm15, %v407_v14, %v423_v18 }
  0xff   : > { %439 = vst.msk [vmem:[%s659_s10 + $0x8] sm:$0xff] %vm266_vm0, %v431_v21  ;;  %vm419_vm1 = vcmp.gt.f32.partialorder %v411_v20, 0.0  ;;  %v427_v15 = vmul.f32 0.1, %v411_v20 }
 0x101   : > { %v435_v22 = vsel %vm419_vm1, %v411_v20, %v427_v15 }
 0x102   : > { %443 = vst.msk [vmem:[%s659_s10 + $0x28] sm:$0xff] %vm266_vm0, %v435_v22 }
 0x103 PF: > { %s15_s18 = sadd.s32 1, %s568_s18  }
 0x104   : > { %p12_p4 = scmp.ge.s32.totalorder %s15_s18, 4  }
 0x106   :  { %14 = sbr.rel (!%p12_p4) target bundleno = 1 (0x1), region = 73 }

// kernel: darknet_forward.6
= control target key start
LH: loop header
LB: loop body
LE: loop exit
PB: predicated region body
PF: predicated region fallthrough
CT: control target
= control target key end

     0   :  { %s1597_s15 = smov 0   ;;  %s1819_s0 = inlined_call_operand.vmem [shape: f32[8,9,9,8], index: 0, kind: input, shape index: {}]   ;;  %s1820_s1 = inlined_call_operand.vmem [shape: bf16[9,8,16], index: 1, kind: input, shape index: {}]   ;;  %s1821_s2 = inlined_call_operand.vmem [shape: f32[1,16], index: 2, kind: input, shape index: {}]   ;;  %s1822_s3 = inlined_call_operand.vmem [shape: f32[1,16], index: 3, kind: input, shape index: {}]   ;;  %s1823_s4 = inlined_call_operand.vmem [shape: f32[2,64,16], index: 4, kind: output, shape index: {}]  }
   0x1 LB: > { %s1603_s16 = sadd.s32 4294967295, %s1570_s15   ;;  %p1234_p0 = scmp.ge.s32.totalorder %s1570_s15, 1  ;;  %s1570_s15 = sphi %s1597_s15, %s14_s15  }
   0x2   : > { %p164_p1 = scmp.lt.s32.totalorder %s1570_s15, 3 }
   0x4   : > { %p165_p2 = pnand %p1234_p0, %p164_p1 }
   0x5   : > { %v1247_v0 = vld [vmem:[%s1820_s1 + $0x4] sm:$0xf] (!%p165_p2)  ;;  %vm245_vm0 = vcmask (!%p165_p2), 1043456   ;;  %v1613_v1 = vld [vmem:[%s1820_s1 + $0x10] sm:$0xf] (!%p165_p2)  ;;  %s1235_s21 = sshll.u32 (!%p165_p2), %s1603_s16, 2 }
   0x6   : > { %168 = sbr.rel (%p165_p2) target bundleno = 316 (0x13c), region = 36  ;;  %1545 = vmatprep.subr.msk.bf16.mxu1 (!%p165_p2), %vm245_vm0, %v1247_v0  ;;  %1549 = vmatprep.subr.msk.bf16.mxu0 (!%p165_p2), %vm245_vm0, %v1613_v1  ;;  %v247_v2 = vsel (!%p165_p2), %vm245_vm0, %v1247_v0, 0  ;;  %v1622_v3 = vsel (!%p165_p2), %vm245_vm0, %v1613_v1, 0  ;;  %p192_p3 = scmp.lt.s32.totalorder (!%p165_p2), %s1235_s21, 7  ;;  %v216_v4 = vld [vmem:[%s1820_s1] sm:$0xf] (!%p165_p2) }
   0x7   : > { %1390 = vmatpush3.bf16.msra.mxu1 (!%p165_p2), %v247_v2  ;;  %1430 = vmatpush3.bf16.msra.mxu0 (!%p165_p2), %v1622_v3  ;;  %v1295_v5 = vld [vmem:[%s1820_s1 + $0x14] sm:$0xf] (!%p165_p2)  ;;  %vm232_vm1 = vcmask (!%p165_p2), 64512   ;;  %v327_v15 = vsel (!%p165_p2), %vm245_vm0, %v216_v4, 0  ;;  %v1308_v25 = vld [vmem:[%s1820_s1 + $0x18] sm:$0xf] (!%p165_p2) }
   0x8   : > { %1546 = vmatprep.subr.msk.bf16.mxu1 (!%p165_p2), %vm245_vm0, %v216_v4  ;;  %1551 = vmatprep.subr.msk.bf16.mxu0 (!%p165_p2), %vm245_vm0, %v1295_v5  ;;  %v729_v20 = vsel (!%p165_p2), %vm245_vm0, %v1295_v5, 0  ;;  %v1256_v29 = vld [vmem:[%s1820_s1 + $0x8] sm:$0xf] (!%p165_p2)  ;;  %v832_v44 = vsel (!%p165_p2), %vm245_vm0, %v1308_v25, 0  ;;  %v1321_v46 = vld [vmem:[%s1820_s1 + $0x1c] sm:$0xf] (!%p165_p2) }
   0x9   : > { %v421_v48 = vsel (!%p165_p2), %vm245_vm0, %v1256_v29, 0  ;;  %v1269_v51 = vld [vmem:[%s1820_s1 + $0xc] sm:$0xf] (!%p165_p2)  ;;  %v935_v4 = vsel (!%p165_p2), %vm245_vm0, %v1321_v46, 0  ;;  %p198_p4 = scmp.lt.s32.totalorder (!%p165_p2), %s1603_s16, 1  ;;  %vm1166_vm3 = vcmask (!%p165_p2), 130048  }
   0xd   : > { %s1825_s21 = smov (!%p192_p3, %s1235_s21), 7  ;;  %s1827_s16 = smov (!%p198_p4, %s1603_s16), 1 }
   0xe   : > { %s1555_s26 = smul.u32 144, %s1825_s21  ;;  %s1343_s20 = sshll.u32 %s1827_s16, 6 }
   0xf   : > { %s1798_s23 = scalar_lea.vmem %s1823_s4, %s1343_s20 }
  0x10   : > { %s1636_s29 = scalar_lea.vmem %s1819_s0, %s1555_s26 }
  0x11   : > { %v1239_v6 = vld [vmem:[%s1636_s29 + $0x90] sm:$0xff]  ;;  %v1640_v7 = vld [vmem:[%s1636_s29 + $0xa0] sm:$0xff] }
  0x12   : > { %v1274_v8 = vld [vmem:[%s1636_s29 + $0x1b0] sm:$0xff]  ;;  %v226_v9 = vpack.c.bf16 %v1640_v7, %v1239_v6  ;;  %v1275_v10 = vld [vmem:[%s1636_s29 + $0x1c0] sm:$0xff] }
  0x13   : > { %v1646_v11 = vld [vmem:[%s1636_s29 + $0xb0] sm:$0xff]  ;;  %v1649_v12 = vld [vmem:[%s1636_s29 + $0xc0] sm:$0xff]  ;;  %v608_v13 = vpack.c.bf16 %v1275_v10, %v1274_v8 }
  0x14   : > { %v227_v14 = vpack.c.bf16 %v1649_v12, %v1646_v11  ;;  %v1276_v16 = vld [vmem:[%s1636_s29 + $0x1d0] sm:$0xff]  ;;  %v1277_v17 = vld [vmem:[%s1636_s29 + $0x1e0] sm:$0xff]  ;;  %1391 = vmatprep.mubr.msk.bf16.mxu1 %vm232_vm1, %v226_v9  ;;  %v524_v9 = vsel %vm245_vm0, %v1269_v51, 0 }
  0x15   : > { %v1657_v18 = vld [vmem:[%s1636_s29 + $0xd0] sm:$0xff]  ;;  %v609_v19 = vpack.c.bf16 %v1277_v17, %v1276_v16  ;;  %v1662_v21 = vld [vmem:[%s1636_s29 + $0xe0] sm:$0xff]  ;;  %1431 = vmatprep.mubr.msk.bf16.mxu0 %vm232_vm1, %v608_v13  ;;  %v916_v16 = vpack.c.bf16 %v1646_v11, %v1640_v7 }
  0x16   : > { %1392 = vmatmul.mubr.msk.bf16.vlgmr.msra.gmra.mrb[0].mxu1 %vm232_vm1, %v227_v14  ;;  %v228_v22 = vpack.c.bf16 %v1662_v21, %v1657_v18  ;;  %v1287_v23 = vld [vmem:[%s1636_s29 + $0x121] sm:$0xff]  ;;  %v1288_v24 = vld [vmem:[%s1636_s29 + $0x131] sm:$0xff] }
  0x17   : > { %1400 = vmatpush3.bf16.msra.mxu1 %v327_v15  ;;  %1432 = vmatmul.mubr.msk.bf16.vlgmr.msra.gmra.mrb[0].mxu0 %vm232_vm1, %v609_v19  ;;  %v1675_v26 = vld [vmem:[%s1636_s29 + $0xf0] sm:$0xff]  ;;  %v1678_v27 = vld [vmem:[%s1636_s29 + $0x100] sm:$0xff]  ;;  %v710_v28 = vpack.c.bf16 %v1288_v24, %v1287_v23  ;;  %v917_v23 = vpack.c.bf16 %v1657_v18, %v1649_v12 }
  0x18   : > { %1440 = vmatpush3.bf16.msra.mxu0 %v729_v20  ;;  %1395 = vmatprep.mubr.msk.bf16.mxu1 %vm232_vm1, %v228_v22  ;;  %v204_v30 = vld [vmem:[%s1636_s29] sm:$0xff]  ;;  %v205_v31 = vld [vmem:[%s1636_s29 + $0x10] sm:$0xff]  ;;  %v229_v32 = vpack.c.bf16 %v1678_v27, %v1675_v26 }
  0x19   : > { %1441 = vmatprep.mubr.msk.bf16.mxu0 %vm232_vm1, %v710_v28  ;;  %1552 = vmatprep.subr.msk.bf16.mxu0 %vm245_vm0, %v1308_v25  ;;  %v212_v33 = vpack.c.bf16 %v205_v31, %v204_v30  ;;  %v1289_v34 = vld [vmem:[%s1636_s29 + $0x141] sm:$0xff]  ;;  %v1290_v35 = vld [vmem:[%s1636_s29 + $0x151] sm:$0xff] }
  0x1a   : > { %1547 = vmatprep.subr.msk.bf16.mxu1 %vm245_vm0, %v1256_v29  ;;  %v1291_v36 = vld [vmem:[%s1636_s29 + $0x161] sm:$0xff]  ;;  %v1292_v37 = vld [vmem:[%s1636_s29 + $0x171] sm:$0xff]  ;;  %v711_v38 = vpack.c.bf16 %v1290_v35, %v1289_v34 }
  0x1b   : > { %v206_v39 = vld [vmem:[%s1636_s29 + $0x20] sm:$0xff]  ;;  %v207_v40 = vld [vmem:[%s1636_s29 + $0x30] sm:$0xff]  ;;  %v712_v41 = vpack.c.bf16 %v1292_v37, %v1291_v36 }
  0x1c   : > { %v208_v42 = vld [vmem:[%s1636_s29 + $0x40] sm:$0xff]  ;;  %v209_v43 = vld [vmem:[%s1636_s29 + $0x50] sm:$0xff]  ;;  %v213_v45 = vpack.c.bf16 %v207_v40, %v206_v39  ;;  %v813_v55 = vpack.c.bf16 %v206_v39, %v205_v31 }
  0x1d   : > { %v214_v47 = vpack.c.bf16 %v209_v43, %v208_v42  ;;  %v1293_v49 = vld [vmem:[%s1636_s29 + $0x181] sm:$0xff]  ;;  %v1294_v50 = vld [vmem:[%s1636_s29 + $0x191] sm:$0xff]  ;;  %v814_v60 = vpack.c.bf16 %v208_v42, %v207_v40 }
  0x1e   : > { %1396 = vmatmul.mubr.msk.bf16.gmra.mrb[4].mxu1 %vm232_vm1, %v229_v32  ;;  %v713_v52 = vpack.c.bf16 %v1294_v50, %v1293_v49  ;;  %v210_v53 = vld [vmem:[%s1636_s29 + $0x60] sm:$0xff]  ;;  %v211_v54 = vld [vmem:[%s1636_s29 + $0x70] sm:$0xff] }
  0x1f   : > { %1401 = vmatprep.mubr.msk.bf16.mxu1 %vm232_vm1, %v212_v33  ;;  %v394_v56 = vld [vmem:[%s1636_s29 + $0x1] sm:$0xff]  ;;  %v1720_v57 = vld [vmem:[%s1636_s29 + $0x11] sm:$0xff]  ;;  %v215_v58 = vpack.c.bf16 %v211_v54, %v210_v53  ;;  %v815_v63 = vpack.c.bf16 %v210_v53, %v209_v43  ;;  %v1340_v49 = vld [vmem:[%s1822_s3] ss:$0 sm:$0xff] }
  0x20   : > { %v402_v59 = vpack.c.bf16 %v1720_v57, %v394_v56  ;;  %v396_v61 = vld [vmem:[%s1636_s29 + $0x21] sm:$0xff]  ;;  %v397_v62 = vld [vmem:[%s1636_s29 + $0x31] sm:$0xff] }
  0x21   : > { %v398_v0 = vld [vmem:[%s1636_s29 + $0x41] sm:$0xff]  ;;  %v399_v2 = vld [vmem:[%s1636_s29 + $0x51] sm:$0xff]  ;;  %v403_v5 = vpack.c.bf16 %v397_v62, %v396_v61  ;;  %v1018_v31 = vpack.c.bf16 %v396_v61, %v1720_v57 }
  0x22   : > { %v1334_v6 = vld [vmem:[%s1820_s1 + $0x20] sm:$0xf]  ;;  %v404_v8 = vpack.c.bf16 %v399_v2, %v398_v0  ;;  %v401_v15 = vld [vmem:[%s1636_s29 + $0x71] sm:$0xff] }
  0x23   : > { %1442 = vmatmul.mubr.msk.bf16.vlgmr.msra.gmra.mrb[0].mxu0 %vm232_vm1, %v711_v38  ;;  %v1307_v10 = vld [vmem:[%s1636_s29 + $0x80] sm:$0xff]  ;;  %v1262_v19 = vld [vmem:[%s1636_s29 + $0x130] sm:$0xff]  ;;  %v1037_v28 = vsel %vm245_vm0, %v1334_v6, 0 }
  0x24   : > { %1450 = vmatpush3.bf16.msra.mxu0 %v832_v44  ;;  %1445 = vmatprep.mubr.msk.bf16.mxu0 %vm232_vm1, %v712_v41  ;;  %v816_v13 = vpack.c.bf16 %v1307_v10, %v211_v54  ;;  %v400_v14 = vld [vmem:[%s1636_s29 + $0x61] sm:$0xff]  ;;  %v1264_v11 = vld [vmem:[%s1636_s29 + $0x150] sm:$0xff] }
  0x25   : > { %1553 = vmatprep.subr.msk.bf16.mxu0 %vm245_vm0, %v1321_v46  ;;  %v1261_v17 = vld [vmem:[%s1636_s29 + $0x120] sm:$0xff]  ;;  %v405_v20 = vpack.c.bf16 %v401_v15, %v400_v14  ;;  %v1266_v25 = vld [vmem:[%s1636_s29 + $0x170] sm:$0xff] }
  0x26   : > { %1402 = vmatmul.mubr.msk.bf16.vlgmr.msra.gmra.mrb[0].mxu1 %vm232_vm1, %v213_v45  ;;  %v505_v22 = vpack.c.bf16 %v1262_v19, %v1261_v17  ;;  %v1263_v7 = vld [vmem:[%s1636_s29 + $0x140] sm:$0xff]  ;;  %v1320_v12 = vld [vmem:[%s1636_s29 + $0x110] sm:$0xff] }
  0x27   : > { %1410 = vmatpush3.bf16.msra.mxu1 %v421_v48  ;;  %1405 = vmatprep.mubr.msk.bf16.mxu1 %vm232_vm1, %v214_v47  ;;  %v1265_v24 = vld [vmem:[%s1636_s29 + $0x160] sm:$0xff]  ;;  %v506_v29 = vpack.c.bf16 %v1264_v11, %v1263_v7  ;;  %v919_v18 = vpack.c.bf16 %v1320_v12, %v1678_v27  ;;  %v1278_v32 = vld [vmem:[%s1636_s29 + $0x1f0] sm:$0xff]  ;;  %v1020_v27 = vpack.c.bf16 %v400_v14, %v399_v2 }
  0x28   : > { %1548 = vmatprep.subr.msk.bf16.mxu1 %vm245_vm0, %v1269_v51  ;;  %v507_v30 = vpack.c.bf16 %v1266_v25, %v1265_v24  ;;  %v1279_v33 = vld [vmem:[%s1636_s29 + $0x200] sm:$0xff]  ;;  %v1280_v36 = vld [vmem:[%s1636_s29 + $0x210] sm:$0xff] }
  0x29   : > { %v610_v35 = vpack.c.bf16 %v1279_v33, %v1278_v32  ;;  %v1281_v37 = vld [vmem:[%s1636_s29 + $0x220] sm:$0xff] }
  0x2a   : > { %v1333_v38 = vld [vmem:[%s1636_s29 + $0x81] sm:$0xff]  ;;  %v611_v39 = vpack.c.bf16 %v1281_v37, %v1280_v36  ;;  %v1339_v46 = vld [vmem:[%s1821_s2] ss:$0 sm:$0xff] }
  0x2b   : > { %1446 = vmatmul.mubr.msk.bf16.gmra.mrb[4].mxu0 %vm232_vm1, %v713_v52  ;;  %v1021_v40 = vpack.c.bf16 %v1333_v38, %v401_v15 }
  0x2c   : > { %1451 = vmatprep.mubr.msk.bf16.mxu0 %vm232_vm1, %v813_v55 }
  0x2e   : > { %1406 = vmatmul.mubr.msk.bf16.gmra.mrb[4].mxu1 %vm232_vm1, %v215_v58 }
  0x2f   : > { %1411 = vmatprep.mubr.msk.bf16.mxu1 %vm232_vm1, %v402_v59 }
  0x33   : > { %1452 = vmatmul.mubr.msk.bf16.vlgmr.msra.gmra.mrb[0].mxu0 %vm232_vm1, %v814_v60 }
  0x34   : > { %1460 = vmatpush3.bf16.msra.mxu0 %v935_v4  ;;  %1455 = vmatprep.mubr.msk.bf16.mxu0 %vm232_vm1, %v815_v63 }
  0x35   : > { %1554 = vmatprep.subr.msk.bf16.mxu0 %vm245_vm0, %v1334_v6 }
  0x36   : > { %1412 = vmatmul.mubr.msk.bf16.vlgmr.msra.gmra.mrb[0].mxu1 %vm232_vm1, %v403_v5 }
  0x37   : > { %1420 = vmatpush3.bf16.msra.mxu1 %v524_v9  ;;  %1415 = vmatprep.mubr.msk.bf16.mxu1 %vm232_vm1, %v404_v8 }
  0x38   : > { %1550 = vmatprep.subr.msk.bf16.mxu1 %vm245_vm0, %v1613_v1  ;;  %v918_v1 = vpack.c.bf16 %v1675_v26, %v1662_v21  ;;  %v1267_v21 = vld [vmem:[%s1636_s29 + $0x180] sm:$0xff]  ;;  %v1268_v26 = vld [vmem:[%s1636_s29 + $0x190] sm:$0xff] }
  0x39   : > { %v508_v34 = vpack.c.bf16 %v1268_v26, %v1267_v21 }
  0x3b   : > { %1456 = vmatmul.mubr.msk.bf16.gmra.mrb[4].mxu0 %vm232_vm1, %v816_v13 }
  0x3c   : > { %1461 = vmatprep.mubr.msk.bf16.mxu0 %vm232_vm1, %v916_v16 }
  0x3e   : > { %1416 = vmatmul.mubr.msk.bf16.gmra.mrb[4].mxu1 %vm232_vm1, %v405_v20 }
  0x3f   : > { %1421 = vmatprep.mubr.msk.bf16.mxu1 %vm232_vm1, %v505_v22 }
  0x43   : > { %1462 = vmatmul.mubr.msk.bf16.vlgmr.msra.gmra.mrb[0].mxu0 %vm232_vm1, %v917_v23 }
  0x44   : > { %1470 = vmatpush3.bf16.msra.mxu0 %v1037_v28  ;;  %1465 = vmatprep.mubr.msk.bf16.mxu0 %vm232_vm1, %v918_v1 }
  0x46   : > { %1422 = vmatmul.mubr.msk.bf16.vlgmr.msra.gmra.mrb[0].mxu1 %vm232_vm1, %v506_v29 }
  0x47   : > { %1480 = vmatpush3.bf16.msra.mxu1 %v1622_v3  ;;  %1425 = vmatprep.mubr.msk.bf16.mxu1 %vm232_vm1, %v507_v30  ;;  %v1019_v3 = vpack.c.bf16 %v398_v0, %v397_v62 }
  0x4b   : > { %1466 = vmatmul.mubr.msk.bf16.gmra.mrb[4].mxu0 %vm232_vm1, %v919_v18 }
  0x4c   : > { %1471 = vmatprep.mubr.msk.bf16.mxu0 %vm232_vm1, %v1018_v31 }
  0x4e   : > { %1426 = vmatmul.mubr.msk.bf16.gmra.mrb[4].mxu1 %vm232_vm1, %v508_v34 }
  0x4f   : > { %1435 = vmatprep.mubr.msk.bf16.mxu1 %vm232_vm1, %v610_v35 }
  0x53   : > { %1472 = vmatmul.mubr.msk.bf16.vlgmr.msra.gmra.mrb[0].mxu0 %vm232_vm1, %v1019_v3 }
  0x54   : > { %1475 = vmatprep.mubr.msk.bf16.mxu0 %vm232_vm1, %v1020_v27 }
  0x5a   : > { %1436 = vmatmul.mubr.msk.bf16.vlgmr.msra.gmra.mrb[4].mxu1 %vm232_vm1, %v611_v39 }
  0x5b   : > { %1476 = vmatmul.mubr.msk.bf16.gmra.mrb[4].mxu0 %vm232_vm1, %v1021_v40 }
 0x119   : > { %v1423_v41 = vpop.f32.mrb[0].mxu1 }
 0x11a   : > { %v560_v42 = vpop.f32.mrb[1].mxu1 }
 0x11b   : > { %v1424_v43 = vpop.f32.mrb[2].mxu1 }
 0x11c   : > { %v563_v44 = vpop.f32.mrb[3].mxu1 }
 0x126   : > { %v1473_v45 = vpop.f32.mrb[0].mxu0 }
 0x127   : > { %v1481_v47 = vadd.f32 %v1473_v45, %v1423_v41  ;;  %v1073_v48 = vpop.f32.mrb[1].mxu0 }
 0x128   : > { %v1482_v50 = vadd.f32 %v1073_v48, %v560_v42  ;;  %v1474_v51 = vpop.f32.mrb[2].mxu0 }
 0x129   : > { %v1121_v52 = vmul.f32 %v1481_v47, %v1339_v46  ;;  %v1483_v53 = vadd.f32 %v1474_v51, %v1424_v43  ;;  %v1076_v54 = vpop.f32.mrb[3].mxu0 }
 0x12a   : > { %v1119_v55 = vmul.f32 %v1482_v50, %v1339_v46  ;;  %v1484_v56 = vadd.f32 %v1076_v54, %v563_v44 }
 0x12b   : > { %v1136_v57 = vadd.f32 %v1340_v49, %v1121_v52  ;;  %v1122_v58 = vmul.f32 %v1483_v53, %v1339_v46 }
 0x12c   : > { %v1134_v59 = vadd.f32 %v1340_v49, %v1119_v55  ;;  %v1120_v60 = vmul.f32 %v1484_v56, %v1339_v46 }
 0x12d   : > { %vm1144_vm2 = vcmp.gt.f32.partialorder %v1136_v57, 0.0  ;;  %v1152_v61 = vmul.f32 0.1, %v1136_v57  ;;  %v1137_v62 = vadd.f32 %v1340_v49, %v1122_v58  ;;  %v1437_v63 = vpop.f32.mrb[4].mxu1 }
 0x12e   : > { %vm1142_vm4 = vcmp.gt.f32.partialorder %v1134_v59, 0.0  ;;  %v1150_v0 = vmul.f32 0.1, %v1134_v59  ;;  %v1135_v2 = vadd.f32 %v1340_v49, %v1120_v60  ;;  %v1477_v4 = vpop.f32.mrb[4].mxu0  ;;  %v679_v5 = vpop.f32.mrb[5].mxu1 }
 0x12f   : > { %v1160_v6 = vsel %vm1144_vm2, %v1136_v57, %v1152_v61  ;;  %vm1145_vm5 = vcmp.gt.f32.partialorder %v1137_v62, 0.0  ;;  %v1153_v8 = vmul.f32 0.1, %v1137_v62  ;;  %v1485_v9 = vadd.f32 %v1477_v4, %v1437_v63  ;;  %v1089_v10 = vpop.f32.mrb[5].mxu0  ;;  %v1438_v13 = vpop.f32.mrb[6].mxu1 }
 0x130   : > { %1169 = vst.msk [vmem:[%s1798_s23 + $0x10] sm:$0xff] %vm1166_vm3, %v1160_v6  ;;  %v1158_v14 = vsel %vm1142_vm4, %v1134_v59, %v1150_v0  ;;  %vm1143_vm6 = vcmp.gt.f32.partialorder %v1135_v2, 0.0  ;;  %v1151_v15 = vmul.f32 0.1, %v1135_v2  ;;  %v1486_v16 = vadd.f32 %v1089_v10, %v679_v5  ;;  %v1478_v17 = vpop.f32.mrb[6].mxu0  ;;  %v682_v19 = vpop.f32.mrb[7].mxu1 }
 0x131   : > { %1167 = vst.msk [vmem:[%s1798_s23] sm:$0xff] %vm1166_vm3, %v1158_v14  ;;  %v1161_v20 = vsel %vm1145_vm5, %v1137_v62, %v1153_v8  ;;  %v1125_v22 = vmul.f32 %v1485_v9, %v1339_v46  ;;  %v1487_v23 = vadd.f32 %v1478_v17, %v1438_v13  ;;  %v1092_v7 = vpop.f32.mrb[7].mxu0 }
 0x132   : > { %1170 = vst.msk [vmem:[%s1798_s23 + $0x18] sm:$0xff] %vm1166_vm3, %v1161_v20  ;;  %v1159_v11 = vsel %vm1143_vm6, %v1135_v2, %v1151_v15  ;;  %v1123_v1 = vmul.f32 %v1486_v16, %v1339_v46  ;;  %v1488_v24 = vadd.f32 %v1092_v7, %v682_v19 }
 0x133   : > { %1168 = vst.msk [vmem:[%s1798_s23 + $0x8] sm:$0xff] %vm1166_vm3, %v1159_v11  ;;  %v1140_v25 = vadd.f32 %v1340_v49, %v1125_v22  ;;  %v1126_v28 = vmul.f32 %v1487_v23, %v1339_v46 }
 0x134   : > { %v1138_v29 = vadd.f32 %v1340_v49, %v1123_v1  ;;  %v1124_v30 = vmul.f32 %v1488_v24, %v1339_v46 }
 0x135   : > { %vm1148_vm7 = vcmp.gt.f32.partialorder %v1140_v25, 0.0  ;;  %v1156_v12 = vmul.f32 0.1, %v1140_v25  ;;  %v1141_v18 = vadd.f32 %v1340_v49, %v1126_v28 }
 0x136   : > { %vm1146_vm8 = vcmp.gt.f32.partialorder %v1138_v29, 0.0  ;;  %v1154_v21 = vmul.f32 0.1, %v1138_v29  ;;  %v1139_v26 = vadd.f32 %v1340_v49, %v1124_v30 }
 0x137   : > { %v1164_v31 = vsel %vm1148_vm7, %v1140_v25, %v1156_v12  ;;  %vm1149_vm9 = vcmp.gt.f32.partialorder %v1141_v18, 0.0  ;;  %v1157_v32 = vmul.f32 0.1, %v1141_v18 }
 0x138   : > { %1173 = vst.msk [vmem:[%s1798_s23 + $0x30] sm:$0xff] %vm1166_vm3, %v1164_v31  ;;  %v1162_v33 = vsel %vm1146_vm8, %v1138_v29, %v1154_v21  ;;  %vm1147_vm10 = vcmp.gt.f32.partialorder %v1139_v26, 0.0  ;;  %v1155_v34 = vmul.f32 0.1, %v1139_v26 }
 0x139   : > { %1171 = vst.msk [vmem:[%s1798_s23 + $0x20] sm:$0xff] %vm1166_vm3, %v1162_v33  ;;  %v1165_v35 = vsel %vm1149_vm9, %v1141_v18, %v1157_v32 }
 0x13a   : > { %1174 = vst.msk [vmem:[%s1798_s23 + $0x38] sm:$0xff] %vm1166_vm3, %v1165_v35  ;;  %v1163_v3 = vsel %vm1147_vm10, %v1139_v26, %v1155_v34 }
 0x13b   : > { %1172 = vst.msk [vmem:[%s1798_s23 + $0x28] sm:$0xff] %vm1166_vm3, %v1163_v3 }
 0x13c PF: > { %s14_s15 = sadd.s32 1, %s1570_s15  }
 0x13d   : > { %p11_p5 = scmp.ge.s32.totalorder %s14_s15, 4  }
 0x13f   :  { %13 = sbr.rel (!%p11_p5) target bundleno = 1 (0x1), region = 79 }

// kernel: darknet_forward.5
= control target key start
LH: loop header
LB: loop body
LE: loop exit
PB: predicated region body
PF: predicated region fallthrough
CT: control target
= control target key end

     0   :  { %s4172_s15 = smov 0   ;;  %s4904_s0 = inlined_call_operand.vmem [shape: f32[2,18,18,4], index: 0, kind: input, shape index: {}]   ;;  %s4905_s1 = inlined_call_operand.vmem [shape: bf16[9,4,8], index: 1, kind: input, shape index: {}]   ;;  %s4906_s2 = inlined_call_operand.vmem [shape: f32[1,8], index: 2, kind: input, shape index: {}]   ;;  %s4907_s3 = inlined_call_operand.vmem [shape: f32[1,8], index: 3, kind: input, shape index: {}]   ;;  %s4908_s4 = inlined_call_operand.vmem [shape: f32[2,256,8], index: 4, kind: output, shape index: {}]  }
   0x1 LB: > { %s3046_s16 = sadd.s32 4294967295, %s4145_s15   ;;  %p3050_p0 = scmp.ge.s32.totalorder %s4145_s15, 1  ;;  %s4145_s15 = sphi %s4172_s15, %s14_s15  }
   0x2   : > { %p162_p1 = scmp.lt.s32.totalorder %s4145_s15, 3 }
   0x4   : > { %p163_p2 = pnand %p3050_p0, %p162_p1 }
   0x5   : > { %v3054_v0 = vld [vmem:[%s4905_s1 + $0x2] sm:$0x3] (!%p163_p2)  ;;  %vm347_vm0 = vcmask (!%p163_p2), 1041408   ;;  %v4186_v1 = vld [vmem:[%s4905_s1 + $0x8] sm:$0x3] (!%p163_p2)  ;;  %p188_p3 = scmp.lt.s32.totalorder (!%p163_p2), %s3046_s16, 1 }
   0x6   : > { %166 = sbr.rel (%p163_p2) target bundleno = 527 (0x20f), region = 36  ;;  %4120 = vmatprep.subr.msk.bf16.mxu1 (!%p163_p2), %vm347_vm0, %v3054_v0  ;;  %4124 = vmatprep.subr.msk.bf16.mxu0 (!%p163_p2), %vm347_vm0, %v4186_v1  ;;  %v349_v2 = vsel (!%p163_p2), %vm347_vm0, %v3054_v0, 0  ;;  %v4194_v3 = vsel (!%p163_p2), %vm347_vm0, %v4186_v1, 0  ;;  %v247_v4 = vld [vmem:[%s4905_s1] sm:$0x3] (!%p163_p2)  ;;  %vm298_vm1 = vcmask (!%p163_p2), 31744  }
   0x7   : > { %3557 = vmatpush3.bf16.msra.mxu1 (!%p163_p2), %v349_v2  ;;  %3693 = vmatpush3.bf16.msra.mxu0 (!%p163_p2), %v4194_v3  ;;  %v3234_v5 = vld [vmem:[%s4905_s1 + $0xa] sm:$0x3] (!%p163_p2)  ;;  %v561_v14 = vsel (!%p163_p2), %vm347_vm0, %v247_v4, 0  ;;  %v3283_v20 = vld [vmem:[%s4905_s1 + $0xc] sm:$0x3] (!%p163_p2)  ;;  %vm2958_vm3 = vcmask (!%p163_p2), 64512  }
   0x8   : > { %4121 = vmatprep.subr.msk.bf16.mxu1 (!%p163_p2), %vm347_vm0, %v247_v4  ;;  %4126 = vmatprep.subr.msk.bf16.mxu0 (!%p163_p2), %vm347_vm0, %v3234_v5  ;;  %v1706_v18 = vsel (!%p163_p2), %vm347_vm0, %v3234_v5, 0  ;;  %v4238_v21 = vld [vmem:[%s4905_s1 + $0x4] sm:$0x3] (!%p163_p2)  ;;  %v2001_v52 = vsel (!%p163_p2), %vm347_vm0, %v3283_v20, 0  ;;  %v4317_v53 = vld [vmem:[%s4905_s1 + $0xe] sm:$0x3] (!%p163_p2) }
   0xd   : > { %s4910_s16 = smov (!%p188_p3, %s3046_s16), 1 }
   0xe   : > { %s4130_s25 = smul.u32 432, %s4910_s16  ;;  %s3402_s19 = sshll.u32 %s4910_s16, 8 }
   0xf   : > { %s4769_s22 = scalar_lea.vmem %s4908_s4, %s3402_s19 }
  0x10   : > { %s4211_s28 = scalar_lea.vmem %s4904_s0, %s4130_s25 }
  0x11   : > { %v248_v6 = vld [vmem:[%s4211_s28 + $0x1] sm:$0xff]  ;;  %v249_v7 = vld [vmem:[%s4211_s28 + $0x9] sm:$0xff]  ;;  %v3153_v8 = vld [vmem:[%s4211_s28 + $0x19] sm:$0xff] }
  0x12   : > { %v280_v9 = vpack.c.bf16 %v249_v7, %v248_v6  ;;  %v3154_v10 = vld [vmem:[%s4211_s28 + $0x21] sm:$0xff]  ;;  %v3155_v11 = vld [vmem:[%s4211_s28 + $0x31] sm:$0xff]  ;;  %v3156_v12 = vld [vmem:[%s4211_s28 + $0x39] sm:$0xff] }
  0x13   : > { %v1345_v13 = vpack.c.bf16 %v3154_v10, %v3153_v8  ;;  %v4220_v15 = vpack.c.bf16 %v3156_v12, %v3155_v11  ;;  %v3157_v16 = vld [vmem:[%s4211_s28 + $0x49] sm:$0xff]  ;;  %v3158_v17 = vld [vmem:[%s4211_s28 + $0x51] sm:$0xff]  ;;  %v3159_v22 = vld [vmem:[%s4211_s28 + $0x61] sm:$0xff] }
  0x14   : > { %3558 = vmatprep.mubr.msk.bf16.mxu1 %vm298_vm1, %v280_v9  ;;  %v4226_v19 = vpack.c.bf16 %v3158_v17, %v3157_v16  ;;  %v3160_v23 = vld [vmem:[%s4211_s28 + $0x69] sm:$0xff]  ;;  %v3161_v24 = vld [vmem:[%s4211_s28 + $0x79] sm:$0xff]  ;;  %v3162_v25 = vld [vmem:[%s4211_s28 + $0x81] sm:$0xff] }
  0x15   : > { %3694 = vmatprep.mubr.msk.bf16.mxu0 %vm298_vm1, %v1345_v13  ;;  %3559 = vmatmul.mubr.msk.bf16.vlgmr.msra.gmra.mrb[0].mxu1 %vm298_vm1, %v1345_v13  ;;  %v4251_v26 = vpack.c.bf16 %v3160_v23, %v3159_v22  ;;  %v4253_v27 = vpack.c.bf16 %v3162_v25, %v3161_v24  ;;  %v3163_v28 = vld [vmem:[%s4211_s28 + $0x91] sm:$0xff]  ;;  %v3164_v29 = vld [vmem:[%s4211_s28 + $0x99] sm:$0xff]  ;;  %v3165_v30 = vld [vmem:[%s4211_s28 + $0xa9] sm:$0xff] }
  0x16   : > { %3591 = vmatpush3.bf16.msra.mxu1 %v561_v14  ;;  %3695 = vmatmul.mubr.msk.bf16.vlgmr.msra.gmra.mrb[0].mxu0 %vm298_vm1, %v4220_v15  ;;  %v3166_v31 = vld [vmem:[%s4211_s28 + $0xb1] sm:$0xff]  ;;  %v4267_v32 = vpack.c.bf16 %v3164_v29, %v3163_v28  ;;  %v3167_v34 = vld [vmem:[%s4211_s28 + $0xc1] sm:$0xff]  ;;  %v3168_v35 = vld [vmem:[%s4211_s28 + $0xc9] sm:$0xff] }
  0x17   : > { %3727 = vmatpush3.bf16.msra.mxu0 %v1706_v18  ;;  %3562 = vmatprep.mubr.msk.bf16.mxu1 %vm298_vm1, %v4220_v15  ;;  %v4269_v33 = vpack.c.bf16 %v3166_v31, %v3165_v30  ;;  %v3202_v36 = vld [vmem:[%s4211_s28 + $0x1a] sm:$0xff]  ;;  %v3203_v37 = vld [vmem:[%s4211_s28 + $0x22] sm:$0xff]  ;;  %v4283_v38 = vpack.c.bf16 %v3168_v35, %v3167_v34  ;;  %v3204_v42 = vld [vmem:[%s4211_s28 + $0x32] sm:$0xff] }
  0x18   : > { %3698 = vmatprep.mubr.msk.bf16.mxu0 %vm298_vm1, %v4226_v19  ;;  %4127 = vmatprep.subr.msk.bf16.mxu0 %vm347_vm0, %v3283_v20  ;;  %v4285_v39 = vpack.c.bf16 %v3203_v37, %v3202_v36  ;;  %v266_v40 = vld [vmem:[%s4211_s28 + $0xd9] sm:$0xff]  ;;  %v267_v41 = vld [vmem:[%s4211_s28 + $0xe1] sm:$0xff]  ;;  %v268_v44 = vld [vmem:[%s4211_s28 + $0xf1] sm:$0xff] }
  0x19   : > { %4122 = vmatprep.subr.msk.bf16.mxu1 %vm347_vm0, %v4238_v21  ;;  %v3205_v43 = vld [vmem:[%s4211_s28 + $0x3a] sm:$0xff]  ;;  %v3206_v46 = vld [vmem:[%s4211_s28 + $0x4a] sm:$0xff]  ;;  %v3207_v47 = vld [vmem:[%s4211_s28 + $0x52] sm:$0xff]  ;;  %v4303_v48 = vpack.c.bf16 %v267_v41, %v266_v40 }
  0x1a   : > { %v269_v45 = vld [vmem:[%s4211_s28 + $0xf9] sm:$0xff]  ;;  %v4305_v49 = vpack.c.bf16 %v3205_v43, %v3204_v42  ;;  %v4309_v51 = vpack.c.bf16 %v3207_v47, %v3206_v46  ;;  %v270_v54 = vld [vmem:[%s4211_s28 + $0x109] sm:$0xff]  ;;  %v271_v55 = vld [vmem:[%s4211_s28 + $0x111] sm:$0xff]  ;;  %v823_v47 = vsel %vm347_vm0, %v4238_v21, 0 }
  0x1b   : > { %v4307_v50 = vpack.c.bf16 %v269_v45, %v268_v44  ;;  %v3208_v56 = vld [vmem:[%s4211_s28 + $0x62] sm:$0xff]  ;;  %v3209_v57 = vld [vmem:[%s4211_s28 + $0x6a] sm:$0xff]  ;;  %v3210_v60 = vld [vmem:[%s4211_s28 + $0x7a] sm:$0xff]  ;;  %v4335_v62 = vpack.c.bf16 %v271_v55, %v270_v54 }
  0x1c   : > { %v272_v58 = vld [vmem:[%s4211_s28 + $0x121] sm:$0xff]  ;;  %v273_v59 = vld [vmem:[%s4211_s28 + $0x129] sm:$0xff]  ;;  %v4337_v63 = vpack.c.bf16 %v3209_v57, %v3208_v56  ;;  %v274_v4 = vld [vmem:[%s4211_s28 + $0x139] sm:$0xff] }
  0x1d   : > { %3563 = vmatmul.mubr.msk.bf16.gmra.mrb[4].mxu1 %vm298_vm1, %v4226_v19  ;;  %v3211_v61 = vld [vmem:[%s4211_s28 + $0x82] sm:$0xff]  ;;  %v4339_v0 = vpack.c.bf16 %v273_v59, %v272_v58  ;;  %v3212_v6 = vld [vmem:[%s4211_s28 + $0x92] sm:$0xff]  ;;  %v3213_v7 = vld [vmem:[%s4211_s28 + $0x9a] sm:$0xff] }
  0x1e   : > { %3699 = vmatmul.mubr.msk.bf16.gmra.mrb[4].mxu0 %vm298_vm1, %v4251_v26  ;;  %3566 = vmatprep.mubr.msk.bf16.mxu1 %vm298_vm1, %v4251_v26  ;;  %v4341_v2 = vpack.c.bf16 %v3211_v61, %v3210_v60  ;;  %v275_v5 = vld [vmem:[%s4211_s28 + $0x141] sm:$0xff]  ;;  %v276_v8 = vld [vmem:[%s4211_s28 + $0x151] sm:$0xff]  ;;  %v277_v9 = vld [vmem:[%s4211_s28 + $0x159] sm:$0xff]  ;;  %v4361_v13 = vpack.c.bf16 %v3213_v7, %v3212_v6 }
  0x1f   : > { %3702 = vmatprep.mubr.msk.bf16.mxu0 %vm298_vm1, %v4253_v27  ;;  %v3214_v10 = vld [vmem:[%s4211_s28 + $0xaa] sm:$0xff]  ;;  %v3215_v11 = vld [vmem:[%s4211_s28 + $0xb2] sm:$0xff]  ;;  %v4359_v12 = vpack.c.bf16 %v275_v5, %v274_v4  ;;  %v4363_v14 = vpack.c.bf16 %v277_v9, %v276_v8  ;;  %v3216_v20 = vld [vmem:[%s4211_s28 + $0xc2] sm:$0xff] }
  0x20   : > { %v4365_v16 = vpack.c.bf16 %v3215_v11, %v3214_v10  ;;  %v278_v17 = vld [vmem:[%s4211_s28 + $0x169] sm:$0xff]  ;;  %v279_v18 = vld [vmem:[%s4211_s28 + $0x171] sm:$0xff]  ;;  %v199_v23 = vld [vmem:[%s4211_s28] sm:$0xff] }
  0x21   : > { %v3217_v22 = vld [vmem:[%s4211_s28 + $0xca] sm:$0xff]  ;;  %v3218_v25 = vld [vmem:[%s4211_s28 + $0xda] sm:$0xff]  ;;  %v3219_v28 = vld [vmem:[%s4211_s28 + $0xe2] sm:$0xff]  ;;  %v4383_v29 = vpack.c.bf16 %v279_v18, %v278_v17 }
  0x22   : > { %v200_v24 = vld [vmem:[%s4211_s28 + $0x8] sm:$0xff]  ;;  %v4385_v30 = vpack.c.bf16 %v3217_v22, %v3216_v20  ;;  %v4387_v34 = vpack.c.bf16 %v3219_v28, %v3218_v25  ;;  %v201_v35 = vld [vmem:[%s4211_s28 + $0x18] sm:$0xff]  ;;  %v202_v36 = vld [vmem:[%s4211_s28 + $0x20] sm:$0xff] }
  0x23   : > { %v231_v31 = vpack.c.bf16 %v200_v24, %v199_v23  ;;  %v3220_v37 = vld [vmem:[%s4211_s28 + $0xf2] sm:$0xff]  ;;  %v3221_v40 = vld [vmem:[%s4211_s28 + $0xfa] sm:$0xff]  ;;  %v3222_v43 = vld [vmem:[%s4211_s28 + $0x10a] sm:$0xff]  ;;  %v4404_v45 = vpack.c.bf16 %v202_v36, %v201_v35 }
  0x24   : > { %v203_v41 = vld [vmem:[%s4211_s28 + $0x30] sm:$0xff]  ;;  %v204_v42 = vld [vmem:[%s4211_s28 + $0x38] sm:$0xff]  ;;  %v4406_v46 = vpack.c.bf16 %v3221_v40, %v3220_v37  ;;  %v4419_v55 = vld [vmem:[%s4905_s1 + $0x6] sm:$0x3] }
  0x25   : > { %3567 = vmatmul.mubr.msk.bf16.gmra.mrb[8].mxu1 %vm298_vm1, %v4253_v27  ;;  %v3223_v44 = vld [vmem:[%s4211_s28 + $0x112] sm:$0xff]  ;;  %v205_v56 = vld [vmem:[%s4211_s28 + $0x48] sm:$0xff]  ;;  %v207_v59 = vld [vmem:[%s4211_s28 + $0x60] sm:$0xff] }
  0x26   : > { %3703 = vmatmul.mubr.msk.bf16.gmra.mrb[8].mxu0 %vm298_vm1, %v4267_v32  ;;  %3570 = vmatprep.mubr.msk.bf16.mxu1 %vm298_vm1, %v4267_v32  ;;  %v4412_v54 = vpack.c.bf16 %v3223_v44, %v3222_v43  ;;  %v206_v57 = vld [vmem:[%s4211_s28 + $0x50] sm:$0xff]  ;;  %v3224_v21 = vld [vmem:[%s4211_s28 + $0x122] sm:$0xff]  ;;  %v3226_v61 = vld [vmem:[%s4211_s28 + $0x13a] sm:$0xff] }
  0x27   : > { %3706 = vmatprep.mubr.msk.bf16.mxu0 %vm298_vm1, %v4269_v33  ;;  %v3225_v58 = vld [vmem:[%s4211_s28 + $0x12a] sm:$0xff]  ;;  %v3227_v4 = vld [vmem:[%s4211_s28 + $0x142] sm:$0xff]  ;;  %v4437_v5 = vpack.c.bf16 %v206_v57, %v205_v56  ;;  %v209_v9 = vld [vmem:[%s4211_s28 + $0x78] sm:$0xff] }
  0x28   : > { %v208_v60 = vld [vmem:[%s4211_s28 + $0x68] sm:$0xff]  ;;  %v4439_v6 = vpack.c.bf16 %v3225_v58, %v3224_v21  ;;  %v4443_v8 = vpack.c.bf16 %v3227_v4, %v3226_v61  ;;  %v210_v10 = vld [vmem:[%s4211_s28 + $0x80] sm:$0xff]  ;;  %v3228_v11 = vld [vmem:[%s4211_s28 + $0x152] sm:$0xff]  ;;  %v2295_v61 = vsel %vm347_vm0, %v4317_v53, 0 }
  0x29   : > { %v4441_v7 = vpack.c.bf16 %v208_v60, %v207_v59  ;;  %v3229_v17 = vld [vmem:[%s4211_s28 + $0x15a] sm:$0xff]  ;;  %v211_v18 = vld [vmem:[%s4211_s28 + $0x90] sm:$0xff]  ;;  %v4461_v24 = vpack.c.bf16 %v210_v10, %v209_v9  ;;  %v213_v35 = vld [vmem:[%s4211_s28 + $0xa8] sm:$0xff] }
  0x2a   : > { %v212_v20 = vld [vmem:[%s4211_s28 + $0x98] sm:$0xff]  ;;  %v3230_v22 = vld [vmem:[%s4211_s28 + $0x16a] sm:$0xff]  ;;  %v4463_v25 = vpack.c.bf16 %v3229_v17, %v3228_v11  ;;  %v3232_v37 = vld [vmem:[%s4211_s28 + $0x182] sm:$0xff] }
  0x2b   : > { %v3231_v23 = vld [vmem:[%s4211_s28 + $0x172] sm:$0xff]  ;;  %v4465_v28 = vpack.c.bf16 %v212_v20, %v211_v18  ;;  %v3233_v40 = vld [vmem:[%s4211_s28 + $0x18a] sm:$0xff]  ;;  %v218_v57 = vld [vmem:[%s4211_s28 + $0xe0] sm:$0xff] }
  0x2c   : > { %v214_v36 = vld [vmem:[%s4211_s28 + $0xb0] sm:$0xff]  ;;  %v4485_v44 = vpack.c.bf16 %v3233_v40, %v3232_v37  ;;  %v217_v56 = vld [vmem:[%s4211_s28 + $0xd8] sm:$0xff]  ;;  %v221_v9 = vld [vmem:[%s4211_s28 + $0x108] sm:$0xff] }
  0x2d   : > { %3571 = vmatmul.mubr.msk.bf16.gmra.mrb[12].mxu1 %vm298_vm1, %v4269_v33  ;;  %v4483_v43 = vpack.c.bf16 %v214_v36, %v213_v35  ;;  %v219_v21 = vld [vmem:[%s4211_s28 + $0xf0] sm:$0xff]  ;;  %v220_v58 = vld [vmem:[%s4211_s28 + $0xf8] sm:$0xff]  ;;  %v4501_v59 = vpack.c.bf16 %v218_v57, %v217_v56  ;;  %v224_v11 = vld [vmem:[%s4211_s28 + $0x128] sm:$0xff] }
  0x2e   : > { %3707 = vmatmul.mubr.msk.bf16.gmra.mrb[12].mxu0 %vm298_vm1, %v4283_v38  ;;  %3574 = vmatprep.mubr.msk.bf16.mxu1 %vm298_vm1, %v4283_v38  ;;  %v4503_v60 = vpack.c.bf16 %v220_v58, %v219_v21  ;;  %v3381_v4 = vld [vmem:[%s4905_s1 + $0x10] sm:$0x3]  ;;  %v225_v20 = vld [vmem:[%s4211_s28 + $0x138] sm:$0xff]  ;;  %v229_v40 = vld [vmem:[%s4211_s28 + $0x168] sm:$0xff]  ;;  %v1118_v58 = vsel %vm347_vm0, %v4419_v55, 0 }
  0x2f   : > { %3728 = vmatprep.mubr.msk.bf16.mxu0 %vm298_vm1, %v4285_v39  ;;  %v222_v10 = vld [vmem:[%s4211_s28 + $0x110] sm:$0xff]  ;;  %v228_v35 = vld [vmem:[%s4211_s28 + $0x158] sm:$0xff] }
  0x30   : > { %v4523_v17 = vpack.c.bf16 %v222_v10, %v221_v9  ;;  %v725_v56 = vld [vmem:[%s4211_s28 + $0xa] sm:$0xff]  ;;  %v3282_v9 = vld [vmem:[%s4211_s28 + $0x1a0] sm:$0xff] }
  0x35   : > { %3575 = vmatmul.mubr.msk.bf16.gmra.mrb[16].mxu1 %vm298_vm1, %v4303_v48 }
  0x36   : > { %3729 = vmatmul.mubr.msk.bf16.vlgmr.msra.gmra.mrb[0].mxu0 %vm298_vm1, %v4305_v49  ;;  %3578 = vmatprep.mubr.msk.bf16.mxu1 %vm298_vm1, %v4307_v50 }
  0x37   : > { %3761 = vmatpush3.bf16.msra.mxu0 %v2001_v52  ;;  %3732 = vmatprep.mubr.msk.bf16.mxu0 %vm298_vm1, %v4309_v51  ;;  %v4410_v52 = vpack.c.bf16 %v204_v42, %v203_v41  ;;  %v215_v41 = vld [vmem:[%s4211_s28 + $0xc0] sm:$0xff]  ;;  %v216_v42 = vld [vmem:[%s4211_s28 + $0xc8] sm:$0xff] }
  0x38   : > { %4128 = vmatprep.subr.msk.bf16.mxu0 %vm347_vm0, %v4317_v53  ;;  %v223_v53 = vld [vmem:[%s4211_s28 + $0x120] sm:$0xff] }
  0x39   : > { %v4525_v18 = vpack.c.bf16 %v224_v11, %v223_v53  ;;  %v2589_v53 = vsel %vm347_vm0, %v3381_v4, 0 }
  0x3d   : > { %3579 = vmatmul.mubr.msk.bf16.gmra.mrb[20].mxu1 %vm298_vm1, %v4335_v62 }
  0x3e   : > { %3733 = vmatmul.mubr.msk.bf16.gmra.mrb[4].mxu0 %vm298_vm1, %v4337_v63  ;;  %3582 = vmatprep.mubr.msk.bf16.mxu1 %vm298_vm1, %v4339_v0 }
  0x3f   : > { %3736 = vmatprep.mubr.msk.bf16.mxu0 %vm298_vm1, %v4341_v2 }
  0x45   : > { %3583 = vmatmul.mubr.msk.bf16.gmra.mrb[24].mxu1 %vm298_vm1, %v4359_v12 }
  0x46   : > { %3737 = vmatmul.mubr.msk.bf16.gmra.mrb[8].mxu0 %vm298_vm1, %v4361_v13  ;;  %3586 = vmatprep.mubr.msk.bf16.mxu1 %vm298_vm1, %v4363_v14 }
  0x47   : > { %3740 = vmatprep.mubr.msk.bf16.mxu0 %vm298_vm1, %v4365_v16 }
  0x4d   : > { %3587 = vmatmul.mubr.msk.bf16.gmra.mrb[28].mxu1 %vm298_vm1, %v4383_v29 }
  0x4e   : > { %3741 = vmatmul.mubr.msk.bf16.gmra.mrb[12].mxu0 %vm298_vm1, %v4385_v30  ;;  %3592 = vmatprep.mubr.msk.bf16.mxu1 %vm298_vm1, %v231_v31  ;;  %v4467_v31 = vpack.c.bf16 %v3231_v23, %v3230_v22  ;;  %v226_v22 = vld [vmem:[%s4211_s28 + $0x140] sm:$0xff]  ;;  %v227_v23 = vld [vmem:[%s4211_s28 + $0x150] sm:$0xff] }
  0x4f   : > { %3744 = vmatprep.mubr.msk.bf16.mxu0 %vm298_vm1, %v4387_v34  ;;  %v4539_v36 = vpack.c.bf16 %v226_v22, %v225_v20  ;;  %v4541_v37 = vpack.c.bf16 %v228_v35, %v227_v23 }
  0x55   : > { %3593 = vmatmul.mubr.msk.bf16.vlgmr.msra.gmra.mrb[0].mxu1 %vm298_vm1, %v4404_v45 }
  0x56   : > { %3625 = vmatpush3.bf16.msra.mxu1 %v823_v47  ;;  %3745 = vmatmul.mubr.msk.bf16.gmra.mrb[16].mxu0 %vm298_vm1, %v4406_v46  ;;  %v4487_v47 = vpack.c.bf16 %v216_v42, %v215_v41  ;;  %v230_v41 = vld [vmem:[%s4211_s28 + $0x170] sm:$0xff]  ;;  %v724_v42 = vld [vmem:[%s4211_s28 + $0x2] sm:$0xff] }
  0x57   : > { %3596 = vmatprep.mubr.msk.bf16.mxu1 %vm298_vm1, %v4410_v52  ;;  %3748 = vmatprep.mubr.msk.bf16.mxu0 %vm298_vm1, %v4412_v54  ;;  %v4555_v57 = vpack.c.bf16 %v230_v41, %v229_v40  ;;  %v756_v21 = vpack.c.bf16 %v725_v56, %v724_v42 }
  0x58   : > { %4123 = vmatprep.subr.msk.bf16.mxu1 %vm347_vm0, %v4419_v55  ;;  %v3280_v55 = vld [vmem:[%s4211_s28 + $0x188] sm:$0xff] }
  0x5d   : > { %3597 = vmatmul.mubr.msk.bf16.gmra.mrb[4].mxu1 %vm298_vm1, %v4437_v5 }
  0x5e   : > { %3749 = vmatmul.mubr.msk.bf16.gmra.mrb[20].mxu0 %vm298_vm1, %v4439_v6  ;;  %3600 = vmatprep.mubr.msk.bf16.mxu1 %vm298_vm1, %v4441_v7 }
  0x5f   : > { %3752 = vmatprep.mubr.msk.bf16.mxu0 %vm298_vm1, %v4443_v8 }
  0x65   : > { %3601 = vmatmul.mubr.msk.bf16.gmra.mrb[8].mxu1 %vm298_vm1, %v4461_v24 }
  0x66   : > { %3753 = vmatmul.mubr.msk.bf16.gmra.mrb[24].mxu0 %vm298_vm1, %v4463_v25  ;;  %3604 = vmatprep.mubr.msk.bf16.mxu1 %vm298_vm1, %v4465_v28 }
  0x67   : > { %3756 = vmatprep.mubr.msk.bf16.mxu0 %vm298_vm1, %v4467_v31 }
  0x6d   : > { %3605 = vmatmul.mubr.msk.bf16.gmra.mrb[12].mxu1 %vm298_vm1, %v4483_v43 }
  0x6e   : > { %3757 = vmatmul.mubr.msk.bf16.gmra.mrb[28].mxu0 %vm298_vm1, %v4485_v44  ;;  %3608 = vmatprep.mubr.msk.bf16.mxu1 %vm298_vm1, %v4487_v47 }
  0x6f   : > { %3762 = vmatprep.mubr.msk.bf16.mxu0 %vm298_vm1, %v4410_v52 }
  0x75   : > { %3609 = vmatmul.mubr.msk.bf16.gmra.mrb[16].mxu1 %vm298_vm1, %v4501_v59 }
  0x76   : > { %3763 = vmatmul.mubr.msk.bf16.vlgmr.msra.gmra.mrb[0].mxu0 %vm298_vm1, %v4437_v5  ;;  %3612 = vmatprep.mubr.msk.bf16.mxu1 %vm298_vm1, %v4503_v60 }
  0x77   : > { %3795 = vmatpush3.bf16.msra.mxu0 %v2295_v61  ;;  %3766 = vmatprep.mubr.msk.bf16.mxu0 %vm298_vm1, %v4441_v7 }
  0x78   : > { %4129 = vmatprep.subr.msk.bf16.mxu0 %vm347_vm0, %v3381_v4 }
  0x7d   : > { %3613 = vmatmul.mubr.msk.bf16.gmra.mrb[20].mxu1 %vm298_vm1, %v4523_v17 }
  0x7e   : > { %3767 = vmatmul.mubr.msk.bf16.gmra.mrb[4].mxu0 %vm298_vm1, %v4461_v24  ;;  %3616 = vmatprep.mubr.msk.bf16.mxu1 %vm298_vm1, %v4525_v18 }
  0x7f   : > { %3770 = vmatprep.mubr.msk.bf16.mxu0 %vm298_vm1, %v4465_v28 }
  0x85   : > { %3617 = vmatmul.mubr.msk.bf16.gmra.mrb[24].mxu1 %vm298_vm1, %v4539_v36 }
  0x86   : > { %3771 = vmatmul.mubr.msk.bf16.gmra.mrb[8].mxu0 %vm298_vm1, %v4483_v43  ;;  %3620 = vmatprep.mubr.msk.bf16.mxu1 %vm298_vm1, %v4541_v37 }
  0x87   : > { %3774 = vmatprep.mubr.msk.bf16.mxu0 %vm298_vm1, %v4487_v47 }
  0x8d   : > { %3621 = vmatmul.mubr.msk.bf16.gmra.mrb[28].mxu1 %vm298_vm1, %v4555_v57 }
  0x8e   : > { %3775 = vmatmul.mubr.msk.bf16.gmra.mrb[12].mxu0 %vm298_vm1, %v4501_v59  ;;  %3626 = vmatprep.mubr.msk.bf16.mxu1 %vm298_vm1, %v756_v21 }
  0x8f   : > { %3778 = vmatprep.mubr.msk.bf16.mxu0 %vm298_vm1, %v4503_v60 }
  0x95   : > { %3627 = vmatmul.mubr.msk.bf16.vlgmr.msra.gmra.mrb[0].mxu1 %vm298_vm1, %v4285_v39  ;;  %v3279_v39 = vld [vmem:[%s4211_s28 + $0x180] sm:$0xff] }
  0x96   : > { %3659 = vmatpush3.bf16.msra.mxu1 %v1118_v58  ;;  %3779 = vmatmul.mubr.msk.bf16.gmra.mrb[16].mxu0 %vm298_vm1, %v4523_v17  ;;  %v4586_v61 = vpack.c.bf16 %v3280_v55, %v3279_v39 }
  0x97   : > { %3630 = vmatprep.mubr.msk.bf16.mxu1 %vm298_vm1, %v4305_v49  ;;  %3782 = vmatprep.mubr.msk.bf16.mxu0 %vm298_vm1, %v4525_v18 }
  0x98   : > { %4125 = vmatprep.subr.msk.bf16.mxu1 %vm347_vm0, %v4186_v1  ;;  %v3281_v1 = vld [vmem:[%s4211_s28 + $0x198] sm:$0xff] }
  0x99   : > { %v1949_v10 = vpack.c.bf16 %v3282_v9, %v3281_v1 }
  0x9d   : > { %3631 = vmatmul.mubr.msk.bf16.gmra.mrb[4].mxu1 %vm298_vm1, %v4309_v51 }
  0x9e   : > { %3783 = vmatmul.mubr.msk.bf16.gmra.mrb[20].mxu0 %vm298_vm1, %v4539_v36  ;;  %3634 = vmatprep.mubr.msk.bf16.mxu1 %vm298_vm1, %v4337_v63 }
  0x9f   : > { %3786 = vmatprep.mubr.msk.bf16.mxu0 %vm298_vm1, %v4541_v37 }
  0xa5   : > { %3635 = vmatmul.mubr.msk.bf16.gmra.mrb[8].mxu1 %vm298_vm1, %v4341_v2 }
  0xa6   : > { %3787 = vmatmul.mubr.msk.bf16.gmra.mrb[24].mxu0 %vm298_vm1, %v4555_v57  ;;  %3638 = vmatprep.mubr.msk.bf16.mxu1 %vm298_vm1, %v4361_v13 }
  0xa7   : > { %3790 = vmatprep.mubr.msk.bf16.mxu0 %vm298_vm1, %v4586_v61 }
  0xad   : > { %3639 = vmatmul.mubr.msk.bf16.gmra.mrb[12].mxu1 %vm298_vm1, %v4365_v16 }
  0xae   : > { %3791 = vmatmul.mubr.msk.bf16.gmra.mrb[28].mxu0 %vm298_vm1, %v1949_v10  ;;  %3642 = vmatprep.mubr.msk.bf16.mxu1 %vm298_vm1, %v4385_v30 }
  0xaf   : > { %3796 = vmatprep.mubr.msk.bf16.mxu0 %vm298_vm1, %v4220_v15  ;;  %v3329_v15 = vld [vmem:[%s4211_s28 + $0x189] sm:$0xff] }
  0xb5   : > { %3643 = vmatmul.mubr.msk.bf16.gmra.mrb[16].mxu1 %vm298_vm1, %v4387_v34 }
  0xb6   : > { %3797 = vmatmul.mubr.msk.bf16.vlgmr.msra.gmra.mrb[0].mxu0 %vm298_vm1, %v4226_v19  ;;  %3646 = vmatprep.mubr.msk.bf16.mxu1 %vm298_vm1, %v4406_v46 }
  0xb7   : > { %3829 = vmatpush3.bf16.msra.mxu0 %v2589_v53  ;;  %3800 = vmatprep.mubr.msk.bf16.mxu0 %vm298_vm1, %v4251_v26  ;;  %v3330_v26 = vld [vmem:[%s4211_s28 + $0x199] sm:$0xff] }
  0xbd   : > { %3647 = vmatmul.mubr.msk.bf16.gmra.mrb[20].mxu1 %vm298_vm1, %v4412_v54 }
  0xbe   : > { %3801 = vmatmul.mubr.msk.bf16.gmra.mrb[4].mxu0 %vm298_vm1, %v4253_v27  ;;  %3650 = vmatprep.mubr.msk.bf16.mxu1 %vm298_vm1, %v4439_v6  ;;  %v3331_v27 = vld [vmem:[%s4211_s28 + $0x1a1] sm:$0xff] }
  0xbf   : > { %3804 = vmatprep.mubr.msk.bf16.mxu0 %vm298_vm1, %v4267_v32  ;;  %v2243_v32 = vpack.c.bf16 %v3331_v27, %v3330_v26 }
  0xc5   : > { %3651 = vmatmul.mubr.msk.bf16.gmra.mrb[24].mxu1 %vm298_vm1, %v4443_v8 }
  0xc6   : > { %3805 = vmatmul.mubr.msk.bf16.gmra.mrb[8].mxu0 %vm298_vm1, %v4269_v33  ;;  %3654 = vmatprep.mubr.msk.bf16.mxu1 %vm298_vm1, %v4463_v25  ;;  %v3379_v33 = vld [vmem:[%s4211_s28 + $0x19a] sm:$0xff] }
  0xc7   : > { %3808 = vmatprep.mubr.msk.bf16.mxu0 %vm298_vm1, %v4283_v38  ;;  %v3380_v38 = vld [vmem:[%s4211_s28 + $0x1a2] sm:$0xff] }
  0xcd   : > { %3655 = vmatmul.mubr.msk.bf16.gmra.mrb[28].mxu1 %vm298_vm1, %v4467_v31 }
  0xce   : > { %3809 = vmatmul.mubr.msk.bf16.gmra.mrb[12].mxu0 %vm298_vm1, %v4303_v48  ;;  %3660 = vmatprep.mubr.msk.bf16.mxu1 %vm298_vm1, %v4404_v45 }
  0xcf   : > { %3812 = vmatprep.mubr.msk.bf16.mxu0 %vm298_vm1, %v4307_v50 }
  0xd5   : > { %3661 = vmatmul.mubr.msk.bf16.vlgmr.msra.gmra.mrb[0].mxu1 %vm298_vm1, %v4410_v52 }
  0xd6   : > { %3863 = vmatpush3.bf16.msra.mxu1 %v4194_v3  ;;  %3813 = vmatmul.mubr.msk.bf16.gmra.mrb[16].mxu0 %vm298_vm1, %v4335_v62  ;;  %v3328_v3 = vld [vmem:[%s4211_s28 + $0x181] sm:$0xff] }
  0xd7   : > { %3664 = vmatprep.mubr.msk.bf16.mxu1 %vm298_vm1, %v4437_v5  ;;  %3816 = vmatprep.mubr.msk.bf16.mxu0 %vm298_vm1, %v4339_v0  ;;  %v2242_v19 = vpack.c.bf16 %v3329_v15, %v3328_v3 }
  0xdd   : > { %3665 = vmatmul.mubr.msk.bf16.gmra.mrb[4].mxu1 %vm298_vm1, %v4441_v7  ;;  %v4757_v7 = vld [vmem:[%s4907_s3] ss:$0 sm:$0xff] }
  0xde   : > { %3817 = vmatmul.mubr.msk.bf16.gmra.mrb[20].mxu0 %vm298_vm1, %v4359_v12  ;;  %3668 = vmatprep.mubr.msk.bf16.mxu1 %vm298_vm1, %v4461_v24 }
  0xdf   : > { %3820 = vmatprep.mubr.msk.bf16.mxu0 %vm298_vm1, %v4363_v14 }
  0xe5   : > { %3669 = vmatmul.mubr.msk.bf16.gmra.mrb[8].mxu1 %vm298_vm1, %v4465_v28 }
  0xe6   : > { %3821 = vmatmul.mubr.msk.bf16.gmra.mrb[24].mxu0 %vm298_vm1, %v4383_v29  ;;  %3672 = vmatprep.mubr.msk.bf16.mxu1 %vm298_vm1, %v4483_v43 }
  0xe7   : > { %3824 = vmatprep.mubr.msk.bf16.mxu0 %vm298_vm1, %v2242_v19 }
  0xed   : > { %3673 = vmatmul.mubr.msk.bf16.gmra.mrb[12].mxu1 %vm298_vm1, %v4487_v47 }
  0xee   : > { %3825 = vmatmul.mubr.msk.bf16.gmra.mrb[28].mxu0 %vm298_vm1, %v2243_v32  ;;  %3676 = vmatprep.mubr.msk.bf16.mxu1 %vm298_vm1, %v4501_v59 }
  0xef   : > { %3830 = vmatprep.mubr.msk.bf16.mxu0 %vm298_vm1, %v4305_v49 }
  0xf5   : > { %3677 = vmatmul.mubr.msk.bf16.gmra.mrb[16].mxu1 %vm298_vm1, %v4503_v60 }
  0xf6   : > { %3831 = vmatmul.mubr.msk.bf16.vlgmr.msra.gmra.mrb[0].mxu0 %vm298_vm1, %v4309_v51  ;;  %3680 = vmatprep.mubr.msk.bf16.mxu1 %vm298_vm1, %v4523_v17 }
  0xf7   : > { %3834 = vmatprep.mubr.msk.bf16.mxu0 %vm298_vm1, %v4337_v63 }
  0xfd   : > { %3681 = vmatmul.mubr.msk.bf16.gmra.mrb[20].mxu1 %vm298_vm1, %v4525_v18 }
  0xfe   : > { %3835 = vmatmul.mubr.msk.bf16.gmra.mrb[4].mxu0 %vm298_vm1, %v4341_v2  ;;  %3684 = vmatprep.mubr.msk.bf16.mxu1 %vm298_vm1, %v4539_v36 }
  0xff   : > { %3838 = vmatprep.mubr.msk.bf16.mxu0 %vm298_vm1, %v4361_v13 }
 0x105   : > { %3685 = vmatmul.mubr.msk.bf16.gmra.mrb[24].mxu1 %vm298_vm1, %v4541_v37 }
 0x106   : > { %3839 = vmatmul.mubr.msk.bf16.gmra.mrb[8].mxu0 %vm298_vm1, %v4365_v16  ;;  %3688 = vmatprep.mubr.msk.bf16.mxu1 %vm298_vm1, %v4555_v57 }
 0x107   : > { %3842 = vmatprep.mubr.msk.bf16.mxu0 %vm298_vm1, %v4385_v30 }
 0x10d   : > { %3689 = vmatmul.mubr.msk.bf16.gmra.mrb[28].mxu1 %vm298_vm1, %v4586_v61 }
 0x10e   : > { %3843 = vmatmul.mubr.msk.bf16.gmra.mrb[12].mxu0 %vm298_vm1, %v4387_v34  ;;  %3710 = vmatprep.mubr.msk.bf16.mxu1 %vm298_vm1, %v4303_v48  ;;  %v2537_v48 = vpack.c.bf16 %v3380_v38, %v3379_v33 }
 0x10f   : > { %3846 = vmatprep.mubr.msk.bf16.mxu0 %vm298_vm1, %v4406_v46 }
 0x115   : > { %3711 = vmatmul.mubr.msk.bf16.vlgmr.msra.gmra.mrb[16].mxu1 %vm298_vm1, %v4307_v50 }
 0x116   : > { %3847 = vmatmul.mubr.msk.bf16.gmra.mrb[16].mxu0 %vm298_vm1, %v4412_v54  ;;  %3714 = vmatprep.mubr.msk.bf16.mxu1 %vm298_vm1, %v4335_v62  ;;  %v4752_v54 = vld [vmem:[%s4906_s2] ss:$0 sm:$0xff] }
 0x117   : > { %3850 = vmatprep.mubr.msk.bf16.mxu0 %vm298_vm1, %v4439_v6 }
 0x11d   : > { %3715 = vmatmul.mubr.msk.bf16.gmra.mrb[20].mxu1 %vm298_vm1, %v4339_v0 }
 0x11e   : > { %3851 = vmatmul.mubr.msk.bf16.gmra.mrb[20].mxu0 %vm298_vm1, %v4443_v8  ;;  %3718 = vmatprep.mubr.msk.bf16.mxu1 %vm298_vm1, %v4359_v12 }
 0x11f   : > { %3854 = vmatprep.mubr.msk.bf16.mxu0 %vm298_vm1, %v4463_v25 }
 0x125   : > { %3719 = vmatmul.mubr.msk.bf16.gmra.mrb[24].mxu1 %vm298_vm1, %v4363_v14 }
 0x126   : > { %3855 = vmatmul.mubr.msk.bf16.gmra.mrb[24].mxu0 %vm298_vm1, %v4467_v31  ;;  %3722 = vmatprep.mubr.msk.bf16.mxu1 %vm298_vm1, %v4383_v29 }
 0x127   : > { %3858 = vmatprep.mubr.msk.bf16.mxu0 %vm298_vm1, %v4485_v44 }
 0x12d   : > { %3723 = vmatmul.mubr.msk.bf16.gmra.mrb[28].mxu1 %vm298_vm1, %v2242_v19 }
 0x12e   : > { %3859 = vmatmul.mubr.msk.bf16.gmra.mrb[28].mxu0 %vm298_vm1, %v2537_v48 }
 0x1a8   : > { %v3662_v49 = vpop.f32.mrb[0].mxu1 }
 0x1a9   : > { %v1154_v50 = vpop.f32.mrb[1].mxu1 }
 0x1aa   : > { %v3663_v51 = vpop.f32.mrb[2].mxu1 }
 0x1ab   : > { %v1157_v62 = vpop.f32.mrb[3].mxu1 }
 0x1b0   : > { %v3666_v63 = vpop.f32.mrb[4].mxu1 }
 0x1b1   : > { %v1170_v0 = vpop.f32.mrb[5].mxu1 }
 0x1b2   : > { %v3667_v2 = vpop.f32.mrb[6].mxu1 }
 0x1b3   : > { %v1173_v12 = vpop.f32.mrb[7].mxu1 }
 0x1b8   : > { %v4733_v13 = vpop.f32.mrb[8].mxu1 }
 0x1b9   : > { %v4735_v14 = vpop.f32.mrb[9].mxu1 }
 0x1ba   : > { %v4737_v16 = vpop.f32.mrb[10].mxu1 }
 0x1bb   : > { %v4739_v29 = vpop.f32.mrb[11].mxu1 }
 0x1c0   : > { %v4741_v30 = vpop.f32.mrb[12].mxu1 }
 0x1c1   : > { %v4743_v34 = vpop.f32.mrb[13].mxu1 }
 0x1c2   : > { %v4745_v45 = vpop.f32.mrb[14].mxu1 }
 0x1c3   : > { %v4747_v46 = vpop.f32.mrb[15].mxu1 }
 0x1c9   : > { %v3832_v52 = vpop.f32.mrb[0].mxu0 }
 0x1ca   : > { %v3864_v5 = vadd.f32 %v3832_v52, %v3662_v49  ;;  %v2625_v6 = vpop.f32.mrb[1].mxu0 }
 0x1cb   : > { %v3865_v8 = vadd.f32 %v2625_v6, %v1154_v50  ;;  %v3833_v24 = vpop.f32.mrb[2].mxu0 }
 0x1cc   : > { %v2793_v25 = vmul.f32 %v3864_v5, %v4752_v54  ;;  %v3866_v28 = vadd.f32 %v3833_v24, %v3663_v51  ;;  %v2628_v31 = vpop.f32.mrb[3].mxu0 }
 0x1cd   : > { %v2791_v43 = vmul.f32 %v3865_v8, %v4752_v54  ;;  %v3867_v44 = vadd.f32 %v2628_v31, %v1157_v62 }
 0x1ce   : > { %v2832_v47 = vadd.f32 %v4757_v7, %v2793_v25  ;;  %v2794_v59 = vmul.f32 %v3866_v28, %v4752_v54 }
 0x1cf   : > { %v2830_v60 = vadd.f32 %v4757_v7, %v2791_v43  ;;  %v2792_v4 = vmul.f32 %v3867_v44, %v4752_v54 }
 0x1d0   : > { %vm2864_vm2 = vcmp.gt.f32.partialorder %v2832_v47, 0.0  ;;  %v2896_v11 = vmul.f32 0.1, %v2832_v47  ;;  %v2833_v17 = vadd.f32 %v4757_v7, %v2794_v59 }
 0x1d1   : > { %vm2862_vm4 = vcmp.gt.f32.partialorder %v2830_v60, 0.0  ;;  %v2894_v18 = vmul.f32 0.1, %v2830_v60  ;;  %v2831_v20 = vadd.f32 %v4757_v7, %v2792_v4  ;;  %v3836_v22 = vpop.f32.mrb[4].mxu0 }
 0x1d2   : > { %v2928_v23 = vsel %vm2864_vm2, %v2832_v47, %v2896_v11  ;;  %vm2865_vm5 = vcmp.gt.f32.partialorder %v2833_v17, 0.0  ;;  %v2897_v35 = vmul.f32 0.1, %v2833_v17  ;;  %v3868_v36 = vadd.f32 %v3836_v22, %v3666_v63  ;;  %v2641_v37 = vpop.f32.mrb[5].mxu0 }
 0x1d3   : > { %2961 = vst.msk [vmem:[%s4769_s22 + $0x10] sm:$0xff] %vm2958_vm3, %v2928_v23  ;;  %v2926_v40 = vsel %vm2862_vm4, %v2830_v60, %v2894_v18  ;;  %vm2863_vm6 = vcmp.gt.f32.partialorder %v2831_v20, 0.0  ;;  %v2895_v41 = vmul.f32 0.1, %v2831_v20  ;;  %v3869_v42 = vadd.f32 %v2641_v37, %v1170_v0  ;;  %v3837_v56 = vpop.f32.mrb[6].mxu0 }
 0x1d4   : > { %2959 = vst.msk [vmem:[%s4769_s22] sm:$0xff] %vm2958_vm3, %v2926_v40  ;;  %v2929_v57 = vsel %vm2865_vm5, %v2833_v17, %v2897_v35  ;;  %v2797_v21 = vmul.f32 %v3868_v36, %v4752_v54  ;;  %v3870_v58 = vadd.f32 %v3837_v56, %v3667_v2  ;;  %v2644_v39 = vpop.f32.mrb[7].mxu0 }
 0x1d5   : > { %2962 = vst.msk [vmem:[%s4769_s22 + $0x18] sm:$0xff] %vm2958_vm3, %v2929_v57  ;;  %v2927_v55 = vsel %vm2863_vm6, %v2831_v20, %v2895_v41  ;;  %v2795_v61 = vmul.f32 %v3869_v42, %v4752_v54  ;;  %v3871_v1 = vadd.f32 %v2644_v39, %v1173_v12 }
 0x1d6   : > { %2960 = vst.msk [vmem:[%s4769_s22 + $0x8] sm:$0xff] %vm2958_vm3, %v2927_v55  ;;  %v2836_v9 = vadd.f32 %v4757_v7, %v2797_v21  ;;  %v2798_v10 = vmul.f32 %v3870_v58, %v4752_v54 }
 0x1d7   : > { %v2834_v53 = vadd.f32 %v4757_v7, %v2795_v61  ;;  %v2796_v3 = vmul.f32 %v3871_v1, %v4752_v54 }
 0x1d8   : > { %vm2868_vm7 = vcmp.gt.f32.partialorder %v2836_v9, 0.0  ;;  %v2900_v15 = vmul.f32 0.1, %v2836_v9  ;;  %v2837_v19 = vadd.f32 %v4757_v7, %v2798_v10 }
 0x1d9   : > { %vm2866_vm8 = vcmp.gt.f32.partialorder %v2834_v53, 0.0  ;;  %v2898_v26 = vmul.f32 0.1, %v2834_v53  ;;  %v2835_v27 = vadd.f32 %v4757_v7, %v2796_v3  ;;  %v3840_v32 = vpop.f32.mrb[8].mxu0 }
 0x1da   : > { %v2932_v33 = vsel %vm2868_vm7, %v2836_v9, %v2900_v15  ;;  %vm2869_vm9 = vcmp.gt.f32.partialorder %v2837_v19, 0.0  ;;  %v2901_v38 = vmul.f32 0.1, %v2837_v19  ;;  %v3872_v48 = vadd.f32 %v3840_v32, %v4733_v13  ;;  %v2657_v49 = vpop.f32.mrb[9].mxu0 }
 0x1db   : > { %2965 = vst.msk [vmem:[%s4769_s22 + $0x30] sm:$0xff] %vm2958_vm3, %v2932_v33  ;;  %v2930_v50 = vsel %vm2866_vm8, %v2834_v53, %v2898_v26  ;;  %vm2867_vm10 = vcmp.gt.f32.partialorder %v2835_v27, 0.0  ;;  %v2899_v51 = vmul.f32 0.1, %v2835_v27  ;;  %v3873_v62 = vadd.f32 %v2657_v49, %v4735_v14  ;;  %v3841_v63 = vpop.f32.mrb[10].mxu0 }
 0x1dc   : > { %2963 = vst.msk [vmem:[%s4769_s22 + $0x20] sm:$0xff] %vm2958_vm3, %v2930_v50  ;;  %v2933_v0 = vsel %vm2869_vm9, %v2837_v19, %v2901_v38  ;;  %v2801_v2 = vmul.f32 %v3872_v48, %v4752_v54  ;;  %v3874_v12 = vadd.f32 %v3841_v63, %v4737_v16  ;;  %v2660_v52 = vpop.f32.mrb[11].mxu0 }
 0x1dd   : > { %2966 = vst.msk [vmem:[%s4769_s22 + $0x38] sm:$0xff] %vm2958_vm3, %v2933_v0  ;;  %v2931_v13 = vsel %vm2867_vm10, %v2835_v27, %v2899_v51  ;;  %v2799_v5 = vmul.f32 %v3873_v62, %v4752_v54  ;;  %v3875_v6 = vadd.f32 %v2660_v52, %v4739_v29 }
 0x1de   : > { %2964 = vst.msk [vmem:[%s4769_s22 + $0x28] sm:$0xff] %vm2958_vm3, %v2931_v13  ;;  %v2840_v14 = vadd.f32 %v4757_v7, %v2801_v2  ;;  %v2802_v8 = vmul.f32 %v3874_v12, %v4752_v54 }
 0x1df   : > { %v2838_v24 = vadd.f32 %v4757_v7, %v2799_v5  ;;  %v2800_v25 = vmul.f32 %v3875_v6, %v4752_v54 }
 0x1e0   : > { %vm2872_vm11 = vcmp.gt.f32.partialorder %v2840_v14, 0.0  ;;  %v2904_v16 = vmul.f32 0.1, %v2840_v14  ;;  %v2841_v28 = vadd.f32 %v4757_v7, %v2802_v8 }
 0x1e1   : > { %vm2870_vm12 = vcmp.gt.f32.partialorder %v2838_v24, 0.0  ;;  %v2902_v31 = vmul.f32 0.1, %v2838_v24  ;;  %v2839_v29 = vadd.f32 %v4757_v7, %v2800_v25  ;;  %v3844_v43 = vpop.f32.mrb[12].mxu0 }
 0x1e2   : > { %v2936_v44 = vsel %vm2872_vm11, %v2840_v14, %v2904_v16  ;;  %vm2873_vm13 = vcmp.gt.f32.partialorder %v2841_v28, 0.0  ;;  %v2905_v47 = vmul.f32 0.1, %v2841_v28  ;;  %v3876_v59 = vadd.f32 %v3844_v43, %v4741_v30  ;;  %v2673_v60 = vpop.f32.mrb[13].mxu0 }
 0x1e3   : > { %2969 = vst.msk [vmem:[%s4769_s22 + $0x50] sm:$0xff] %vm2958_vm3, %v2936_v44  ;;  %v2934_v4 = vsel %vm2870_vm12, %v2838_v24, %v2902_v31  ;;  %vm2871_vm14 = vcmp.gt.f32.partialorder %v2839_v29, 0.0  ;;  %v2903_v11 = vmul.f32 0.1, %v2839_v29  ;;  %v3877_v17 = vadd.f32 %v2673_v60, %v4743_v34  ;;  %v3845_v18 = vpop.f32.mrb[14].mxu0 }
 0x1e4   : > { %2967 = vst.msk [vmem:[%s4769_s22 + $0x40] sm:$0xff] %vm2958_vm3, %v2934_v4  ;;  %v2937_v20 = vsel %vm2873_vm13, %v2841_v28, %v2905_v47  ;;  %v2805_v22 = vmul.f32 %v3876_v59, %v4752_v54  ;;  %v3878_v23 = vadd.f32 %v3845_v18, %v4745_v45  ;;  %v2676_v35 = vpop.f32.mrb[15].mxu0 }
 0x1e5   : > { %2970 = vst.msk [vmem:[%s4769_s22 + $0x58] sm:$0xff] %vm2958_vm3, %v2937_v20  ;;  %v2935_v30 = vsel %vm2871_vm14, %v2839_v29, %v2903_v11  ;;  %v2803_v36 = vmul.f32 %v3877_v17, %v4752_v54  ;;  %v3879_v37 = vadd.f32 %v2676_v35, %v4747_v46 }
 0x1e6   : > { %2968 = vst.msk [vmem:[%s4769_s22 + $0x48] sm:$0xff] %vm2958_vm3, %v2935_v30  ;;  %v2844_v34 = vadd.f32 %v4757_v7, %v2805_v22  ;;  %v2806_v40 = vmul.f32 %v3878_v23, %v4752_v54 }
 0x1e7   : > { %v2842_v41 = vadd.f32 %v4757_v7, %v2803_v36  ;;  %v2804_v42 = vmul.f32 %v3879_v37, %v4752_v54 }
 0x1e8   : > { %vm2876_vm15 = vcmp.gt.f32.partialorder %v2844_v34, 0.0  ;;  %v2908_v45 = vmul.f32 0.1, %v2844_v34  ;;  %v2845_v56 = vadd.f32 %v4757_v7, %v2806_v40  ;;  %v3712_v57 = vpop.f32.mrb[16].mxu1 }
 0x1e9   : > { %vm2874_vm0 = vcmp.gt.f32.partialorder %v2842_v41, 0.0  ;;  %v2906_v21 = vmul.f32 0.1, %v2842_v41  ;;  %v2843_v46 = vadd.f32 %v4757_v7, %v2804_v42  ;;  %v3848_v58 = vpop.f32.mrb[16].mxu0  ;;  %v1512_v39 = vpop.f32.mrb[17].mxu1 }
 0x1ea   : > { %v2940_v55 = vsel %vm2876_vm15, %v2844_v34, %v2908_v45  ;;  %vm2877_vm1 = vcmp.gt.f32.partialorder %v2845_v56, 0.0  ;;  %v2909_v61 = vmul.f32 0.1, %v2845_v56  ;;  %v3880_v1 = vadd.f32 %v3848_v58, %v3712_v57  ;;  %v2689_v9 = vpop.f32.mrb[17].mxu0  ;;  %v3713_v10 = vpop.f32.mrb[18].mxu1 }
 0x1eb   : > { %2973 = vst.msk [vmem:[%s4769_s22 + $0x70] sm:$0xff] %vm2958_vm3, %v2940_v55  ;;  %v2938_v53 = vsel %vm2874_vm0, %v2842_v41, %v2906_v21  ;;  %vm2875_vm2 = vcmp.gt.f32.partialorder %v2843_v46, 0.0  ;;  %v2907_v3 = vmul.f32 0.1, %v2843_v46  ;;  %v3881_v15 = vadd.f32 %v2689_v9, %v1512_v39  ;;  %v3849_v19 = vpop.f32.mrb[18].mxu0  ;;  %v1515_v26 = vpop.f32.mrb[19].mxu1 }
 0x1ec   : > { %2971 = vst.msk [vmem:[%s4769_s22 + $0x60] sm:$0xff] %vm2958_vm3, %v2938_v53  ;;  %v2941_v27 = vsel %vm2877_vm1, %v2845_v56, %v2909_v61  ;;  %v2809_v32 = vmul.f32 %v3880_v1, %v4752_v54  ;;  %v3882_v33 = vadd.f32 %v3849_v19, %v3713_v10  ;;  %v2692_v38 = vpop.f32.mrb[19].mxu0 }
 0x1ed   : > { %2974 = vst.msk [vmem:[%s4769_s22 + $0x78] sm:$0xff] %vm2958_vm3, %v2941_v27  ;;  %v2939_v48 = vsel %vm2875_vm2, %v2843_v46, %v2907_v3  ;;  %v2807_v49 = vmul.f32 %v3881_v15, %v4752_v54  ;;  %v3883_v50 = vadd.f32 %v2692_v38, %v1515_v26 }
 0x1ee   : > { %2972 = vst.msk [vmem:[%s4769_s22 + $0x68] sm:$0xff] %vm2958_vm3, %v2939_v48  ;;  %v2848_v51 = vadd.f32 %v4757_v7, %v2809_v32  ;;  %v2810_v62 = vmul.f32 %v3882_v33, %v4752_v54 }
 0x1ef   : > { %v2846_v63 = vadd.f32 %v4757_v7, %v2807_v49  ;;  %v2808_v0 = vmul.f32 %v3883_v50, %v4752_v54 }
 0x1f0   : > { %vm2880_vm4 = vcmp.gt.f32.partialorder %v2848_v51, 0.0  ;;  %v2912_v2 = vmul.f32 0.1, %v2848_v51  ;;  %v2849_v12 = vadd.f32 %v4757_v7, %v2810_v62  ;;  %v3716_v52 = vpop.f32.mrb[20].mxu1 }
 0x1f1   : > { %vm2878_vm5 = vcmp.gt.f32.partialorder %v2846_v63, 0.0  ;;  %v2910_v13 = vmul.f32 0.1, %v2846_v63  ;;  %v2847_v5 = vadd.f32 %v4757_v7, %v2808_v0  ;;  %v3852_v6 = vpop.f32.mrb[20].mxu0  ;;  %v1528_v14 = vpop.f32.mrb[21].mxu1 }
 0x1f2   : > { %v2944_v8 = vsel %vm2880_vm4, %v2848_v51, %v2912_v2  ;;  %vm2881_vm6 = vcmp.gt.f32.partialorder %v2849_v12, 0.0  ;;  %v2913_v24 = vmul.f32 0.1, %v2849_v12  ;;  %v3884_v25 = vadd.f32 %v3852_v6, %v3716_v52  ;;  %v2705_v16 = vpop.f32.mrb[21].mxu0  ;;  %v3717_v28 = vpop.f32.mrb[22].mxu1 }
 0x1f3   : > { %2977 = vst.msk [vmem:[%s4769_s22 + $0x90] sm:$0xff] %vm2958_vm3, %v2944_v8  ;;  %v2942_v31 = vsel %vm2878_vm5, %v2846_v63, %v2910_v13  ;;  %vm2879_vm7 = vcmp.gt.f32.partialorder %v2847_v5, 0.0  ;;  %v2911_v29 = vmul.f32 0.1, %v2847_v5  ;;  %v3885_v43 = vadd.f32 %v2705_v16, %v1528_v14  ;;  %v3853_v44 = vpop.f32.mrb[22].mxu0  ;;  %v1531_v47 = vpop.f32.mrb[23].mxu1 }
 0x1f4   : > { %2975 = vst.msk [vmem:[%s4769_s22 + $0x80] sm:$0xff] %vm2958_vm3, %v2942_v31  ;;  %v2945_v59 = vsel %vm2881_vm6, %v2849_v12, %v2913_v24  ;;  %v2813_v60 = vmul.f32 %v3884_v25, %v4752_v54  ;;  %v3886_v4 = vadd.f32 %v3853_v44, %v3717_v28  ;;  %v2708_v11 = vpop.f32.mrb[23].mxu0 }
 0x1f5   : > { %2978 = vst.msk [vmem:[%s4769_s22 + $0x98] sm:$0xff] %vm2958_vm3, %v2945_v59  ;;  %v2943_v17 = vsel %vm2879_vm7, %v2847_v5, %v2911_v29  ;;  %v2811_v18 = vmul.f32 %v3885_v43, %v4752_v54  ;;  %v3887_v20 = vadd.f32 %v2708_v11, %v1531_v47 }
 0x1f6   : > { %2976 = vst.msk [vmem:[%s4769_s22 + $0x88] sm:$0xff] %vm2958_vm3, %v2943_v17  ;;  %v2852_v22 = vadd.f32 %v4757_v7, %v2813_v60  ;;  %v2814_v23 = vmul.f32 %v3886_v4, %v4752_v54 }
 0x1f7   : > { %v2850_v35 = vadd.f32 %v4757_v7, %v2811_v18  ;;  %v2812_v30 = vmul.f32 %v3887_v20, %v4752_v54 }
 0x1f8   : > { %vm2884_vm8 = vcmp.gt.f32.partialorder %v2852_v22, 0.0  ;;  %v2916_v36 = vmul.f32 0.1, %v2852_v22  ;;  %v2853_v37 = vadd.f32 %v4757_v7, %v2814_v23  ;;  %v3720_v34 = vpop.f32.mrb[24].mxu1 }
 0x1f9   : > { %vm2882_vm9 = vcmp.gt.f32.partialorder %v2850_v35, 0.0  ;;  %v2914_v40 = vmul.f32 0.1, %v2850_v35  ;;  %v2851_v41 = vadd.f32 %v4757_v7, %v2812_v30  ;;  %v3856_v42 = vpop.f32.mrb[24].mxu0  ;;  %v1544_v45 = vpop.f32.mrb[25].mxu1 }
 0x1fa   : > { %v2948_v56 = vsel %vm2884_vm8, %v2852_v22, %v2916_v36  ;;  %vm2885_vm10 = vcmp.gt.f32.partialorder %v2853_v37, 0.0  ;;  %v2917_v57 = vmul.f32 0.1, %v2853_v37  ;;  %v3888_v21 = vadd.f32 %v3856_v42, %v3720_v34  ;;  %v2721_v46 = vpop.f32.mrb[25].mxu0  ;;  %v3721_v58 = vpop.f32.mrb[26].mxu1 }
 0x1fb   : > { %2981 = vst.msk [vmem:[%s4769_s22 + $0xb0] sm:$0xff] %vm2958_vm3, %v2948_v56  ;;  %v2946_v39 = vsel %vm2882_vm9, %v2850_v35, %v2914_v40  ;;  %vm2883_vm11 = vcmp.gt.f32.partialorder %v2851_v41, 0.0  ;;  %v2915_v55 = vmul.f32 0.1, %v2851_v41  ;;  %v3889_v61 = vadd.f32 %v2721_v46, %v1544_v45  ;;  %v3857_v1 = vpop.f32.mrb[26].mxu0  ;;  %v1547_v9 = vpop.f32.mrb[27].mxu1 }
 0x1fc   : > { %2979 = vst.msk [vmem:[%s4769_s22 + $0xa0] sm:$0xff] %vm2958_vm3, %v2946_v39  ;;  %v2949_v10 = vsel %vm2885_vm10, %v2853_v37, %v2917_v57  ;;  %v2817_v53 = vmul.f32 %v3888_v21, %v4752_v54  ;;  %v3890_v3 = vadd.f32 %v3857_v1, %v3721_v58  ;;  %v2724_v15 = vpop.f32.mrb[27].mxu0 }
 0x1fd   : > { %2982 = vst.msk [vmem:[%s4769_s22 + $0xb8] sm:$0xff] %vm2958_vm3, %v2949_v10  ;;  %v2947_v19 = vsel %vm2883_vm11, %v2851_v41, %v2915_v55  ;;  %v2815_v26 = vmul.f32 %v3889_v61, %v4752_v54  ;;  %v3891_v27 = vadd.f32 %v2724_v15, %v1547_v9 }
 0x1fe   : > { %2980 = vst.msk [vmem:[%s4769_s22 + $0xa8] sm:$0xff] %vm2958_vm3, %v2947_v19  ;;  %v2856_v32 = vadd.f32 %v4757_v7, %v2817_v53  ;;  %v2818_v33 = vmul.f32 %v3890_v3, %v4752_v54 }
 0x1ff   : > { %v2854_v38 = vadd.f32 %v4757_v7, %v2815_v26  ;;  %v2816_v48 = vmul.f32 %v3891_v27, %v4752_v54 }
 0x200   : > { %vm2888_vm12 = vcmp.gt.f32.partialorder %v2856_v32, 0.0  ;;  %v2920_v49 = vmul.f32 0.1, %v2856_v32  ;;  %v2857_v50 = vadd.f32 %v4757_v7, %v2818_v33  ;;  %v3724_v51 = vpop.f32.mrb[28].mxu1 }
 0x201   : > { %vm2886_vm13 = vcmp.gt.f32.partialorder %v2854_v38, 0.0  ;;  %v2918_v62 = vmul.f32 0.1, %v2854_v38  ;;  %v2855_v63 = vadd.f32 %v4757_v7, %v2816_v48  ;;  %v3860_v0 = vpop.f32.mrb[28].mxu0  ;;  %v1560_v2 = vpop.f32.mrb[29].mxu1 }
 0x202   : > { %v2952_v12 = vsel %vm2888_vm12, %v2856_v32, %v2920_v49  ;;  %vm2889_vm14 = vcmp.gt.f32.partialorder %v2857_v50, 0.0  ;;  %v2921_v52 = vmul.f32 0.1, %v2857_v50  ;;  %v3892_v13 = vadd.f32 %v3860_v0, %v3724_v51  ;;  %v2737_v5 = vpop.f32.mrb[29].mxu0  ;;  %v3725_v6 = vpop.f32.mrb[30].mxu1 }
 0x203   : > { %2985 = vst.msk [vmem:[%s4769_s22 + $0xd0] sm:$0xff] %vm2958_vm3, %v2952_v12  ;;  %v2950_v14 = vsel %vm2886_vm13, %v2854_v38, %v2918_v62  ;;  %vm2887_vm15 = vcmp.gt.f32.partialorder %v2855_v63, 0.0  ;;  %v2919_v8 = vmul.f32 0.1, %v2855_v63  ;;  %v3893_v24 = vadd.f32 %v2737_v5, %v1560_v2  ;;  %v3861_v25 = vpop.f32.mrb[30].mxu0  ;;  %v1563_v16 = vpop.f32.mrb[31].mxu1 }
 0x204   : > { %2983 = vst.msk [vmem:[%s4769_s22 + $0xc0] sm:$0xff] %vm2958_vm3, %v2950_v14  ;;  %v2953_v28 = vsel %vm2889_vm14, %v2857_v50, %v2921_v52  ;;  %v2821_v31 = vmul.f32 %v3892_v13, %v4752_v54  ;;  %v3894_v29 = vadd.f32 %v3861_v25, %v3725_v6  ;;  %v2740_v43 = vpop.f32.mrb[31].mxu0 }
 0x205   : > { %2986 = vst.msk [vmem:[%s4769_s22 + $0xd8] sm:$0xff] %vm2958_vm3, %v2953_v28  ;;  %v2951_v44 = vsel %vm2887_vm15, %v2855_v63, %v2919_v8  ;;  %v2819_v47 = vmul.f32 %v3893_v24, %v4752_v54  ;;  %v3895_v59 = vadd.f32 %v2740_v43, %v1563_v16 }
 0x206   : > { %2984 = vst.msk [vmem:[%s4769_s22 + $0xc8] sm:$0xff] %vm2958_vm3, %v2951_v44  ;;  %v2860_v60 = vadd.f32 %v4757_v7, %v2821_v31  ;;  %v2822_v4 = vmul.f32 %v3894_v29, %v4752_v54 }
 0x207   : > { %v2858_v11 = vadd.f32 %v4757_v7, %v2819_v47  ;;  %v2820_v17 = vmul.f32 %v3895_v59, %v4752_v54 }
 0x208   : > { %vm2892_vm0 = vcmp.gt.f32.partialorder %v2860_v60, 0.0  ;;  %v2924_v18 = vmul.f32 0.1, %v2860_v60  ;;  %v2861_v20 = vadd.f32 %v4757_v7, %v2822_v4 }
 0x209   : > { %vm2890_vm1 = vcmp.gt.f32.partialorder %v2858_v11, 0.0  ;;  %v2922_v22 = vmul.f32 0.1, %v2858_v11  ;;  %v2859_v23 = vadd.f32 %v4757_v7, %v2820_v17 }
 0x20a   : > { %v2956_v35 = vsel %vm2892_vm0, %v2860_v60, %v2924_v18  ;;  %vm2893_vm2 = vcmp.gt.f32.partialorder %v2861_v20, 0.0  ;;  %v2925_v30 = vmul.f32 0.1, %v2861_v20 }
 0x20b   : > { %2989 = vst.msk [vmem:[%s4769_s22 + $0xf0] sm:$0xff] %vm2958_vm3, %v2956_v35  ;;  %v2954_v36 = vsel %vm2890_vm1, %v2858_v11, %v2922_v22  ;;  %vm2891_vm4 = vcmp.gt.f32.partialorder %v2859_v23, 0.0  ;;  %v2923_v37 = vmul.f32 0.1, %v2859_v23 }
 0x20c   : > { %2987 = vst.msk [vmem:[%s4769_s22 + $0xe0] sm:$0xff] %vm2958_vm3, %v2954_v36  ;;  %v2957_v54 = vsel %vm2893_vm2, %v2861_v20, %v2925_v30 }
 0x20d   : > { %2990 = vst.msk [vmem:[%s4769_s22 + $0xf8] sm:$0xff] %vm2958_vm3, %v2957_v54  ;;  %v2955_v34 = vsel %vm2891_vm4, %v2859_v23, %v2923_v37 }
 0x20e   : > { %2988 = vst.msk [vmem:[%s4769_s22 + $0xe8] sm:$0xff] %vm2958_vm3, %v2955_v34 }
 0x20f PF: > { %s14_s15 = sadd.s32 1, %s4145_s15  }
 0x210   : > { %p11_p4 = scmp.ge.s32.totalorder %s14_s15, 4  }
 0x212   :  { %13 = sbr.rel (!%p11_p4) target bundleno = 1 (0x1), region = 76 }

// kernel: darknet_forward.8
= control target key start
LH: loop header
LB: loop body
LE: loop exit
PB: predicated region body
PF: predicated region fallthrough
CT: control target
= control target key end

     0   :  { %s485_s15 = smov 0   ;;  %s529_s0 = inlined_call_operand.vmem [shape: f32[2,8,8,32], index: 0, kind: input, shape index: {}]   ;;  %s530_s1 = inlined_call_operand.vmem [shape: bf16[1,32,8], index: 1, kind: input, shape index: {}]   ;;  %s531_s2 = inlined_call_operand.vmem [shape: f32[1,8], index: 2, kind: input, shape index: {}]   ;;  %s532_s3 = inlined_call_operand.vmem [shape: f32[1,8], index: 3, kind: input, shape index: {}]   ;;  %s533_s4 = inlined_call_operand.vmem [shape: f32[2,64,8], index: 4, kind: output, shape index: {}]  }
   0x1 LB: > { %s399_s16 = sadd.s32 4294967295, %s458_s15   ;;  %p403_p0 = scmp.ge.s32.totalorder %s458_s15, 1  ;;  %s458_s15 = sphi %s485_s15, %s14_s15  }
   0x2   : > { %p162_p1 = scmp.lt.s32.totalorder %s458_s15, 3 }
   0x4   : > { %p163_p2 = pnand %p403_p0, %p162_p1 }
   0x5   : > { %v450_v0 = vld [vmem:[%s530_s1] sm:$0xff] (!%p163_p2)   ;;  %p188_p3 = scmp.lt.s32.totalorder (!%p163_p2), %s399_s16, 1  ;;  %v451_v1 = vld [vmem:[%s530_s1 + $0x8] sm:$0xff] (!%p163_p2)   ;;  %vm227_vm0 = vcmask (!%p163_p2), 261120   ;;  %vm335_vm1 = vcmask (!%p163_p2), 64512  }
   0x6   : > { %166 = sbr.rel (%p163_p2) target bundleno = 241 (0xf1), region = 36  ;;  %426 = vmatprep.subr.bf16.mxu0 (!%p163_p2), %v450_v0  ;;  %438 = vmatprep.subr.bf16.mxu1 (!%p163_p2), %v450_v0  ;;  %v414_v14 = vld [vmem:[%s531_s2] ss:$0 sm:$0xff] (!%p163_p2) }
   0x7   : > { %427 = vmatpush3.bf16.msra.mxu0 (!%p163_p2), %v450_v0  ;;  %440 = vmatpush3.bf16.msra.mxu1 (!%p163_p2), %v450_v0  ;;  %v415_v16 = vld [vmem:[%s532_s3] ss:$0 sm:$0xff] (!%p163_p2) }
   0x8   : > { %428 = vmatprep.subr.bf16.mxu0 (!%p163_p2), %v451_v1  ;;  %439 = vmatprep.subr.bf16.mxu1 (!%p163_p2), %v451_v1 }
   0xb   : > { %429 = vmatpush3.bf16.msra.mxu0 (!%p163_p2), %v451_v1  ;;  %441 = vmatpush3.bf16.msra.mxu1 (!%p163_p2), %v451_v1 }
   0xd   : > { %s535_s16 = smov (!%p188_p3, %s399_s16), 1 }
   0xe   : > { %s418_s21 = sshll.u32 %s535_s16, 6 }
   0xf   : > { %s192_s24 = scalar_lea.vmem %s529_s0, %s418_s21  ;;  %s197_s5 = scalar_lea.vmem %s533_s4, %s418_s21 }
  0x10   : > { %v199_v2 = vld [vmem:[%s192_s24] sm:$0xff]  ;;  %v200_v3 = vld [vmem:[%s192_s24 + $0x8] sm:$0xff]  ;;  %v201_v7 = vld [vmem:[%s192_s24 + $0x10] sm:$0xff] }
  0x11   : > { %v203_v4 = vld [vmem:[%s192_s24 + $0x20] sm:$0xff]  ;;  %v207_v5 = vpack.c.bf16 %v200_v3, %v199_v2  ;;  %v204_v6 = vld [vmem:[%s192_s24 + $0x28] sm:$0xff]  ;;  %v202_v8 = vld [vmem:[%s192_s24 + $0x18] sm:$0xff] }
  0x12   : > { %v209_v9 = vpack.c.bf16 %v204_v6, %v203_v4  ;;  %v208_v10 = vpack.c.bf16 %v202_v8, %v201_v7  ;;  %v205_v11 = vld [vmem:[%s192_s24 + $0x30] sm:$0xff]  ;;  %v206_v12 = vld [vmem:[%s192_s24 + $0x38] sm:$0xff] }
  0x13   : > { %430 = vmatprep.mubr.msk.bf16.mxu0 %vm227_vm0, %v207_v5  ;;  %v210_v13 = vpack.c.bf16 %v206_v12, %v205_v11 }
  0x14   : > { %434 = vmatprep.mubr.msk.bf16.mxu1 %vm227_vm0, %v209_v9  ;;  %431 = vmatmul.mubr.msk.bf16.vlgmr.msra.gmra.mrb[0].mxu0 %vm227_vm0, %v208_v10 }
  0x15   : > { %435 = vmatmul.mubr.msk.bf16.vlgmr.msra.gmra.mrb[0].mxu1 %vm227_vm0, %v210_v13 }
  0xe7   : > { %v432_v15 = vpop.f32.mrb[0].mxu0 }
  0xe8   : > { %v314_v17 = vmul.f32 %v432_v15, %v414_v14  ;;  %v436_v18 = vpop.f32.mrb[0].mxu1  ;;  %v274_v19 = vpop.f32.mrb[1].mxu0 }
  0xe9   : > { %v318_v20 = vmul.f32 %v436_v18, %v414_v14  ;;  %v312_v21 = vmul.f32 %v414_v14, %v274_v19  ;;  %v290_v22 = vpop.f32.mrb[1].mxu1  ;;  %v433_v23 = vpop.f32.mrb[2].mxu0 }
  0xea   : > { %v329_v24 = vadd.f32 %v415_v16, %v314_v17  ;;  %v316_v25 = vmul.f32 %v414_v14, %v290_v22  ;;  %v315_v26 = vmul.f32 %v433_v23, %v414_v14  ;;  %v437_v27 = vpop.f32.mrb[2].mxu1  ;;  %v277_v28 = vpop.f32.mrb[3].mxu0 }
  0xeb   : > { %v333_v29 = vadd.f32 %v415_v16, %v318_v20  ;;  %v327_v30 = vadd.f32 %v415_v16, %v312_v21  ;;  %v319_v31 = vmul.f32 %v437_v27, %v414_v14  ;;  %v313_v32 = vmul.f32 %v414_v14, %v277_v28  ;;  %v293_v33 = vpop.f32.mrb[3].mxu1 }
  0xec   : > { %338 = vst.msk [vmem:[%s197_s5 + $0x10] sm:$0xff] %vm335_vm1, %v329_v24  ;;  %v331_v34 = vadd.f32 %v415_v16, %v316_v25  ;;  %v330_v35 = vadd.f32 %v415_v16, %v315_v26  ;;  %v317_v36 = vmul.f32 %v414_v14, %v293_v33 }
  0xed   : > { %342 = vst.msk [vmem:[%s197_s5 + $0x30] sm:$0xff] %vm335_vm1, %v333_v29  ;;  %336 = vst.msk [vmem:[%s197_s5] sm:$0xff] %vm335_vm1, %v327_v30  ;;  %v334_v37 = vadd.f32 %v415_v16, %v319_v31  ;;  %v328_v38 = vadd.f32 %v415_v16, %v313_v32 }
  0xee   : > { %340 = vst.msk [vmem:[%s197_s5 + $0x20] sm:$0xff] %vm335_vm1, %v331_v34  ;;  %339 = vst.msk [vmem:[%s197_s5 + $0x18] sm:$0xff] %vm335_vm1, %v330_v35  ;;  %v332_v39 = vadd.f32 %v415_v16, %v317_v36 }
  0xef   : > { %343 = vst.msk [vmem:[%s197_s5 + $0x38] sm:$0xff] %vm335_vm1, %v334_v37  ;;  %337 = vst.msk [vmem:[%s197_s5 + $0x8] sm:$0xff] %vm335_vm1, %v328_v38 }
  0xf0   : > { %341 = vst.msk [vmem:[%s197_s5 + $0x28] sm:$0xff] %vm335_vm1, %v332_v39 }
  0xf1 PF: > { %s14_s15 = sadd.s32 1, %s458_s15  }
  0xf2   : > { %p11_p4 = scmp.ge.s32.totalorder %s14_s15, 4  }
  0xf4   :  { %13 = sbr.rel (!%p11_p4) target bundleno = 1 (0x1), region = 66 }

// kernel: darknet_forward.9
= control target key start
LH: loop header
LB: loop body
LE: loop exit
PB: predicated region body
PF: predicated region fallthrough
CT: control target
= control target key end

     0   :  { %s343_s9 = smov 0   ;;  %s417_s0 = inlined_call_operand.vmem [shape: f32[2,16,8,8], index: 0, kind: input, shape index: {}]   ;;  %s418_s1 = inlined_call_operand.vmem [shape: f32[2,16,8,8], index: 1, kind: input, shape index: {}]   ;;  %s419_s2 = inlined_call_operand.vmem [shape: f32[2,8,8,8], index: 2, kind: output, shape index: {}]  }
   0x1 LB: > { %s296_s10 = sadd.s32 4294967295, %s326_s9   ;;  %p300_p0 = scmp.ge.s32.totalorder %s326_s9, 1  ;;  %s326_s9 = sphi %s343_s9, %s12_s9  }
   0x2   : > { %p122_p1 = scmp.lt.s32.totalorder %s326_s9, 3 }
   0x4   : > { %p123_p2 = pnand %p300_p0, %p122_p1 }
   0x5   : > { %p149_p3 = scmp.lt.s32.totalorder (!%p123_p2), %s296_s10, 1  ;;  %vm220_vm0 = vcmask (!%p123_p2), 64512  }
   0x6   : > { %126 = sbr.rel (%p123_p2) target bundleno = 32 (0x20), region = 28 }
   0xd   : > { %s421_s10 = smov (!%p149_p3, %s296_s10), 1 }
   0xe   : > { %s309_s11 = sshll.u32 %s421_s10, 7  ;;  %s311_s18 = sshll.u32 %s421_s10, 6 }
   0xf   : > { %s354_s14 = scalar_lea.vmem %s417_s0, %s309_s11  ;;  %s359_s17 = scalar_lea.vmem %s418_s1, %s309_s11 }
  0x10   : > { %v164_v0 = vld [vmem:[%s354_s14] sm:$0xff]  ;;  %v165_v1 = vld [vmem:[%s354_s14 + $0x8] sm:$0xff]  ;;  %v166_v5 = vld [vmem:[%s354_s14 + $0x10] sm:$0xff]  ;;  %s373_s21 = scalar_lea.vmem %s419_s2, %s311_s18 }
  0x11   : > { %v180_v2 = vld [vmem:[%s359_s17] sm:$0xff]  ;;  %v181_v3 = vld [vmem:[%s359_s17 + $0x8] sm:$0xff]  ;;  %v196_v4 = vmax.f32 %v164_v0, %v165_v1  ;;  %v167_v6 = vld [vmem:[%s354_s14 + $0x18] sm:$0xff] }
  0x12   : > { %v204_v7 = vmax.f32 %v180_v2, %v181_v3  ;;  %v182_v8 = vld [vmem:[%s359_s17 + $0x10] sm:$0xff]  ;;  %v183_v9 = vld [vmem:[%s359_s17 + $0x18] sm:$0xff]  ;;  %v197_v10 = vmax.f32 %v166_v5, %v167_v6  ;;  %v168_v11 = vld [vmem:[%s354_s14 + $0x20] sm:$0xff] }
  0x13   : > { %v205_v12 = vmax.f32 %v182_v8, %v183_v9  ;;  %v169_v13 = vld [vmem:[%s354_s14 + $0x28] sm:$0xff]  ;;  %v184_v14 = vld [vmem:[%s359_s17 + $0x20] sm:$0xff]  ;;  %v170_v19 = vld [vmem:[%s354_s14 + $0x30] sm:$0xff] }
  0x14   : > { %v185_v15 = vld [vmem:[%s359_s17 + $0x28] sm:$0xff]  ;;  %v212_v16 = vmax.f32 %v196_v4, %v204_v7  ;;  %v198_v17 = vmax.f32 %v168_v11, %v169_v13  ;;  %v171_v20 = vld [vmem:[%s354_s14 + $0x38] sm:$0xff]  ;;  %v186_v21 = vld [vmem:[%s359_s17 + $0x30] sm:$0xff] }
  0x15   : > { %v206_v18 = vmax.f32 %v184_v14, %v185_v15  ;;  %v213_v22 = vmax.f32 %v197_v10, %v205_v12  ;;  %v187_v23 = vld [vmem:[%s359_s17 + $0x38] sm:$0xff]  ;;  %v199_v24 = vmax.f32 %v170_v19, %v171_v20  ;;  %v172_v25 = vld [vmem:[%s354_s14 + $0x40] sm:$0xff]  ;;  %v173_v26 = vld [vmem:[%s354_s14 + $0x48] sm:$0xff] }
  0x16   : > { %221 = vst.msk [vmem:[%s373_s21] sm:$0xff] %vm220_vm0, %v212_v16  ;;  %v207_v28 = vmax.f32 %v186_v21, %v187_v23  ;;  %v188_v29 = vld [vmem:[%s359_s17 + $0x40] sm:$0xff]  ;;  %v189_v30 = vld [vmem:[%s359_s17 + $0x48] sm:$0xff]  ;;  %v200_v31 = vmax.f32 %v172_v25, %v173_v26  ;;  %v174_v32 = vld [vmem:[%s354_s14 + $0x50] sm:$0xff] }
  0x17   : > { %v214_v27 = vmax.f32 %v198_v17, %v206_v18  ;;  %222 = vst.msk [vmem:[%s373_s21 + $0x8] sm:$0xff] %vm220_vm0, %v213_v22  ;;  %v208_v33 = vmax.f32 %v188_v29, %v189_v30  ;;  %v175_v34 = vld [vmem:[%s354_s14 + $0x58] sm:$0xff]  ;;  %v190_v35 = vld [vmem:[%s359_s17 + $0x50] sm:$0xff]  ;;  %v176_v40 = vld [vmem:[%s354_s14 + $0x60] sm:$0xff] }
  0x18   : > { %v191_v36 = vld [vmem:[%s359_s17 + $0x58] sm:$0xff]  ;;  %v215_v37 = vmax.f32 %v199_v24, %v207_v28  ;;  %v201_v38 = vmax.f32 %v174_v32, %v175_v34  ;;  %v177_v41 = vld [vmem:[%s354_s14 + $0x68] sm:$0xff]  ;;  %v192_v42 = vld [vmem:[%s359_s17 + $0x60] sm:$0xff] }
  0x19   : > { %223 = vst.msk [vmem:[%s373_s21 + $0x10] sm:$0xff] %vm220_vm0, %v214_v27  ;;  %v209_v39 = vmax.f32 %v190_v35, %v191_v36  ;;  %v216_v43 = vmax.f32 %v200_v31, %v208_v33  ;;  %v193_v44 = vld [vmem:[%s359_s17 + $0x68] sm:$0xff]  ;;  %v202_v45 = vmax.f32 %v176_v40, %v177_v41  ;;  %v178_v46 = vld [vmem:[%s354_s14 + $0x70] sm:$0xff]  ;;  %v179_v47 = vld [vmem:[%s354_s14 + $0x78] sm:$0xff] }
  0x1a   : > { %224 = vst.msk [vmem:[%s373_s21 + $0x18] sm:$0xff] %vm220_vm0, %v215_v37  ;;  %v210_v49 = vmax.f32 %v192_v42, %v193_v44  ;;  %v194_v50 = vld [vmem:[%s359_s17 + $0x70] sm:$0xff]  ;;  %v195_v51 = vld [vmem:[%s359_s17 + $0x78] sm:$0xff]  ;;  %v203_v52 = vmax.f32 %v178_v46, %v179_v47 }
  0x1b   : > { %v217_v48 = vmax.f32 %v201_v38, %v209_v39  ;;  %225 = vst.msk [vmem:[%s373_s21 + $0x20] sm:$0xff] %vm220_vm0, %v216_v43  ;;  %v211_v53 = vmax.f32 %v194_v50, %v195_v51 }
  0x1c   : > { %v218_v54 = vmax.f32 %v202_v45, %v210_v49 }
  0x1d   : > { %226 = vst.msk [vmem:[%s373_s21 + $0x28] sm:$0xff] %vm220_vm0, %v217_v48  ;;  %v219_v55 = vmax.f32 %v203_v52, %v211_v53 }
  0x1e   : > { %227 = vst.msk [vmem:[%s373_s21 + $0x30] sm:$0xff] %vm220_vm0, %v218_v54 }
  0x1f   : > { %228 = vst.msk [vmem:[%s373_s21 + $0x38] sm:$0xff] %vm220_vm0, %v219_v55 }
  0x20 PF: > { %s12_s9 = sadd.s32 1, %s326_s9  }
  0x21   : > { %p9_p4 = scmp.ge.s32.totalorder %s12_s9, 4  }
  0x23   :  { %11 = sbr.rel (!%p9_p4) target bundleno = 1 (0x1), region = 61 }

</bundles_post_ra>
